<compile_context>
chip_gen: v7x
topology: tpu7x:2x2x1
jax: 0.10.0
libtpu: 0.0.40
codegen_flags: <defaults>
</compile_context>

<pallas_src>
import math

import jax
import jax.numpy as jnp
from jax.experimental import pallas as pl
from jax.experimental.pallas import tpu as pltpu

# ---- small synthetic config (real TabPFN: d=512, ff=1024, 12 layers) --------
N = 10                      # number of samples (sequence length)
N_PAD = 16                  # padded to a multiple of 8 sublanes
SEP = int(0.8 * N)          # single_eval_pos = 8
N_NUM = 5                   # numerical features
PAD_NUM = 100               # TabPFN pads numerical features to 100
CARDINALITIES = (3, 5, 7)   # categorical cardinalities
N_CAT = len(CARDINALITIES)
TOTAL_CARD = sum(CARDINALITIES)
K_ENC = 128                 # fused encoder contraction width (100 num + 15 cat, padded)
D = 128                     # d_embedding / d_model
NHEAD = 4
HEAD_DIM = D // NHEAD
FF = 256                    # transformer feed-forward width
NLAYERS = 2
DEC_HID = 256               # decoder hidden width
N_OUT = 10                  # decoder output width (TabPFN max classes)
K_OUT = 128                 # lane-dense output width (logits live in [:N_OUT])
NUM_CLS = 3
LN_EPS = 1e-5
NEG_BIG = -1e9


def _gelu(x):
    # TODO(synk): PyTorch default nn.GELU is exact (erf); tanh approximation
    # used since erf lowering support varies across Mosaic versions.
    return jax.nn.gelu(x, approximate=True)


def _layer_norm(x, g, b):
    mu = jnp.mean(x, axis=-1, keepdims=True)
    var = jnp.mean((x - mu) ** 2, axis=-1, keepdims=True)
    return (x - mu) * jax.lax.rsqrt(var + LN_EPS) * g + b


def ft_tabpfn_kernel(
    # data / masks (prebuilt in the wrapper)
    x_feat_ref,   # (N_PAD, K_ENC) f32: lanes [0,100) numerics, [100,115) multi-hot
    y_ref,        # (N_PAD, 1) f32
    ctx_ref,      # (N_PAD, 1) f32: 1.0 for rows < SEP (context), else 0
    kmask_ref,    # (1, N_PAD) f32: 0 for real keys, NEG_BIG for padded keys
    # encoders
    w_enc_ref, b_enc_ref,    # (K_ENC, D) bf16, (1, D) f32
    w_y_ref, b_y_ref,        # (1, D) f32, (1, D) f32
    # transformer layers (leading NLAYERS axis, fully resident)
    wqkv_ref, bqkv_ref,      # (L, D, 3D) bf16 (scale folded into Q), (L, 1, 3D) f32
    wo_ref, bo_ref,          # (L, D, D) bf16, (L, 1, D) f32
    ln1g_ref, ln1b_ref,      # (L, 1, D) f32
    w1_ref, b1_ref,          # (L, D, FF) bf16, (L, 1, FF) f32
    w2_ref, b2_ref,          # (L, FF, D) bf16, (L, 1, D) f32
    ln2g_ref, ln2b_ref,      # (L, 1, D) f32
    # decoder
    wd1_ref, bd1_ref, wd2_ref, bd2_ref,
    # output
    out_ref,                 # (N_PAD, K_OUT) f32
):
    f32 = jnp.float32
    bf16 = jnp.bfloat16

    # ---------------- encoders -----------------------------------------------
    # one aligned 128-wide MXU pass: Linear(100,D) + sum of embedding lookups
    x = jnp.dot(x_feat_ref[...].astype(bf16), w_enc_ref[...],
                preferred_element_type=f32) + b_enc_ref[...]
    # y encoder Linear(1, D) as a VPU broadcast; added only to context rows
    y_enc = y_ref[...] * w_y_ref[...] + b_y_ref[...]          # (N_PAD, D)
    x = x + ctx_ref[...] * y_enc

    kmask = kmask_ref[...]                                     # (1, N_PAD) additive mask

    # ---------------- transformer encoder layers (post-norm, GELU) -----------
    for l in range(NLAYERS):                                   # static unroll (tiny model)
        xb = x.astype(bf16)
        # fused QKV: one (16,128)@(128,384) matmul; 1/sqrt(HEAD_DIM) baked into Q cols
        qkv = jnp.dot(xb, wqkv_ref[l], preferred_element_type=f32) + bqkv_ref[l]

        o_parts = []
        for h in range(NHEAD):                                 # static lane slices per head
            qh = qkv[:, h * HEAD_DIM:(h + 1) * HEAD_DIM].astype(bf16)
            kh = qkv[:, D + h * HEAD_DIM:D + (h + 1) * HEAD_DIM].astype(bf16)
            vh = qkv[:, 2 * D + h * HEAD_DIM:2 * D + (h + 1) * HEAD_DIM].astype(bf16)
            # q @ k^T without an explicit transpose (contract last dims)
            s = jax.lax.dot_general(qh, kh, (((1,), (1,)), ((), ())),
                                    preferred_element_type=f32) + kmask
            m = jnp.max(s, axis=-1, keepdims=True)
            e = jnp.exp(s - m)
            p = e / jnp.sum(e, axis=-1, keepdims=True)          # exact divide (parity)
            o_parts.append(jnp.dot(p.astype(bf16), vh, preferred_element_type=f32))
        o = jnp.concatenate(o_parts, axis=-1)                   # heads concat on lanes -> (N_PAD, D)

        # fused output projection: one (16,128)@(128,128) matmul
        attn = jnp.dot(o.astype(bf16), wo_ref[l], preferred_element_type=f32) + bo_ref[l]
        x = _layer_norm(x + attn, ln1g_ref[l], ln1b_ref[l])

        ff = jnp.dot(x.astype(bf16), w1_ref[l], preferred_element_type=f32) + b1_ref[l]
        ff = _gelu(ff)
        ff = jnp.dot(ff.astype(bf16), w2_ref[l], preferred_element_type=f32) + b2_ref[l]
        x = _layer_norm(x + ff, ln2g_ref[l], ln2b_ref[l])

    # ---------------- decoder -------------------------------------------------
    h = _gelu(jnp.dot(x.astype(bf16), wd1_ref[...], preferred_element_type=f32)
              + bd1_ref[...])
    out_ref[...] = (jnp.dot(h.astype(bf16), wd2_ref[...], preferred_element_type=f32)
                    + bd2_ref[...])


def init_params(key):
    ks = jax.random.split(key, 16)
    s = 0.02
    f32 = jnp.float32
    bf16 = jnp.bfloat16

    def nrm(k, shape):
        return s * jax.random.normal(k, shape, f32)

    p = {}
    # fused encoder weight: rows [0,100) numerical Linear, rows [100,115)
    # concatenated per-feature embedding tables, remaining rows zero.
    w_enc = jnp.zeros((K_ENC, D), f32)
    w_enc = w_enc.at[:PAD_NUM].set(nrm(ks[0], (PAD_NUM, D)))
    w_enc = w_enc.at[PAD_NUM:PAD_NUM + TOTAL_CARD].set(nrm(ks[1], (TOTAL_CARD, D)))
    p["w_enc"] = w_enc.astype(bf16)
    # bias = numerical Linear bias + sum of per-feature CategoricalEmbeddings biases
    p["b_enc"] = (nrm(ks[2], (1, D))
                  + jnp.sum(nrm(ks[3], (N_CAT, D)), axis=0, keepdims=True))
    p["w_y"] = nrm(ks[4], (1, D))
    p["b_y"] = jnp.zeros((1, D), f32)

    scale = 1.0 / math.sqrt(HEAD_DIM)
    wq = nrm(ks[5], (NLAYERS, D, D)) * scale        # attention scale folded into Q
    wk = nrm(ks[6], (NLAYERS, D, D))
    wv = nrm(ks[7], (NLAYERS, D, D))
    p["wqkv"] = jnp.concatenate([wq, wk, wv], axis=-1).astype(bf16)   # (L, D, 3D)
    p["bqkv"] = jnp.zeros((NLAYERS, 1, 3 * D), f32)
    p["wo"] = nrm(ks[8], (NLAYERS, D, D)).astype(bf16)
    p["bo"] = jnp.zeros((NLAYERS, 1, D), f32)
    p["ln1g"] = jnp.ones((NLAYERS, 1, D), f32)
    p["ln1b"] = jnp.zeros((NLAYERS, 1, D), f32)
    p["w1"] = nrm(ks[9], (NLAYERS, D, FF)).astype(bf16)
    p["b1"] = jnp.zeros((NLAYERS, 1, FF), f32)
    p["w2"] = nrm(ks[10], (NLAYERS, FF, D)).astype(bf16)
    p["b2"] = jnp.zeros((NLAYERS, 1, D), f32)
    p["ln2g"] = jnp.ones((NLAYERS, 1, D), f32)
    p["ln2b"] = jnp.zeros((NLAYERS, 1, D), f32)
    p["wd1"] = nrm(ks[11], (D, DEC_HID)).astype(bf16)
    p["bd1"] = jnp.zeros((1, DEC_HID), f32)
    # decoder output padded to lane-dense 128 columns (real logits in [:N_OUT])
    wd2 = jnp.zeros((DEC_HID, K_OUT), f32)
    wd2 = wd2.at[:, :N_OUT].set(nrm(ks[12], (DEC_HID, N_OUT)))
    p["wd2"] = wd2.astype(bf16)
    p["bd2"] = jnp.zeros((1, K_OUT), f32)
    return p


def ft_tabpfn_forward(X_numerical, X_categorical, y, params):
    f32 = jnp.float32
    n = X_numerical.shape[0]

    # glue: F.pad(X_numerical, (0, 100 - n_features)) into lanes [0,100) and the
    # categorical multi-hot (embedding lookups as one-hot @ table) into lanes
    # [100, 100+TOTAL_CARD); rows padded to N_PAD with zeros.
    offs, o = [], PAD_NUM
    for c in CARDINALITIES:
        offs.append(o)
        o += c
    cat_lane = X_categorical.astype(jnp.int32) + jnp.array(offs, jnp.int32)[None, :]
    multi_hot = jax.nn.one_hot(cat_lane, K_ENC, dtype=f32).sum(axis=1)        # (n, K_ENC)
    x_num = jnp.pad(X_numerical.astype(f32), ((0, 0), (0, K_ENC - X_numerical.shape[-1])))
    x_feat = jnp.zeros((N_PAD, K_ENC), f32).at[:n].set(x_num + multi_hot)

    y_f = y.astype(f32)
    y_pad = jnp.zeros((N_PAD, 1), f32).at[:n].set(y_f)
    ctx = (jnp.arange(N_PAD) < SEP).astype(f32).reshape(N_PAD, 1)             # context rows
    key_mask = jnp.where(jnp.arange(N_PAD) < n, 0.0, NEG_BIG).astype(f32).reshape(1, N_PAD)

    args = (
        x_feat, y_pad, ctx, key_mask,
        params["w_enc"], params["b_enc"], params["w_y"], params["b_y"],
        params["wqkv"], params["bqkv"], params["wo"], params["bo"],
        params["ln1g"], params["ln1b"],
        params["w1"], params["b1"], params["w2"], params["b2"],
        params["ln2g"], params["ln2b"],
        params["wd1"], params["bd1"], params["wd2"], params["bd2"],
    )

    # Single invocation, no grid: every operand (< 1 MiB total) is resident in
    # VMEM for the whole call; layers are unrolled inside the kernel body.
    out = pl.pallas_call(
        ft_tabpfn_kernel,
        out_shape=jax.ShapeDtypeStruct((N_PAD, K_OUT), f32),
        compiler_params=pltpu.CompilerParams(vmem_limit_bytes=32 << 20),
    )(*args)

    y_preds = out[SEP:n, :NUM_CLS]                    # output[sep:][:, :num_cls]
    y_query = y_f[SEP:].astype(jnp.int32).flatten()   # y_query.long().flatten()
    return y_preds, y_query


if __name__ == "__main__":
    key = jax.random.PRNGKey(0)
    k_num, k_cat, k_y, k_p = jax.random.split(key, 4)

    X_numerical = jax.random.normal(k_num, (N, N_NUM), jnp.float32)
    X_categorical = jax.random.randint(
        k_cat, (N, N_CAT), 0, jnp.array(CARDINALITIES, jnp.int32)
    )
    y = jax.random.randint(k_y, (N, 1), 0, NUM_CLS).astype(jnp.float32)

    params = init_params(k_p)

    y_preds, y_query = ft_tabpfn_forward(X_numerical, X_categorical, y, params)
    jax.block_until_ready((y_preds, y_query))
    assert y_preds.shape == (N - SEP, NUM_CLS)
    assert y_query.shape == (N - SEP,)
    assert bool(jnp.all(jnp.isfinite(y_preds)))
    print("KERNEL_OK")
</pallas_src>

<mosaic_0001>
module attributes {stable_mosaic.version = 11 : i64} {
  func.func @ft_tabpfn_kernel(%arg0: memref<16x128xf32, #tpu.memory_space<vmem>>, %arg1: memref<16x1xf32, #tpu.memory_space<vmem>>, %arg2: memref<16x1xf32, #tpu.memory_space<vmem>>, %arg3: memref<1x16xf32, #tpu.memory_space<vmem>>, %arg4: memref<128x128xbf16, #tpu.memory_space<vmem>>, %arg5: memref<1x128xf32, #tpu.memory_space<vmem>>, %arg6: memref<1x128xf32, #tpu.memory_space<vmem>>, %arg7: memref<1x128xf32, #tpu.memory_space<vmem>>, %arg8: memref<2x128x384xbf16, #tpu.memory_space<vmem>>, %arg9: memref<2x1x384xf32, #tpu.memory_space<vmem>>, %arg10: memref<2x128x128xbf16, #tpu.memory_space<vmem>>, %arg11: memref<2x1x128xf32, #tpu.memory_space<vmem>>, %arg12: memref<2x1x128xf32, #tpu.memory_space<vmem>>, %arg13: memref<2x1x128xf32, #tpu.memory_space<vmem>>, %arg14: memref<2x128x256xbf16, #tpu.memory_space<vmem>>, %arg15: memref<2x1x256xf32, #tpu.memory_space<vmem>>, %arg16: memref<2x256x128xbf16, #tpu.memory_space<vmem>>, %arg17: memref<2x1x128xf32, #tpu.memory_space<vmem>>, %arg18: memref<2x1x128xf32, #tpu.memory_space<vmem>>, %arg19: memref<2x1x128xf32, #tpu.memory_space<vmem>>, %arg20: memref<128x256xbf16, #tpu.memory_space<vmem>>, %arg21: memref<1x256xf32, #tpu.memory_space<vmem>>, %arg22: memref<256x128xbf16, #tpu.memory_space<vmem>>, %arg23: memref<1x128xf32, #tpu.memory_space<vmem>>, %arg24: memref<16x128xf32, #tpu.memory_space<vmem>>) attributes {dimension_semantics = [], scalar_prefetch = 0 : i64, scratch_operands = 0 : i64, tpu.core_type = #tpu.core_type<tc>} {
    %c0 = arith.constant 0 : index
    %c0_0 = arith.constant 0 : index
    %0 = vector.load %arg0[%c0, %c0_0] : memref<16x128xf32, #tpu.memory_space<vmem>>, vector<16x128xf32>
    %1 = arith.truncf %0 : vector<16x128xf32> to vector<16x128xbf16>
    %c0_1 = arith.constant 0 : index
    %c0_2 = arith.constant 0 : index
    %2 = vector.load %arg4[%c0_1, %c0_2] : memref<128x128xbf16, #tpu.memory_space<vmem>>, vector<128x128xbf16>
    %cst = arith.constant dense<0.000000e+00> : vector<16x128xf32>
    %3 = tpu.matmul %1, %2, %cst {dimension_numbers = #tpu.dot_dimension_numbers<[1], [0], [0], [1], [0, 0, 1, 1], [], []>} : vector<16x128xbf16>, vector<128x128xbf16>, vector<16x128xf32> -> vector<16x128xf32>
    %c0_3 = arith.constant 0 : index
    %c0_4 = arith.constant 0 : index
    %4 = vector.load %arg5[%c0_3, %c0_4] : memref<1x128xf32, #tpu.memory_space<vmem>>, vector<1x128xf32>
    %5 = vector.broadcast %4 : vector<1x128xf32> to vector<16x128xf32>
    %6 = arith.addf %3, %5 : vector<16x128xf32>
    %c0_5 = arith.constant 0 : index
    %c0_6 = arith.constant 0 : index
    %7 = vector.load %arg1[%c0_5, %c0_6] : memref<16x1xf32, #tpu.memory_space<vmem>>, vector<16x1xf32>
    %c0_7 = arith.constant 0 : index
    %c0_8 = arith.constant 0 : index
    %8 = vector.load %arg6[%c0_7, %c0_8] : memref<1x128xf32, #tpu.memory_space<vmem>>, vector<1x128xf32>
    %9 = vector.broadcast %7 : vector<16x1xf32> to vector<16x128xf32>
    %10 = vector.broadcast %8 : vector<1x128xf32> to vector<16x128xf32>
    %11 = arith.mulf %9, %10 : vector<16x128xf32>
    %c0_9 = arith.constant 0 : index
    %c0_10 = arith.constant 0 : index
    %12 = vector.load %arg7[%c0_9, %c0_10] : memref<1x128xf32, #tpu.memory_space<vmem>>, vector<1x128xf32>
    %13 = vector.broadcast %12 : vector<1x128xf32> to vector<16x128xf32>
    %14 = arith.addf %11, %13 : vector<16x128xf32>
    %c0_11 = arith.constant 0 : index
    %c0_12 = arith.constant 0 : index
    %15 = vector.load %arg2[%c0_11, %c0_12] : memref<16x1xf32, #tpu.memory_space<vmem>>, vector<16x1xf32>
    %16 = vector.broadcast %15 : vector<16x1xf32> to vector<16x128xf32>
    %17 = arith.mulf %16, %14 : vector<16x128xf32>
    %18 = arith.addf %6, %17 : vector<16x128xf32>
    %c0_13 = arith.constant 0 : index
    %c0_14 = arith.constant 0 : index
    %19 = vector.load %arg3[%c0_13, %c0_14] : memref<1x16xf32, #tpu.memory_space<vmem>>, vector<1x16xf32>
    %20 = arith.truncf %18 : vector<16x128xf32> to vector<16x128xbf16>
    %c0_15 = arith.constant 0 : index
    %c0_16 = arith.constant 0 : index
    %c0_17 = arith.constant 0 : index
    %21 = vector.load %arg8[%c0_15, %c0_16, %c0_17] : memref<2x128x384xbf16, #tpu.memory_space<vmem>>, vector<1x128x384xbf16>
    %22 = vector.shape_cast %21 : vector<1x128x384xbf16> to vector<128x384xbf16>
    %cst_18 = arith.constant dense<0.000000e+00> : vector<16x384xf32>
    %23 = tpu.matmul %20, %22, %cst_18 {dimension_numbers = #tpu.dot_dimension_numbers<[1], [0], [0], [1], [0, 0, 1, 1], [], []>} : vector<16x128xbf16>, vector<128x384xbf16>, vector<16x384xf32> -> vector<16x384xf32>
    %c0_19 = arith.constant 0 : index
    %c0_20 = arith.constant 0 : index
    %c0_21 = arith.constant 0 : index
    %24 = vector.load %arg9[%c0_19, %c0_20, %c0_21] : memref<2x1x384xf32, #tpu.memory_space<vmem>>, vector<1x1x384xf32>
    %25 = vector.shape_cast %24 : vector<1x1x384xf32> to vector<1x384xf32>
    %26 = vector.broadcast %25 : vector<1x384xf32> to vector<16x384xf32>
    %27 = arith.addf %23, %26 : vector<16x384xf32>
    %28 = vector.extract_strided_slice %27 {offsets = [0, 0], sizes = [16, 32], strides = [1, 1]} : vector<16x384xf32> to vector<16x32xf32>
    %29 = arith.truncf %28 : vector<16x32xf32> to vector<16x32xbf16>
    %30 = vector.extract_strided_slice %27 {offsets = [0, 128], sizes = [16, 32], strides = [1, 1]} : vector<16x384xf32> to vector<16x32xf32>
    %31 = arith.truncf %30 : vector<16x32xf32> to vector<16x32xbf16>
    %32 = vector.extract_strided_slice %27 {offsets = [0, 256], sizes = [16, 32], strides = [1, 1]} : vector<16x384xf32> to vector<16x32xf32>
    %33 = arith.truncf %32 : vector<16x32xf32> to vector<16x32xbf16>
    %cst_22 = arith.constant dense<0.000000e+00> : vector<16x16xf32>
    %34 = tpu.matmul %29, %31, %cst_22 {dimension_numbers = #tpu.dot_dimension_numbers<[1], [1], [0], [0], [0, 0, 1, 0], [], []>} : vector<16x32xbf16>, vector<16x32xbf16>, vector<16x16xf32> -> vector<16x16xf32>
    %35 = vector.broadcast %19 : vector<1x16xf32> to vector<16x16xf32>
    %36 = arith.addf %34, %35 : vector<16x16xf32>
    %cst_23 = arith.constant dense<0xFF800000> : vector<16xf32>
    %37 = vector.multi_reduction <maximumf>, %36, %cst_23 [1] : vector<16x16xf32> to vector<16xf32>
    %38 = vector.shape_cast %37 : vector<16xf32> to vector<16x1xf32>
    %39 = vector.broadcast %38 : vector<16x1xf32> to vector<16x16xf32>
    %40 = arith.subf %36, %39 : vector<16x16xf32>
    %41 = math.exp %40 : vector<16x16xf32>
    %cst_24 = arith.constant dense<0.000000e+00> : vector<16xf32>
    %42 = vector.multi_reduction <add>, %41, %cst_24 [1] : vector<16x16xf32> to vector<16xf32>
    %43 = vector.shape_cast %42 : vector<16xf32> to vector<16x1xf32>
    %44 = vector.broadcast %43 : vector<16x1xf32> to vector<16x16xf32>
    %45 = arith.divf %41, %44 : vector<16x16xf32>
    %46 = arith.truncf %45 : vector<16x16xf32> to vector<16x16xbf16>
    %cst_25 = arith.constant dense<0.000000e+00> : vector<16x32xf32>
    %47 = tpu.matmul %46, %33, %cst_25 {dimension_numbers = #tpu.dot_dimension_numbers<[1], [0], [0], [1], [0, 0, 1, 1], [], []>} : vector<16x16xbf16>, vector<16x32xbf16>, vector<16x32xf32> -> vector<16x32xf32>
    %48 = vector.extract_strided_slice %27 {offsets = [0, 32], sizes = [16, 32], strides = [1, 1]} : vector<16x384xf32> to vector<16x32xf32>
    %49 = arith.truncf %48 : vector<16x32xf32> to vector<16x32xbf16>
    %50 = vector.extract_strided_slice %27 {offsets = [0, 160], sizes = [16, 32], strides = [1, 1]} : vector<16x384xf32> to vector<16x32xf32>
    %51 = arith.truncf %50 : vector<16x32xf32> to vector<16x32xbf16>
    %52 = vector.extract_strided_slice %27 {offsets = [0, 288], sizes = [16, 32], strides = [1, 1]} : vector<16x384xf32> to vector<16x32xf32>
    %53 = arith.truncf %52 : vector<16x32xf32> to vector<16x32xbf16>
    %cst_26 = arith.constant dense<0.000000e+00> : vector<16x16xf32>
    %54 = tpu.matmul %49, %51, %cst_26 {dimension_numbers = #tpu.dot_dimension_numbers<[1], [1], [0], [0], [0, 0, 1, 0], [], []>} : vector<16x32xbf16>, vector<16x32xbf16>, vector<16x16xf32> -> vector<16x16xf32>
    %55 = vector.broadcast %19 : vector<1x16xf32> to vector<16x16xf32>
    %56 = arith.addf %54, %55 : vector<16x16xf32>
    %cst_27 = arith.constant dense<0xFF800000> : vector<16xf32>
    %57 = vector.multi_reduction <maximumf>, %56, %cst_27 [1] : vector<16x16xf32> to vector<16xf32>
    %58 = vector.shape_cast %57 : vector<16xf32> to vector<16x1xf32>
    %59 = vector.broadcast %58 : vector<16x1xf32> to vector<16x16xf32>
    %60 = arith.subf %56, %59 : vector<16x16xf32>
    %61 = math.exp %60 : vector<16x16xf32>
    %cst_28 = arith.constant dense<0.000000e+00> : vector<16xf32>
    %62 = vector.multi_reduction <add>, %61, %cst_28 [1] : vector<16x16xf32> to vector<16xf32>
    %63 = vector.shape_cast %62 : vector<16xf32> to vector<16x1xf32>
    %64 = vector.broadcast %63 : vector<16x1xf32> to vector<16x16xf32>
    %65 = arith.divf %61, %64 : vector<16x16xf32>
    %66 = arith.truncf %65 : vector<16x16xf32> to vector<16x16xbf16>
    %cst_29 = arith.constant dense<0.000000e+00> : vector<16x32xf32>
    %67 = tpu.matmul %66, %53, %cst_29 {dimension_numbers = #tpu.dot_dimension_numbers<[1], [0], [0], [1], [0, 0, 1, 1], [], []>} : vector<16x16xbf16>, vector<16x32xbf16>, vector<16x32xf32> -> vector<16x32xf32>
    %68 = vector.extract_strided_slice %27 {offsets = [0, 64], sizes = [16, 32], strides = [1, 1]} : vector<16x384xf32> to vector<16x32xf32>
    %69 = arith.truncf %68 : vector<16x32xf32> to vector<16x32xbf16>
    %70 = vector.extract_strided_slice %27 {offsets = [0, 192], sizes = [16, 32], strides = [1, 1]} : vector<16x384xf32> to vector<16x32xf32>
    %71 = arith.truncf %70 : vector<16x32xf32> to vector<16x32xbf16>
    %72 = vector.extract_strided_slice %27 {offsets = [0, 320], sizes = [16, 32], strides = [1, 1]} : vector<16x384xf32> to vector<16x32xf32>
    %73 = arith.truncf %72 : vector<16x32xf32> to vector<16x32xbf16>
    %cst_30 = arith.constant dense<0.000000e+00> : vector<16x16xf32>
    %74 = tpu.matmul %69, %71, %cst_30 {dimension_numbers = #tpu.dot_dimension_numbers<[1], [1], [0], [0], [0, 0, 1, 0], [], []>} : vector<16x32xbf16>, vector<16x32xbf16>, vector<16x16xf32> -> vector<16x16xf32>
    %75 = vector.broadcast %19 : vector<1x16xf32> to vector<16x16xf32>
    %76 = arith.addf %74, %75 : vector<16x16xf32>
    %cst_31 = arith.constant dense<0xFF800000> : vector<16xf32>
    %77 = vector.multi_reduction <maximumf>, %76, %cst_31 [1] : vector<16x16xf32> to vector<16xf32>
    %78 = vector.shape_cast %77 : vector<16xf32> to vector<16x1xf32>
    %79 = vector.broadcast %78 : vector<16x1xf32> to vector<16x16xf32>
    %80 = arith.subf %76, %79 : vector<16x16xf32>
    %81 = math.exp %80 : vector<16x16xf32>
    %cst_32 = arith.constant dense<0.000000e+00> : vector<16xf32>
    %82 = vector.multi_reduction <add>, %81, %cst_32 [1] : vector<16x16xf32> to vector<16xf32>
    %83 = vector.shape_cast %82 : vector<16xf32> to vector<16x1xf32>
    %84 = vector.broadcast %83 : vector<16x1xf32> to vector<16x16xf32>
    %85 = arith.divf %81, %84 : vector<16x16xf32>
    %86 = arith.truncf %85 : vector<16x16xf32> to vector<16x16xbf16>
    %cst_33 = arith.constant dense<0.000000e+00> : vector<16x32xf32>
    %87 = tpu.matmul %86, %73, %cst_33 {dimension_numbers = #tpu.dot_dimension_numbers<[1], [0], [0], [1], [0, 0, 1, 1], [], []>} : vector<16x16xbf16>, vector<16x32xbf16>, vector<16x32xf32> -> vector<16x32xf32>
    %88 = vector.extract_strided_slice %27 {offsets = [0, 96], sizes = [16, 32], strides = [1, 1]} : vector<16x384xf32> to vector<16x32xf32>
    %89 = arith.truncf %88 : vector<16x32xf32> to vector<16x32xbf16>
    %90 = vector.extract_strided_slice %27 {offsets = [0, 224], sizes = [16, 32], strides = [1, 1]} : vector<16x384xf32> to vector<16x32xf32>
    %91 = arith.truncf %90 : vector<16x32xf32> to vector<16x32xbf16>
    %92 = vector.extract_strided_slice %27 {offsets = [0, 352], sizes = [16, 32], strides = [1, 1]} : vector<16x384xf32> to vector<16x32xf32>
    %93 = arith.truncf %92 : vector<16x32xf32> to vector<16x32xbf16>
    %cst_34 = arith.constant dense<0.000000e+00> : vector<16x16xf32>
    %94 = tpu.matmul %89, %91, %cst_34 {dimension_numbers = #tpu.dot_dimension_numbers<[1], [1], [0], [0], [0, 0, 1, 0], [], []>} : vector<16x32xbf16>, vector<16x32xbf16>, vector<16x16xf32> -> vector<16x16xf32>
    %95 = vector.broadcast %19 : vector<1x16xf32> to vector<16x16xf32>
    %96 = arith.addf %94, %95 : vector<16x16xf32>
    %cst_35 = arith.constant dense<0xFF800000> : vector<16xf32>
    %97 = vector.multi_reduction <maximumf>, %96, %cst_35 [1] : vector<16x16xf32> to vector<16xf32>
    %98 = vector.shape_cast %97 : vector<16xf32> to vector<16x1xf32>
    %99 = vector.broadcast %98 : vector<16x1xf32> to vector<16x16xf32>
    %100 = arith.subf %96, %99 : vector<16x16xf32>
    %101 = math.exp %100 : vector<16x16xf32>
    %cst_36 = arith.constant dense<0.000000e+00> : vector<16xf32>
    %102 = vector.multi_reduction <add>, %101, %cst_36 [1] : vector<16x16xf32> to vector<16xf32>
    %103 = vector.shape_cast %102 : vector<16xf32> to vector<16x1xf32>
    %104 = vector.broadcast %103 : vector<16x1xf32> to vector<16x16xf32>
    %105 = arith.divf %101, %104 : vector<16x16xf32>
    %106 = arith.truncf %105 : vector<16x16xf32> to vector<16x16xbf16>
    %cst_37 = arith.constant dense<0.000000e+00> : vector<16x32xf32>
    %107 = tpu.matmul %106, %93, %cst_37 {dimension_numbers = #tpu.dot_dimension_numbers<[1], [0], [0], [1], [0, 0, 1, 1], [], []>} : vector<16x16xbf16>, vector<16x32xbf16>, vector<16x32xf32> -> vector<16x32xf32>
    %108 = tpu.concatenate %47, %67, %87, %107 in 1 : vector<16x32xf32>, vector<16x32xf32>, vector<16x32xf32>, vector<16x32xf32> -> vector<16x128xf32>
    %109 = arith.truncf %108 : vector<16x128xf32> to vector<16x128xbf16>
    %c0_38 = arith.constant 0 : index
    %c0_39 = arith.constant 0 : index
    %c0_40 = arith.constant 0 : index
    %110 = vector.load %arg10[%c0_38, %c0_39, %c0_40] : memref<2x128x128xbf16, #tpu.memory_space<vmem>>, vector<1x128x128xbf16>
    %111 = vector.shape_cast %110 : vector<1x128x128xbf16> to vector<128x128xbf16>
    %cst_41 = arith.constant dense<0.000000e+00> : vector<16x128xf32>
    %112 = tpu.matmul %109, %111, %cst_41 {dimension_numbers = #tpu.dot_dimension_numbers<[1], [0], [0], [1], [0, 0, 1, 1], [], []>} : vector<16x128xbf16>, vector<128x128xbf16>, vector<16x128xf32> -> vector<16x128xf32>
    %c0_42 = arith.constant 0 : index
    %c0_43 = arith.constant 0 : index
    %c0_44 = arith.constant 0 : index
    %113 = vector.load %arg11[%c0_42, %c0_43, %c0_44] : memref<2x1x128xf32, #tpu.memory_space<vmem>>, vector<1x1x128xf32>
    %114 = vector.shape_cast %113 : vector<1x1x128xf32> to vector<1x128xf32>
    %115 = vector.broadcast %114 : vector<1x128xf32> to vector<16x128xf32>
    %116 = arith.addf %112, %115 : vector<16x128xf32>
    %117 = arith.addf %18, %116 : vector<16x128xf32>
    %c0_45 = arith.constant 0 : index
    %c0_46 = arith.constant 0 : index
    %c0_47 = arith.constant 0 : index
    %118 = vector.load %arg12[%c0_45, %c0_46, %c0_47] : memref<2x1x128xf32, #tpu.memory_space<vmem>>, vector<1x1x128xf32>
    %119 = vector.shape_cast %118 : vector<1x1x128xf32> to vector<1x128xf32>
    %c0_48 = arith.constant 0 : index
    %c0_49 = arith.constant 0 : index
    %c0_50 = arith.constant 0 : index
    %120 = vector.load %arg13[%c0_48, %c0_49, %c0_50] : memref<2x1x128xf32, #tpu.memory_space<vmem>>, vector<1x1x128xf32>
    %121 = vector.shape_cast %120 : vector<1x1x128xf32> to vector<1x128xf32>
    %cst_51 = arith.constant dense<0.000000e+00> : vector<16xf32>
    %122 = vector.multi_reduction <add>, %117, %cst_51 [1] : vector<16x128xf32> to vector<16xf32>
    %123 = vector.shape_cast %122 : vector<16xf32> to vector<16x1xf32>
    %cst_52 = arith.constant 1.280000e+02 : f32
    %124 = vector.broadcast %cst_52 : f32 to vector<16x1xf32>
    %125 = arith.divf %123, %124 : vector<16x1xf32>
    %126 = vector.broadcast %125 : vector<16x1xf32> to vector<16x128xf32>
    %127 = arith.subf %117, %126 : vector<16x128xf32>
    %128 = arith.mulf %127, %127 : vector<16x128xf32>
    %cst_53 = arith.constant dense<0.000000e+00> : vector<16xf32>
    %129 = vector.multi_reduction <add>, %128, %cst_53 [1] : vector<16x128xf32> to vector<16xf32>
    %130 = vector.shape_cast %129 : vector<16xf32> to vector<16x1xf32>
    %cst_54 = arith.constant 1.280000e+02 : f32
    %131 = vector.broadcast %cst_54 : f32 to vector<16x1xf32>
    %132 = arith.divf %130, %131 : vector<16x1xf32>
    %133 = vector.broadcast %125 : vector<16x1xf32> to vector<16x128xf32>
    %134 = arith.subf %117, %133 : vector<16x128xf32>
    %cst_55 = arith.constant 9.99999974E-6 : f32
    %135 = vector.broadcast %cst_55 : f32 to vector<16x1xf32>
    %136 = arith.addf %132, %135 : vector<16x1xf32>
    %137 = math.rsqrt %136 : vector<16x1xf32>
    %138 = vector.broadcast %137 : vector<16x1xf32> to vector<16x128xf32>
    %139 = arith.mulf %134, %138 : vector<16x128xf32>
    %140 = vector.broadcast %119 : vector<1x128xf32> to vector<16x128xf32>
    %141 = arith.mulf %139, %140 : vector<16x128xf32>
    %142 = vector.broadcast %121 : vector<1x128xf32> to vector<16x128xf32>
    %143 = arith.addf %141, %142 : vector<16x128xf32>
    %144 = arith.truncf %143 : vector<16x128xf32> to vector<16x128xbf16>
    %c0_56 = arith.constant 0 : index
    %c0_57 = arith.constant 0 : index
    %c0_58 = arith.constant 0 : index
    %145 = vector.load %arg14[%c0_56, %c0_57, %c0_58] : memref<2x128x256xbf16, #tpu.memory_space<vmem>>, vector<1x128x256xbf16>
    %146 = vector.shape_cast %145 : vector<1x128x256xbf16> to vector<128x256xbf16>
    %cst_59 = arith.constant dense<0.000000e+00> : vector<16x256xf32>
    %147 = tpu.matmul %144, %146, %cst_59 {dimension_numbers = #tpu.dot_dimension_numbers<[1], [0], [0], [1], [0, 0, 1, 1], [], []>} : vector<16x128xbf16>, vector<128x256xbf16>, vector<16x256xf32> -> vector<16x256xf32>
    %c0_60 = arith.constant 0 : index
    %c0_61 = arith.constant 0 : index
    %c0_62 = arith.constant 0 : index
    %148 = vector.load %arg15[%c0_60, %c0_61, %c0_62] : memref<2x1x256xf32, #tpu.memory_space<vmem>>, vector<1x1x256xf32>
    %149 = vector.shape_cast %148 : vector<1x1x256xf32> to vector<1x256xf32>
    %150 = vector.broadcast %149 : vector<1x256xf32> to vector<16x256xf32>
    %151 = arith.addf %147, %150 : vector<16x256xf32>
    %152 = arith.mulf %151, %151 : vector<16x256xf32>
    %153 = arith.mulf %151, %152 : vector<16x256xf32>
    %cst_63 = arith.constant 4.471500e-02 : f32
    %154 = vector.broadcast %cst_63 : f32 to vector<16x256xf32>
    %155 = arith.mulf %154, %153 : vector<16x256xf32>
    %156 = arith.addf %151, %155 : vector<16x256xf32>
    %cst_64 = arith.constant 0.797884583 : f32
    %157 = vector.broadcast %cst_64 : f32 to vector<16x256xf32>
    %158 = arith.mulf %157, %156 : vector<16x256xf32>
    %159 = math.tanh %158 : vector<16x256xf32>
    %cst_65 = arith.constant 1.000000e+00 : f32
    %160 = vector.broadcast %cst_65 : f32 to vector<16x256xf32>
    %161 = arith.addf %160, %159 : vector<16x256xf32>
    %cst_66 = arith.constant 5.000000e-01 : f32
    %162 = vector.broadcast %cst_66 : f32 to vector<16x256xf32>
    %163 = arith.mulf %162, %161 : vector<16x256xf32>
    %164 = arith.mulf %151, %163 : vector<16x256xf32>
    %165 = arith.truncf %164 : vector<16x256xf32> to vector<16x256xbf16>
    %c0_67 = arith.constant 0 : index
    %c0_68 = arith.constant 0 : index
    %c0_69 = arith.constant 0 : index
    %166 = vector.load %arg16[%c0_67, %c0_68, %c0_69] : memref<2x256x128xbf16, #tpu.memory_space<vmem>>, vector<1x256x128xbf16>
    %167 = vector.shape_cast %166 : vector<1x256x128xbf16> to vector<256x128xbf16>
    %cst_70 = arith.constant dense<0.000000e+00> : vector<16x128xf32>
    %168 = tpu.matmul %165, %167, %cst_70 {dimension_numbers = #tpu.dot_dimension_numbers<[1], [0], [0], [1], [0, 0, 1, 1], [], []>} : vector<16x256xbf16>, vector<256x128xbf16>, vector<16x128xf32> -> vector<16x128xf32>
    %c0_71 = arith.constant 0 : index
    %c0_72 = arith.constant 0 : index
    %c0_73 = arith.constant 0 : index
    %169 = vector.load %arg17[%c0_71, %c0_72, %c0_73] : memref<2x1x128xf32, #tpu.memory_space<vmem>>, vector<1x1x128xf32>
    %170 = vector.shape_cast %169 : vector<1x1x128xf32> to vector<1x128xf32>
    %171 = vector.broadcast %170 : vector<1x128xf32> to vector<16x128xf32>
    %172 = arith.addf %168, %171 : vector<16x128xf32>
    %173 = arith.addf %143, %172 : vector<16x128xf32>
    %c0_74 = arith.constant 0 : index
    %c0_75 = arith.constant 0 : index
    %c0_76 = arith.constant 0 : index
    %174 = vector.load %arg18[%c0_74, %c0_75, %c0_76] : memref<2x1x128xf32, #tpu.memory_space<vmem>>, vector<1x1x128xf32>
    %175 = vector.shape_cast %174 : vector<1x1x128xf32> to vector<1x128xf32>
    %c0_77 = arith.constant 0 : index
    %c0_78 = arith.constant 0 : index
    %c0_79 = arith.constant 0 : index
    %176 = vector.load %arg19[%c0_77, %c0_78, %c0_79] : memref<2x1x128xf32, #tpu.memory_space<vmem>>, vector<1x1x128xf32>
    %177 = vector.shape_cast %176 : vector<1x1x128xf32> to vector<1x128xf32>
    %cst_80 = arith.constant dense<0.000000e+00> : vector<16xf32>
    %178 = vector.multi_reduction <add>, %173, %cst_80 [1] : vector<16x128xf32> to vector<16xf32>
    %179 = vector.shape_cast %178 : vector<16xf32> to vector<16x1xf32>
    %cst_81 = arith.constant 1.280000e+02 : f32
    %180 = vector.broadcast %cst_81 : f32 to vector<16x1xf32>
    %181 = arith.divf %179, %180 : vector<16x1xf32>
    %182 = vector.broadcast %181 : vector<16x1xf32> to vector<16x128xf32>
    %183 = arith.subf %173, %182 : vector<16x128xf32>
    %184 = arith.mulf %183, %183 : vector<16x128xf32>
    %cst_82 = arith.constant dense<0.000000e+00> : vector<16xf32>
    %185 = vector.multi_reduction <add>, %184, %cst_82 [1] : vector<16x128xf32> to vector<16xf32>
    %186 = vector.shape_cast %185 : vector<16xf32> to vector<16x1xf32>
    %cst_83 = arith.constant 1.280000e+02 : f32
    %187 = vector.broadcast %cst_83 : f32 to vector<16x1xf32>
    %188 = arith.divf %186, %187 : vector<16x1xf32>
    %189 = vector.broadcast %181 : vector<16x1xf32> to vector<16x128xf32>
    %190 = arith.subf %173, %189 : vector<16x128xf32>
    %cst_84 = arith.constant 9.99999974E-6 : f32
    %191 = vector.broadcast %cst_84 : f32 to vector<16x1xf32>
    %192 = arith.addf %188, %191 : vector<16x1xf32>
    %193 = math.rsqrt %192 : vector<16x1xf32>
    %194 = vector.broadcast %193 : vector<16x1xf32> to vector<16x128xf32>
    %195 = arith.mulf %190, %194 : vector<16x128xf32>
    %196 = vector.broadcast %175 : vector<1x128xf32> to vector<16x128xf32>
    %197 = arith.mulf %195, %196 : vector<16x128xf32>
    %198 = vector.broadcast %177 : vector<1x128xf32> to vector<16x128xf32>
    %199 = arith.addf %197, %198 : vector<16x128xf32>
    %200 = arith.truncf %199 : vector<16x128xf32> to vector<16x128xbf16>
    %c1 = arith.constant 1 : index
    %c0_85 = arith.constant 0 : index
    %c0_86 = arith.constant 0 : index
    %201 = vector.load %arg8[%c1, %c0_85, %c0_86] : memref<2x128x384xbf16, #tpu.memory_space<vmem>>, vector<1x128x384xbf16>
    %202 = vector.shape_cast %201 : vector<1x128x384xbf16> to vector<128x384xbf16>
    %cst_87 = arith.constant dense<0.000000e+00> : vector<16x384xf32>
    %203 = tpu.matmul %200, %202, %cst_87 {dimension_numbers = #tpu.dot_dimension_numbers<[1], [0], [0], [1], [0, 0, 1, 1], [], []>} : vector<16x128xbf16>, vector<128x384xbf16>, vector<16x384xf32> -> vector<16x384xf32>
    %c1_88 = arith.constant 1 : index
    %c0_89 = arith.constant 0 : index
    %c0_90 = arith.constant 0 : index
    %204 = vector.load %arg9[%c1_88, %c0_89, %c0_90] : memref<2x1x384xf32, #tpu.memory_space<vmem>>, vector<1x1x384xf32>
    %205 = vector.shape_cast %204 : vector<1x1x384xf32> to vector<1x384xf32>
    %206 = vector.broadcast %205 : vector<1x384xf32> to vector<16x384xf32>
    %207 = arith.addf %203, %206 : vector<16x384xf32>
    %208 = vector.extract_strided_slice %207 {offsets = [0, 0], sizes = [16, 32], strides = [1, 1]} : vector<16x384xf32> to vector<16x32xf32>
    %209 = arith.truncf %208 : vector<16x32xf32> to vector<16x32xbf16>
    %210 = vector.extract_strided_slice %207 {offsets = [0, 128], sizes = [16, 32], strides = [1, 1]} : vector<16x384xf32> to vector<16x32xf32>
    %211 = arith.truncf %210 : vector<16x32xf32> to vector<16x32xbf16>
    %212 = vector.extract_strided_slice %207 {offsets = [0, 256], sizes = [16, 32], strides = [1, 1]} : vector<16x384xf32> to vector<16x32xf32>
    %213 = arith.truncf %212 : vector<16x32xf32> to vector<16x32xbf16>
    %cst_91 = arith.constant dense<0.000000e+00> : vector<16x16xf32>
    %214 = tpu.matmul %209, %211, %cst_91 {dimension_numbers = #tpu.dot_dimension_numbers<[1], [1], [0], [0], [0, 0, 1, 0], [], []>} : vector<16x32xbf16>, vector<16x32xbf16>, vector<16x16xf32> -> vector<16x16xf32>
    %215 = vector.broadcast %19 : vector<1x16xf32> to vector<16x16xf32>
    %216 = arith.addf %214, %215 : vector<16x16xf32>
    %cst_92 = arith.constant dense<0xFF800000> : vector<16xf32>
    %217 = vector.multi_reduction <maximumf>, %216, %cst_92 [1] : vector<16x16xf32> to vector<16xf32>
    %218 = vector.shape_cast %217 : vector<16xf32> to vector<16x1xf32>
    %219 = vector.broadcast %218 : vector<16x1xf32> to vector<16x16xf32>
    %220 = arith.subf %216, %219 : vector<16x16xf32>
    %221 = math.exp %220 : vector<16x16xf32>
    %cst_93 = arith.constant dense<0.000000e+00> : vector<16xf32>
    %222 = vector.multi_reduction <add>, %221, %cst_93 [1] : vector<16x16xf32> to vector<16xf32>
    %223 = vector.shape_cast %222 : vector<16xf32> to vector<16x1xf32>
    %224 = vector.broadcast %223 : vector<16x1xf32> to vector<16x16xf32>
    %225 = arith.divf %221, %224 : vector<16x16xf32>
    %226 = arith.truncf %225 : vector<16x16xf32> to vector<16x16xbf16>
    %cst_94 = arith.constant dense<0.000000e+00> : vector<16x32xf32>
    %227 = tpu.matmul %226, %213, %cst_94 {dimension_numbers = #tpu.dot_dimension_numbers<[1], [0], [0], [1], [0, 0, 1, 1], [], []>} : vector<16x16xbf16>, vector<16x32xbf16>, vector<16x32xf32> -> vector<16x32xf32>
    %228 = vector.extract_strided_slice %207 {offsets = [0, 32], sizes = [16, 32], strides = [1, 1]} : vector<16x384xf32> to vector<16x32xf32>
    %229 = arith.truncf %228 : vector<16x32xf32> to vector<16x32xbf16>
    %230 = vector.extract_strided_slice %207 {offsets = [0, 160], sizes = [16, 32], strides = [1, 1]} : vector<16x384xf32> to vector<16x32xf32>
    %231 = arith.truncf %230 : vector<16x32xf32> to vector<16x32xbf16>
    %232 = vector.extract_strided_slice %207 {offsets = [0, 288], sizes = [16, 32], strides = [1, 1]} : vector<16x384xf32> to vector<16x32xf32>
    %233 = arith.truncf %232 : vector<16x32xf32> to vector<16x32xbf16>
    %cst_95 = arith.constant dense<0.000000e+00> : vector<16x16xf32>
    %234 = tpu.matmul %229, %231, %cst_95 {dimension_numbers = #tpu.dot_dimension_numbers<[1], [1], [0], [0], [0, 0, 1, 0], [], []>} : vector<16x32xbf16>, vector<16x32xbf16>, vector<16x16xf32> -> vector<16x16xf32>
    %235 = vector.broadcast %19 : vector<1x16xf32> to vector<16x16xf32>
    %236 = arith.addf %234, %235 : vector<16x16xf32>
    %cst_96 = arith.constant dense<0xFF800000> : vector<16xf32>
    %237 = vector.multi_reduction <maximumf>, %236, %cst_96 [1] : vector<16x16xf32> to vector<16xf32>
    %238 = vector.shape_cast %237 : vector<16xf32> to vector<16x1xf32>
    %239 = vector.broadcast %238 : vector<16x1xf32> to vector<16x16xf32>
    %240 = arith.subf %236, %239 : vector<16x16xf32>
    %241 = math.exp %240 : vector<16x16xf32>
    %cst_97 = arith.constant dense<0.000000e+00> : vector<16xf32>
    %242 = vector.multi_reduction <add>, %241, %cst_97 [1] : vector<16x16xf32> to vector<16xf32>
    %243 = vector.shape_cast %242 : vector<16xf32> to vector<16x1xf32>
    %244 = vector.broadcast %243 : vector<16x1xf32> to vector<16x16xf32>
    %245 = arith.divf %241, %244 : vector<16x16xf32>
    %246 = arith.truncf %245 : vector<16x16xf32> to vector<16x16xbf16>
    %cst_98 = arith.constant dense<0.000000e+00> : vector<16x32xf32>
    %247 = tpu.matmul %246, %233, %cst_98 {dimension_numbers = #tpu.dot_dimension_numbers<[1], [0], [0], [1], [0, 0, 1, 1], [], []>} : vector<16x16xbf16>, vector<16x32xbf16>, vector<16x32xf32> -> vector<16x32xf32>
    %248 = vector.extract_strided_slice %207 {offsets = [0, 64], sizes = [16, 32], strides = [1, 1]} : vector<16x384xf32> to vector<16x32xf32>
    %249 = arith.truncf %248 : vector<16x32xf32> to vector<16x32xbf16>
    %250 = vector.extract_strided_slice %207 {offsets = [0, 192], sizes = [16, 32], strides = [1, 1]} : vector<16x384xf32> to vector<16x32xf32>
    %251 = arith.truncf %250 : vector<16x32xf32> to vector<16x32xbf16>
    %252 = vector.extract_strided_slice %207 {offsets = [0, 320], sizes = [16, 32], strides = [1, 1]} : vector<16x384xf32> to vector<16x32xf32>
    %253 = arith.truncf %252 : vector<16x32xf32> to vector<16x32xbf16>
    %cst_99 = arith.constant dense<0.000000e+00> : vector<16x16xf32>
    %254 = tpu.matmul %249, %251, %cst_99 {dimension_numbers = #tpu.dot_dimension_numbers<[1], [1], [0], [0], [0, 0, 1, 0], [], []>} : vector<16x32xbf16>, vector<16x32xbf16>, vector<16x16xf32> -> vector<16x16xf32>
    %255 = vector.broadcast %19 : vector<1x16xf32> to vector<16x16xf32>
    %256 = arith.addf %254, %255 : vector<16x16xf32>
    %cst_100 = arith.constant dense<0xFF800000> : vector<16xf32>
    %257 = vector.multi_reduction <maximumf>, %256, %cst_100 [1] : vector<16x16xf32> to vector<16xf32>
    %258 = vector.shape_cast %257 : vector<16xf32> to vector<16x1xf32>
    %259 = vector.broadcast %258 : vector<16x1xf32> to vector<16x16xf32>
    %260 = arith.subf %256, %259 : vector<16x16xf32>
    %261 = math.exp %260 : vector<16x16xf32>
    %cst_101 = arith.constant dense<0.000000e+00> : vector<16xf32>
    %262 = vector.multi_reduction <add>, %261, %cst_101 [1] : vector<16x16xf32> to vector<16xf32>
    %263 = vector.shape_cast %262 : vector<16xf32> to vector<16x1xf32>
    %264 = vector.broadcast %263 : vector<16x1xf32> to vector<16x16xf32>
    %265 = arith.divf %261, %264 : vector<16x16xf32>
    %266 = arith.truncf %265 : vector<16x16xf32> to vector<16x16xbf16>
    %cst_102 = arith.constant dense<0.000000e+00> : vector<16x32xf32>
    %267 = tpu.matmul %266, %253, %cst_102 {dimension_numbers = #tpu.dot_dimension_numbers<[1], [0], [0], [1], [0, 0, 1, 1], [], []>} : vector<16x16xbf16>, vector<16x32xbf16>, vector<16x32xf32> -> vector<16x32xf32>
    %268 = vector.extract_strided_slice %207 {offsets = [0, 96], sizes = [16, 32], strides = [1, 1]} : vector<16x384xf32> to vector<16x32xf32>
    %269 = arith.truncf %268 : vector<16x32xf32> to vector<16x32xbf16>
    %270 = vector.extract_strided_slice %207 {offsets = [0, 224], sizes = [16, 32], strides = [1, 1]} : vector<16x384xf32> to vector<16x32xf32>
    %271 = arith.truncf %270 : vector<16x32xf32> to vector<16x32xbf16>
    %272 = vector.extract_strided_slice %207 {offsets = [0, 352], sizes = [16, 32], strides = [1, 1]} : vector<16x384xf32> to vector<16x32xf32>
    %273 = arith.truncf %272 : vector<16x32xf32> to vector<16x32xbf16>
    %cst_103 = arith.constant dense<0.000000e+00> : vector<16x16xf32>
    %274 = tpu.matmul %269, %271, %cst_103 {dimension_numbers = #tpu.dot_dimension_numbers<[1], [1], [0], [0], [0, 0, 1, 0], [], []>} : vector<16x32xbf16>, vector<16x32xbf16>, vector<16x16xf32> -> vector<16x16xf32>
    %275 = vector.broadcast %19 : vector<1x16xf32> to vector<16x16xf32>
    %276 = arith.addf %274, %275 : vector<16x16xf32>
    %cst_104 = arith.constant dense<0xFF800000> : vector<16xf32>
    %277 = vector.multi_reduction <maximumf>, %276, %cst_104 [1] : vector<16x16xf32> to vector<16xf32>
    %278 = vector.shape_cast %277 : vector<16xf32> to vector<16x1xf32>
    %279 = vector.broadcast %278 : vector<16x1xf32> to vector<16x16xf32>
    %280 = arith.subf %276, %279 : vector<16x16xf32>
    %281 = math.exp %280 : vector<16x16xf32>
    %cst_105 = arith.constant dense<0.000000e+00> : vector<16xf32>
    %282 = vector.multi_reduction <add>, %281, %cst_105 [1] : vector<16x16xf32> to vector<16xf32>
    %283 = vector.shape_cast %282 : vector<16xf32> to vector<16x1xf32>
    %284 = vector.broadcast %283 : vector<16x1xf32> to vector<16x16xf32>
    %285 = arith.divf %281, %284 : vector<16x16xf32>
    %286 = arith.truncf %285 : vector<16x16xf32> to vector<16x16xbf16>
    %cst_106 = arith.constant dense<0.000000e+00> : vector<16x32xf32>
    %287 = tpu.matmul %286, %273, %cst_106 {dimension_numbers = #tpu.dot_dimension_numbers<[1], [0], [0], [1], [0, 0, 1, 1], [], []>} : vector<16x16xbf16>, vector<16x32xbf16>, vector<16x32xf32> -> vector<16x32xf32>
    %288 = tpu.concatenate %227, %247, %267, %287 in 1 : vector<16x32xf32>, vector<16x32xf32>, vector<16x32xf32>, vector<16x32xf32> -> vector<16x128xf32>
    %289 = arith.truncf %288 : vector<16x128xf32> to vector<16x128xbf16>
    %c1_107 = arith.constant 1 : index
    %c0_108 = arith.constant 0 : index
    %c0_109 = arith.constant 0 : index
    %290 = vector.load %arg10[%c1_107, %c0_108, %c0_109] : memref<2x128x128xbf16, #tpu.memory_space<vmem>>, vector<1x128x128xbf16>
    %291 = vector.shape_cast %290 : vector<1x128x128xbf16> to vector<128x128xbf16>
    %cst_110 = arith.constant dense<0.000000e+00> : vector<16x128xf32>
    %292 = tpu.matmul %289, %291, %cst_110 {dimension_numbers = #tpu.dot_dimension_numbers<[1], [0], [0], [1], [0, 0, 1, 1], [], []>} : vector<16x128xbf16>, vector<128x128xbf16>, vector<16x128xf32> -> vector<16x128xf32>
    %c1_111 = arith.constant 1 : index
    %c0_112 = arith.constant 0 : index
    %c0_113 = arith.constant 0 : index
    %293 = vector.load %arg11[%c1_111, %c0_112, %c0_113] : memref<2x1x128xf32, #tpu.memory_space<vmem>>, vector<1x1x128xf32>
    %294 = vector.shape_cast %293 : vector<1x1x128xf32> to vector<1x128xf32>
    %295 = vector.broadcast %294 : vector<1x128xf32> to vector<16x128xf32>
    %296 = arith.addf %292, %295 : vector<16x128xf32>
    %297 = arith.addf %199, %296 : vector<16x128xf32>
    %c1_114 = arith.constant 1 : index
    %c0_115 = arith.constant 0 : index
    %c0_116 = arith.constant 0 : index
    %298 = vector.load %arg12[%c1_114, %c0_115, %c0_116] : memref<2x1x128xf32, #tpu.memory_space<vmem>>, vector<1x1x128xf32>
    %299 = vector.shape_cast %298 : vector<1x1x128xf32> to vector<1x128xf32>
    %c1_117 = arith.constant 1 : index
    %c0_118 = arith.constant 0 : index
    %c0_119 = arith.constant 0 : index
    %300 = vector.load %arg13[%c1_117, %c0_118, %c0_119] : memref<2x1x128xf32, #tpu.memory_space<vmem>>, vector<1x1x128xf32>
    %301 = vector.shape_cast %300 : vector<1x1x128xf32> to vector<1x128xf32>
    %cst_120 = arith.constant dense<0.000000e+00> : vector<16xf32>
    %302 = vector.multi_reduction <add>, %297, %cst_120 [1] : vector<16x128xf32> to vector<16xf32>
    %303 = vector.shape_cast %302 : vector<16xf32> to vector<16x1xf32>
    %cst_121 = arith.constant 1.280000e+02 : f32
    %304 = vector.broadcast %cst_121 : f32 to vector<16x1xf32>
    %305 = arith.divf %303, %304 : vector<16x1xf32>
    %306 = vector.broadcast %305 : vector<16x1xf32> to vector<16x128xf32>
    %307 = arith.subf %297, %306 : vector<16x128xf32>
    %308 = arith.mulf %307, %307 : vector<16x128xf32>
    %cst_122 = arith.constant dense<0.000000e+00> : vector<16xf32>
    %309 = vector.multi_reduction <add>, %308, %cst_122 [1] : vector<16x128xf32> to vector<16xf32>
    %310 = vector.shape_cast %309 : vector<16xf32> to vector<16x1xf32>
    %cst_123 = arith.constant 1.280000e+02 : f32
    %311 = vector.broadcast %cst_123 : f32 to vector<16x1xf32>
    %312 = arith.divf %310, %311 : vector<16x1xf32>
    %313 = vector.broadcast %305 : vector<16x1xf32> to vector<16x128xf32>
    %314 = arith.subf %297, %313 : vector<16x128xf32>
    %cst_124 = arith.constant 9.99999974E-6 : f32
    %315 = vector.broadcast %cst_124 : f32 to vector<16x1xf32>
    %316 = arith.addf %312, %315 : vector<16x1xf32>
    %317 = math.rsqrt %316 : vector<16x1xf32>
    %318 = vector.broadcast %317 : vector<16x1xf32> to vector<16x128xf32>
    %319 = arith.mulf %314, %318 : vector<16x128xf32>
    %320 = vector.broadcast %299 : vector<1x128xf32> to vector<16x128xf32>
    %321 = arith.mulf %319, %320 : vector<16x128xf32>
    %322 = vector.broadcast %301 : vector<1x128xf32> to vector<16x128xf32>
    %323 = arith.addf %321, %322 : vector<16x128xf32>
    %324 = arith.truncf %323 : vector<16x128xf32> to vector<16x128xbf16>
    %c1_125 = arith.constant 1 : index
    %c0_126 = arith.constant 0 : index
    %c0_127 = arith.constant 0 : index
    %325 = vector.load %arg14[%c1_125, %c0_126, %c0_127] : memref<2x128x256xbf16, #tpu.memory_space<vmem>>, vector<1x128x256xbf16>
    %326 = vector.shape_cast %325 : vector<1x128x256xbf16> to vector<128x256xbf16>
    %cst_128 = arith.constant dense<0.000000e+00> : vector<16x256xf32>
    %327 = tpu.matmul %324, %326, %cst_128 {dimension_numbers = #tpu.dot_dimension_numbers<[1], [0], [0], [1], [0, 0, 1, 1], [], []>} : vector<16x128xbf16>, vector<128x256xbf16>, vector<16x256xf32> -> vector<16x256xf32>
    %c1_129 = arith.constant 1 : index
    %c0_130 = arith.constant 0 : index
    %c0_131 = arith.constant 0 : index
    %328 = vector.load %arg15[%c1_129, %c0_130, %c0_131] : memref<2x1x256xf32, #tpu.memory_space<vmem>>, vector<1x1x256xf32>
    %329 = vector.shape_cast %328 : vector<1x1x256xf32> to vector<1x256xf32>
    %330 = vector.broadcast %329 : vector<1x256xf32> to vector<16x256xf32>
    %331 = arith.addf %327, %330 : vector<16x256xf32>
    %332 = arith.mulf %331, %331 : vector<16x256xf32>
    %333 = arith.mulf %331, %332 : vector<16x256xf32>
    %cst_132 = arith.constant 4.471500e-02 : f32
    %334 = vector.broadcast %cst_132 : f32 to vector<16x256xf32>
    %335 = arith.mulf %334, %333 : vector<16x256xf32>
    %336 = arith.addf %331, %335 : vector<16x256xf32>
    %cst_133 = arith.constant 0.797884583 : f32
    %337 = vector.broadcast %cst_133 : f32 to vector<16x256xf32>
    %338 = arith.mulf %337, %336 : vector<16x256xf32>
    %339 = math.tanh %338 : vector<16x256xf32>
    %cst_134 = arith.constant 1.000000e+00 : f32
    %340 = vector.broadcast %cst_134 : f32 to vector<16x256xf32>
    %341 = arith.addf %340, %339 : vector<16x256xf32>
    %cst_135 = arith.constant 5.000000e-01 : f32
    %342 = vector.broadcast %cst_135 : f32 to vector<16x256xf32>
    %343 = arith.mulf %342, %341 : vector<16x256xf32>
    %344 = arith.mulf %331, %343 : vector<16x256xf32>
    %345 = arith.truncf %344 : vector<16x256xf32> to vector<16x256xbf16>
    %c1_136 = arith.constant 1 : index
    %c0_137 = arith.constant 0 : index
    %c0_138 = arith.constant 0 : index
    %346 = vector.load %arg16[%c1_136, %c0_137, %c0_138] : memref<2x256x128xbf16, #tpu.memory_space<vmem>>, vector<1x256x128xbf16>
    %347 = vector.shape_cast %346 : vector<1x256x128xbf16> to vector<256x128xbf16>
    %cst_139 = arith.constant dense<0.000000e+00> : vector<16x128xf32>
    %348 = tpu.matmul %345, %347, %cst_139 {dimension_numbers = #tpu.dot_dimension_numbers<[1], [0], [0], [1], [0, 0, 1, 1], [], []>} : vector<16x256xbf16>, vector<256x128xbf16>, vector<16x128xf32> -> vector<16x128xf32>
    %c1_140 = arith.constant 1 : index
    %c0_141 = arith.constant 0 : index
    %c0_142 = arith.constant 0 : index
    %349 = vector.load %arg17[%c1_140, %c0_141, %c0_142] : memref<2x1x128xf32, #tpu.memory_space<vmem>>, vector<1x1x128xf32>
    %350 = vector.shape_cast %349 : vector<1x1x128xf32> to vector<1x128xf32>
    %351 = vector.broadcast %350 : vector<1x128xf32> to vector<16x128xf32>
    %352 = arith.addf %348, %351 : vector<16x128xf32>
    %353 = arith.addf %323, %352 : vector<16x128xf32>
    %c1_143 = arith.constant 1 : index
    %c0_144 = arith.constant 0 : index
    %c0_145 = arith.constant 0 : index
    %354 = vector.load %arg18[%c1_143, %c0_144, %c0_145] : memref<2x1x128xf32, #tpu.memory_space<vmem>>, vector<1x1x128xf32>
    %355 = vector.shape_cast %354 : vector<1x1x128xf32> to vector<1x128xf32>
    %c1_146 = arith.constant 1 : index
    %c0_147 = arith.constant 0 : index
    %c0_148 = arith.constant 0 : index
    %356 = vector.load %arg19[%c1_146, %c0_147, %c0_148] : memref<2x1x128xf32, #tpu.memory_space<vmem>>, vector<1x1x128xf32>
    %357 = vector.shape_cast %356 : vector<1x1x128xf32> to vector<1x128xf32>
    %cst_149 = arith.constant dense<0.000000e+00> : vector<16xf32>
    %358 = vector.multi_reduction <add>, %353, %cst_149 [1] : vector<16x128xf32> to vector<16xf32>
    %359 = vector.shape_cast %358 : vector<16xf32> to vector<16x1xf32>
    %cst_150 = arith.constant 1.280000e+02 : f32
    %360 = vector.broadcast %cst_150 : f32 to vector<16x1xf32>
    %361 = arith.divf %359, %360 : vector<16x1xf32>
    %362 = vector.broadcast %361 : vector<16x1xf32> to vector<16x128xf32>
    %363 = arith.subf %353, %362 : vector<16x128xf32>
    %364 = arith.mulf %363, %363 : vector<16x128xf32>
    %cst_151 = arith.constant dense<0.000000e+00> : vector<16xf32>
    %365 = vector.multi_reduction <add>, %364, %cst_151 [1] : vector<16x128xf32> to vector<16xf32>
    %366 = vector.shape_cast %365 : vector<16xf32> to vector<16x1xf32>
    %cst_152 = arith.constant 1.280000e+02 : f32
    %367 = vector.broadcast %cst_152 : f32 to vector<16x1xf32>
    %368 = arith.divf %366, %367 : vector<16x1xf32>
    %369 = vector.broadcast %361 : vector<16x1xf32> to vector<16x128xf32>
    %370 = arith.subf %353, %369 : vector<16x128xf32>
    %cst_153 = arith.constant 9.99999974E-6 : f32
    %371 = vector.broadcast %cst_153 : f32 to vector<16x1xf32>
    %372 = arith.addf %368, %371 : vector<16x1xf32>
    %373 = math.rsqrt %372 : vector<16x1xf32>
    %374 = vector.broadcast %373 : vector<16x1xf32> to vector<16x128xf32>
    %375 = arith.mulf %370, %374 : vector<16x128xf32>
    %376 = vector.broadcast %355 : vector<1x128xf32> to vector<16x128xf32>
    %377 = arith.mulf %375, %376 : vector<16x128xf32>
    %378 = vector.broadcast %357 : vector<1x128xf32> to vector<16x128xf32>
    %379 = arith.addf %377, %378 : vector<16x128xf32>
    %380 = arith.truncf %379 : vector<16x128xf32> to vector<16x128xbf16>
    %c0_154 = arith.constant 0 : index
    %c0_155 = arith.constant 0 : index
    %381 = vector.load %arg20[%c0_154, %c0_155] : memref<128x256xbf16, #tpu.memory_space<vmem>>, vector<128x256xbf16>
    %cst_156 = arith.constant dense<0.000000e+00> : vector<16x256xf32>
    %382 = tpu.matmul %380, %381, %cst_156 {dimension_numbers = #tpu.dot_dimension_numbers<[1], [0], [0], [1], [0, 0, 1, 1], [], []>} : vector<16x128xbf16>, vector<128x256xbf16>, vector<16x256xf32> -> vector<16x256xf32>
    %c0_157 = arith.constant 0 : index
    %c0_158 = arith.constant 0 : index
    %383 = vector.load %arg21[%c0_157, %c0_158] : memref<1x256xf32, #tpu.memory_space<vmem>>, vector<1x256xf32>
    %384 = vector.broadcast %383 : vector<1x256xf32> to vector<16x256xf32>
    %385 = arith.addf %382, %384 : vector<16x256xf32>
    %386 = arith.mulf %385, %385 : vector<16x256xf32>
    %387 = arith.mulf %385, %386 : vector<16x256xf32>
    %cst_159 = arith.constant 4.471500e-02 : f32
    %388 = vector.broadcast %cst_159 : f32 to vector<16x256xf32>
    %389 = arith.mulf %388, %387 : vector<16x256xf32>
    %390 = arith.addf %385, %389 : vector<16x256xf32>
    %cst_160 = arith.constant 0.797884583 : f32
    %391 = vector.broadcast %cst_160 : f32 to vector<16x256xf32>
    %392 = arith.mulf %391, %390 : vector<16x256xf32>
    %393 = math.tanh %392 : vector<16x256xf32>
    %cst_161 = arith.constant 1.000000e+00 : f32
    %394 = vector.broadcast %cst_161 : f32 to vector<16x256xf32>
    %395 = arith.addf %394, %393 : vector<16x256xf32>
    %cst_162 = arith.constant 5.000000e-01 : f32
    %396 = vector.broadcast %cst_162 : f32 to vector<16x256xf32>
    %397 = arith.mulf %396, %395 : vector<16x256xf32>
    %398 = arith.mulf %385, %397 : vector<16x256xf32>
    %399 = arith.truncf %398 : vector<16x256xf32> to vector<16x256xbf16>
    %c0_163 = arith.constant 0 : index
    %c0_164 = arith.constant 0 : index
    %400 = vector.load %arg22[%c0_163, %c0_164] : memref<256x128xbf16, #tpu.memory_space<vmem>>, vector<256x128xbf16>
    %cst_165 = arith.constant dense<0.000000e+00> : vector<16x128xf32>
    %401 = tpu.matmul %399, %400, %cst_165 {dimension_numbers = #tpu.dot_dimension_numbers<[1], [0], [0], [1], [0, 0, 1, 1], [], []>} : vector<16x256xbf16>, vector<256x128xbf16>, vector<16x128xf32> -> vector<16x128xf32>
    %c0_166 = arith.constant 0 : index
    %c0_167 = arith.constant 0 : index
    %402 = vector.load %arg23[%c0_166, %c0_167] : memref<1x128xf32, #tpu.memory_space<vmem>>, vector<1x128xf32>
    %403 = vector.broadcast %402 : vector<1x128xf32> to vector<16x128xf32>
    %404 = arith.addf %401, %403 : vector<16x128xf32>
    %c0_168 = arith.constant 0 : index
    %c0_169 = arith.constant 0 : index
    %405 = vector.load %arg24[%c0_168, %c0_169] : memref<16x128xf32, #tpu.memory_space<vmem>>, vector<16x128xf32>
    tpu.vector_store %arg24[%c0_168, %c0_169], %404 {strides = array<i32>} : memref<16x128xf32, #tpu.memory_space<vmem>>, vector<16x128xf32>,
    return
  }
}

</mosaic_0001>

<bundles_post_ra>
// kernel: tpu_custom_call.1
= control target key start
LH: loop header
LB: loop body
LE: loop exit
PB: predicated region body
PF: predicated region fallthrough
CT: control target
= control target key end

     0   :  { %s5200_s0 = inlined_call_operand.vmem [shape: f32[16,128], index: 0, kind: input, shape index: {}]   ;;  %s5201_s1 = inlined_call_operand.vmem [shape: f32[16,1], index: 1, kind: input, shape index: {}]   ;;  %s5202_s2 = inlined_call_operand.vmem [shape: f32[16,1], index: 2, kind: input, shape index: {}]   ;;  %s5203_s3 = inlined_call_operand.vmem [shape: f32[1,16], index: 3, kind: input, shape index: {}]   ;;  %s5204_s4 = inlined_call_operand.hbm [shape: bf16[128,128], index: 4, kind: input, shape index: {}]   ;;  %s5205_s5 = inlined_call_operand.vmem [shape: f32[1,128], index: 5, kind: input, shape index: {}]   ;;  %s5206_s6 = inlined_call_operand.vmem [shape: f32[1,128], index: 6, kind: input, shape index: {}]   ;;  %s5207_s7 = inlined_call_operand.vmem [shape: f32[1,128], index: 7, kind: input, shape index: {}]   ;;  %s5208_s8 = inlined_call_operand.hbm [shape: bf16[2,128,384], index: 8, kind: input, shape index: {}]   ;;  %s5209_s9 = inlined_call_operand.vmem [shape: f32[2,1,384], index: 9, kind: input, shape index: {}]   ;;  %s5210_s10 = inlined_call_operand.hbm [shape: bf16[2,128,128], index: 10, kind: input, shape index: {}]   ;;  %s5211_s11 = inlined_call_operand.vmem [shape: f32[2,1,128], index: 11, kind: input, shape index: {}]   ;;  %s5212_s12 = inlined_call_operand.vmem [shape: f32[2,1,128], index: 12, kind: input, shape index: {}]   ;;  %s5213_s13 = inlined_call_operand.vmem [shape: f32[2,1,128], index: 13, kind: input, shape index: {}]   ;;  %s5214_s14 = inlined_call_operand.hbm [shape: bf16[2,128,256], index: 14, kind: input, shape index: {}]   ;;  %s5215_s15 = inlined_call_operand.vmem [shape: f32[2,1,256], index: 15, kind: input, shape index: {}]   ;;  %s5216_s16 = inlined_call_operand.hbm [shape: bf16[2,256,128], index: 16, kind: input, shape index: {}]   ;;  %s5217_s17 = inlined_call_operand.vmem [shape: f32[2,1,128], index: 17, kind: input, shape index: {}]   ;;  %s5218_s18 = inlined_call_operand.vmem [shape: f32[2,1,128], index: 18, kind: input, shape index: {}]   ;;  %s5219_s19 = inlined_call_operand.vmem [shape: f32[2,1,128], index: 19, kind: input, shape index: {}]   ;;  %s5220_s20 = inlined_call_operand.hbm [shape: bf16[128,256], index: 20, kind: input, shape index: {}]   ;;  %s5221_s21 = inlined_call_operand.vmem [shape: f32[1,256], index: 21, kind: input, shape index: {}]   ;;  %s5222_s22 = inlined_call_operand.hbm [shape: bf16[256,128], index: 22, kind: input, shape index: {}]   ;;  %s5223_s23 = inlined_call_operand.vmem [shape: f32[1,128], index: 23, kind: input, shape index: {}]   ;;  %s5224_s24 = inlined_call_operand.hbm [shape: f32[16,128], index: 24, kind: output, shape index: {}]  }
   0x1   :  { %5233 = sst [smem:[#allocation20_spill]] %s5200_s0 }
   0x2   :  { %5234 = sst [smem:[#allocation21_spill]] %s5201_s1 }
   0x3   :  { %5235 = sst [smem:[#allocation22_spill]] %s5202_s2 }
   0x4   :  { %5236 = sst [smem:[#allocation23_spill]] %s5203_s3 }
   0x5   :  { %5237 = sst [smem:[#allocation24_spill]] %s5204_s4 }
   0x6   :  { %5238 = sst [smem:[#allocation25_spill]] %s5205_s5 }
   0x7   :  { %5239 = sst [smem:[#allocation26_spill]] %s5206_s6 }
   0x8   :  { %5240 = sst [smem:[#allocation27_spill]] %s5207_s7 }
   0x9   :  { %5241 = sst [smem:[#allocation28_spill]] %s5208_s8 }
   0xa   :  { %5242 = sst [smem:[#allocation29_spill]] %s5224_s24 }
   0xb   :  { %29 = vsyncpa [#allocation3], 0 }
   0xc   :  { %30 = vsyncpa [#allocation6], 0 }
   0xd   :  { %31 = vsyncpa [#allocation9], 0 }
   0xe   :  { %32 = vsyncpa [#allocation12], 0 }
   0xf   :  { %33 = vsyncpa [#allocation4], 0  ;;  %s4521_s5 = smov [#allocation5]   ;;  %s5243_s6 = sld [smem:[#allocation28_spill]] }
  0x10   :  { %s65_s26 = sshll.u32 %s4521_s5, 4  ;;  %s66_s26 = int_to_ptr.vmem [resolvable:$true] %s65_s26 }
  0x15   :  { %s4335_s2 = scalar_lea.hbm %s5243_s6, 6144 }
  0x16   :  { %p4336_p0 = scmp.ne.s32.totalorder %s5243_s6, %s4335_s2  ;;  %p4339_p1 = scmp.lt.u32.totalorder %s4335_s2, %s5243_s6 }
  0x18   :  { %p4341_p2 = pnand %p4339_p1, %p4336_p0 }
  0x1a   :  { %4344 = shalt.err (!%p4341_p2)
}
  0x1b   :  { %s4345_s3 = scalar_lea.vmem %s66_s26, 6144  ;;  %p4350_p4 = scmp.lt.s32.totalorder %s66_s26, %s66_s26 }
  0x1c   :  { %p4346_p3 = scmp.ne.s32.totalorder %s66_s26, %s4345_s3  ;;  %p4351_p5 = scmp.lt.s32.totalorder %s4345_s3, %s4345_s3 }
  0x1e   :  { %p4352_p6 = por %p4351_p5, %p4350_p4 }
  0x20   :  { %p4353_p7 = pnand %p4352_p6, %p4346_p3 }
  0x22   :  { %4356 = shalt.err (!%p4353_p7)
}
  0x23   :  { %s4522_s25 = smov 192   ;;  %s4523_s8 = smov 12  }
  0x24   :  { %71 = dma.hbm_to_vmem [thread:$0]  %s5243_s6, 6144, %s66_s26, [#allocation6], %s4522_s25, %s4522_s25, %s4523_s8  }
  0x25   :  { %s4524_s5 = smov [#allocation8]   ;;  %s4357_s29 = scalar_lea.hbm %s5214_s14, 4096 }
  0x26   :  { %s97_s27 = sshll.u32 %s4524_s5, 4  ;;  %p4358_p8 = scmp.ne.s32.totalorder %s5214_s14, %s4357_s29  ;;  %s98_s27 = int_to_ptr.vmem [resolvable:$true] %s97_s27 }
  0x27   :  { %p4361_p9 = scmp.lt.u32.totalorder %s4357_s29, %s5214_s14 }
  0x29   :  { %p4363_p10 = pnand %p4361_p9, %p4358_p8 }
  0x2b   :  { %4366 = shalt.err (!%p4363_p10)
}
  0x2c   :  { %s4367_s24 = scalar_lea.vmem %s98_s27, 4096  ;;  %p4372_p12 = scmp.lt.s32.totalorder %s98_s27, %s98_s27 }
  0x2d   :  { %p4368_p11 = scmp.ne.s32.totalorder %s98_s27, %s4367_s24  ;;  %p4373_p13 = scmp.lt.s32.totalorder %s4367_s24, %s4367_s24 }
  0x2f   :  { %p4374_p0 = por %p4373_p13, %p4372_p12 }
  0x31   :  { %p4375_p1 = pnand %p4374_p0, %p4368_p11 }
  0x33   :  { %4378 = shalt.err (!%p4375_p1)
}
  0x34   :  { %s5232_s26 = smov 128   ;;  %s4526_s6 = smov 8  }
  0x35   :  { %103 = dma.hbm_to_vmem [thread:$0]  %s5214_s14, 4096, %s98_s27, [#allocation9], %s5232_s26, %s5232_s26, %s4526_s6  }
  0x36   :  { %s4527_s4 = smov [#allocation11]   ;;  %s4528_s5 = smov [#allocation2]  }
  0x37   :  { %s129_s1 = sshll.u32 %s4527_s4, 4  ;;  %s47_s28 = sshll.u32 %s4528_s5, 4  ;;  %s130_s1 = int_to_ptr.vmem [resolvable:$true] %s129_s1  ;;  %s4692_s28 = int_to_ptr.vmem [resolvable:$true] %s47_s28 }
  0x38   :  { %s4379_s29 = scalar_lea.hbm %s5220_s20, 2048 }
  0x39   :  { %p4380_p2 = scmp.ne.s32.totalorder %s5220_s20, %s4379_s29  ;;  %p4383_p3 = scmp.lt.u32.totalorder %s4379_s29, %s5220_s20 }
  0x3b   :  { %p4385_p4 = pnand %p4383_p3, %p4380_p2 }
  0x3d   :  { %4388 = shalt.err (!%p4385_p4)
}
  0x3e   :  { %s4389_s14 = scalar_lea.vmem %s130_s1, 2048  ;;  %p4394_p6 = scmp.lt.s32.totalorder %s130_s1, %s130_s1 }
  0x3f   :  { %p4390_p5 = scmp.ne.s32.totalorder %s130_s1, %s4389_s14  ;;  %p4395_p7 = scmp.lt.s32.totalorder %s4389_s14, %s4389_s14 }
  0x41   :  { %p4396_p8 = por %p4395_p7, %p4394_p6 }
  0x43   :  { %p4397_p9 = pnand %p4396_p8, %p4390_p5 }
  0x45   :  { %4400 = shalt.err (!%p4397_p9)
}
  0x46   :  { %135 = dma.hbm_to_vmem [thread:$0]  %s5220_s20, 2048, %s130_s1, [#allocation12], %s5232_s26, %s5232_s26, %s4526_s6  }
  0x47   :  { %s5244_s5 = sld [smem:[#allocation24_spill]] }
  0x4d   :  { %s4401_s24 = scalar_lea.hbm %s5244_s5, 1024 }
  0x4e   :  { %p4402_p10 = scmp.ne.s32.totalorder %s5244_s5, %s4401_s24  ;;  %p4405_p11 = scmp.lt.u32.totalorder %s4401_s24, %s5244_s5 }
  0x50   :  { %p4407_p12 = pnand %p4405_p11, %p4402_p10 }
  0x52   :  { %4410 = shalt.err (!%p4407_p12)
}
  0x53   :  { %s4411_s30 = scalar_lea.vmem %s4692_s28, 1024  ;;  %p4416_p0 = scmp.lt.s32.totalorder %s4692_s28, %s4692_s28 }
  0x54   :  { %p4412_p13 = scmp.ne.s32.totalorder %s4692_s28, %s4411_s30  ;;  %p4417_p1 = scmp.lt.s32.totalorder %s4411_s30, %s4411_s30 }
  0x56   :  { %p4418_p2 = por %p4417_p1, %p4416_p0 }
  0x58   :  { %p4419_p3 = pnand %p4418_p2, %p4412_p13 }
  0x5a   :  { %4422 = shalt.err (!%p4419_p3)
}
  0x5b   :  { %s4529_s20 = smov 64   ;;  %s4530_s1 = smov 4  }
  0x5c   :  { %53 = dma.hbm_to_vmem [thread:$0]  %s5244_s5, 1024, %s4692_s28, [#allocation3], %s4529_s20, %s4529_s20, %s4530_s1  }
  0x5d   :  { %s4531_s27 = smov [#allocation7]   ;;  %s4532_s8 = smov [#allocation10]  }
  0x5e   :  { %s79_s25 = sshll.u32 %s4531_s27, 4  ;;  %s111_s4 = sshll.u32 %s4532_s8, 4  ;;  %s80_s25 = int_to_ptr.vmem [resolvable:$true] %s79_s25  ;;  %s4729_s4 = int_to_ptr.vmem [resolvable:$true] %s111_s4 }
  0x5f   :  { %s4423_s29 = scalar_lea.hbm %s5210_s10, 2048 }
  0x60   :  { %p4424_p4 = scmp.ne.s32.totalorder %s5210_s10, %s4423_s29  ;;  %p4427_p5 = scmp.lt.u32.totalorder %s4423_s29, %s5210_s10 }
  0x62   :  { %p4429_p6 = pnand %p4427_p5, %p4424_p4 }
  0x64   :  { %4432 = shalt.err (!%p4429_p6)
}
  0x65   :  { %s4433_s28 = scalar_lea.vmem %s80_s25, 2048  ;;  %p4438_p8 = scmp.lt.s32.totalorder %s80_s25, %s80_s25 }
  0x66   :  { %p4434_p7 = scmp.ne.s32.totalorder %s80_s25, %s4433_s28  ;;  %p4439_p9 = scmp.lt.s32.totalorder %s4433_s28, %s4433_s28 }
  0x68   :  { %p4440_p10 = por %p4439_p9, %p4438_p8 }
  0x6a   :  { %p4441_p11 = pnand %p4440_p10, %p4434_p7 }
  0x6c   :  { %4444 = shalt.err (!%p4441_p11)
}
  0x6d   :  { %85 = dma.hbm_to_vmem [thread:$0]  %s5210_s10, 2048, %s80_s25, [#allocation6], %s4529_s20, %s4529_s20, %s4530_s1  }
  0x6e   :  { %s4445_s26 = scalar_lea.hbm %s5216_s16, 4096 }
  0x6f   :  { %p4446_p12 = scmp.ne.s32.totalorder %s5216_s16, %s4445_s26  ;;  %p4449_p13 = scmp.lt.u32.totalorder %s4445_s26, %s5216_s16 }
  0x71   :  { %p4451_p0 = pnand %p4449_p13, %p4446_p12 }
  0x73   :  { %4454 = shalt.err (!%p4451_p0)
}
  0x74   :  { %s4455_s0 = scalar_lea.vmem %s4729_s4, 4096  ;;  %p4460_p2 = scmp.lt.s32.totalorder %s4729_s4, %s4729_s4 }
  0x75   :  { %p4456_p1 = scmp.ne.s32.totalorder %s4729_s4, %s4455_s0  ;;  %p4461_p3 = scmp.lt.s32.totalorder %s4455_s0, %s4455_s0 }
  0x77   :  { %p4462_p4 = por %p4461_p3, %p4460_p2 }
  0x79   :  { %p4463_p5 = pnand %p4462_p4, %p4456_p1 }
  0x7b   :  { %4466 = shalt.err (!%p4463_p5)
}
  0x7c   :  { %117 = dma.hbm_to_vmem [thread:$0]  %s5216_s16, 4096, %s4729_s4, [#allocation9], %s4529_s20, %s4529_s20, %s4530_s1  }
  0x7d   :  { %s4533_s7 = smov [#allocation13]   ;;  %s4467_s3 = scalar_lea.hbm %s5222_s22, 2048 }
  0x7e   :  { %s143_s30 = sshll.u32 %s4533_s7, 4  ;;  %p4468_p6 = scmp.ne.s32.totalorder %s5222_s22, %s4467_s3  ;;  %s144_s30 = int_to_ptr.vmem [resolvable:$true] %s143_s30 }
  0x7f   :  { %p4471_p7 = scmp.lt.u32.totalorder %s4467_s3, %s5222_s22 }
  0x81   :  { %p4473_p8 = pnand %p4471_p7, %p4468_p6 }
  0x83   :  { %4476 = shalt.err (!%p4473_p8)
}
  0x84   :  { %s4477_s24 = scalar_lea.vmem %s144_s30, 2048  ;;  %p4482_p10 = scmp.lt.s32.totalorder %s144_s30, %s144_s30 }
  0x85   :  { %p4478_p9 = scmp.ne.s32.totalorder %s144_s30, %s4477_s24  ;;  %p4483_p11 = scmp.lt.s32.totalorder %s4477_s24, %s4477_s24 }
  0x87   :  { %p4484_p12 = por %p4483_p11, %p4482_p10 }
  0x89   :  { %p4485_p13 = pnand %p4484_p12, %p4478_p9 }
  0x8b   :  { %4488 = shalt.err (!%p4485_p13)
}
  0x8c   :  { %149 = dma.hbm_to_vmem [thread:$0]  %s5222_s22, 2048, %s144_s30, [#allocation12], %s4529_s20, %s4529_s20, %s4530_s1  }
  0x8d   :  { %4511 = dma.done.wait [#allocation3], 1024  }
  0x8e   :  { %4512 = vsyncadd [#allocation3], 4294966272 }
  0x8f   :  { %4513 = dma.done.wait [#allocation6], 8192  }
  0x90   :  { %4514 = vsyncadd [#allocation6], 4294959104 }
  0x91   :  { %4515 = dma.done.wait [#allocation9], 8192  }
  0x92   :  { %4516 = vsyncadd [#allocation9], 4294959104 }
  0x93   :  { %4517 = dma.done.wait [#allocation12], 4096  }
  0x94   :  { %4518 = vsyncadd [#allocation12], 4294963200  ;;  %v4534_v0 = vmov 0.0   ;;  %vm4535_vm0 = vmmov 0   ;;  %v4536_v1 = vmov 0   ;;  %v4022_v2 = vld [vmem:[#allocation2] sm:$0xff]   ;;  %v371_v63 = vlaneseq }
  0x95   :  { %3775 = vmatprep.subr.bf16.mxu0 %v4534_v0  ;;  %3791 = vmatprep.mubr.msk.bf16.mxu0 %vm4535_vm0, %v4534_v0  ;;  %v4023_v3 = vld [vmem:[#allocation2 + $0x8] sm:$0xff]   ;;  %v4024_v4 = vld [vmem:[#allocation2 + $0x10] sm:$0xff]   ;;  %v4025_v5 = vld [vmem:[#allocation2 + $0x18] sm:$0xff]   ;;  %s5245_s2 = sld [smem:[#allocation21_spill]]  ;;  %s5246_s10 = sld [smem:[#allocation22_spill]]  ;;  %vm607_vm1 = vcmask 261120  }
  0x96   :  { %3990 = vset.pattern.permute.xlu0 %v4536_v1  ;;  %3991 = vset.pattern.permute.xlu1 %v4536_v1  ;;  %v4030_v10 = vld [vmem:[#allocation5 + $0x4] ss:$12 sps:$4 sm:$0xff]   ;;  %v4032_v11 = vld [vmem:[#allocation5] ss:$12 sps:$4 sm:$0xff]   ;;  %v4034_v12 = vld [vmem:[#allocation5 + $0x1c] ss:$12 sps:$4 sm:$0xff]  }
  0x97   :  { %546 = vmatprep.mubr.bf16.mxu1 %v4536_v1  ;;  %3776 = vmatpush3.bf16.msra.mxu0 %v4022_v2  ;;  %v4036_v13 = vld [vmem:[#allocation5 + $0x18] ss:$12 sps:$4 sm:$0xff]   ;;  %v4038_v15 = vld [vmem:[#allocation5 + $0x34] ss:$12 sps:$4 sm:$0xff]   ;;  %v4040_v16 = vld [vmem:[#allocation5 + $0x30] ss:$12 sps:$4 sm:$0xff]  }
  0x98   :  { %3777 = vmatprep.subr.bf16.mxu0 %v4534_v0  ;;  %514 = vmatprep.subr.bf16.mxu1 %v4030_v10  ;;  %v4026_v14 = vld [vmem:[#allocation2 + $0x20] sm:$0xff]   ;;  %v4027_v17 = vld [vmem:[#allocation2 + $0x28] sm:$0xff]   ;;  %v4028_v19 = vld [vmem:[#allocation2 + $0x30] sm:$0xff]   ;;  %s5247_s14 = sld [smem:[#allocation20_spill]]  ;;  %s5248_s16 = sld [smem:[#allocation26_spill]]  ;;  %v4843_v2 = vshrl.u32 %v371_v63, 7 }
  0x99   :  { %515 = vmatpush1.bf16.msra.mxu1 %v4032_v11  ;;  %v4042_v18 = vld [vmem:[#allocation5 + $0x4c] ss:$12 sps:$4 sm:$0xff]   ;;  %v4044_v20 = vld [vmem:[#allocation5 + $0x48] ss:$12 sps:$4 sm:$0xff]   ;;  %v4046_v21 = vld [vmem:[#allocation5 + $0x64] ss:$12 sps:$4 sm:$0xff]  }
  0x9a   :  { %516 = vmatprep.subr.bf16.mxu1 %v4034_v12  ;;  %v4029_v22 = vld [vmem:[#allocation2 + $0x38] sm:$0xff]   ;;  %v4048_v25 = vld [vmem:[#allocation5 + $0x60] ss:$12 sps:$4 sm:$0xff]   ;;  %v4033_v28 = vld [vmem:[#allocation5 + $0x8] ss:$12 sps:$4 sm:$0xff]   ;;  %s5249_s1 = sld [smem:[#allocation27_spill]] }
  0x9b   :  { %3778 = vmatpush3.bf16.msra.mxu0 %v4023_v3  ;;  %v289_v6 = vld [vmem:[%s5245_s2] sm:$0xff]  ;;  %v290_v8 = vld [vmem:[%s5245_s2 + $0x8] sm:$0xff]  ;;  %v4045_v32 = vld [vmem:[#allocation5 + $0x50] ss:$12 sps:$4 sm:$0xff]   ;;  %s5250_s0 = sld [smem:[#allocation25_spill]]  ;;  %v4846_v3 = vsub.s32 0, %v4843_v2 }
  0x9c   :  { %3779 = vmatprep.subr.bf16.mxu0 %v4534_v0  ;;  %294 = vperm.xlu0 %3990, %v289_v6   ;;  %v319_v7 = vld [vmem:[%s5246_s10] sm:$0xff]  ;;  %v320_v9 = vld [vmem:[%s5246_s10 + $0x8] sm:$0xff]  ;;  %v4056_v36 = vld [vmem:[#allocation5 + $0x90] ss:$12 sps:$4 sm:$0xff]   ;;  %v4853_v6 = vsub.s32 1, %v4843_v2  ;;  %s5251_s28 = sld [smem:[#allocation23_spill]] }
  0x9d   :  { %323 = vperm.xlu1 %3991, %v319_v7   ;;  %517 = vmatpush1.bf16.msra.mxu1 %v4036_v13  ;;  %v4050_v26 = vld [vmem:[#allocation5 + $0x7c] ss:$12 sps:$4 sm:$0xff]   ;;  %v4052_v27 = vld [vmem:[#allocation5 + $0x78] ss:$12 sps:$4 sm:$0xff]   ;;  %v4037_v30 = vld [vmem:[#allocation5 + $0x20] ss:$12 sps:$4 sm:$0xff]  }
  0x9e   :  { %518 = vmatprep.subr.bf16.mxu1 %v4038_v15  ;;  %v174_v23 = vld [vmem:[%s5247_s14] sm:$0xff]  ;;  %v175_v24 = vld [vmem:[%s5247_s14 + $0x8] sm:$0xff]  ;;  %v4061_v40 = vld [vmem:[#allocation5 + $0xb0] ss:$12 sps:$4 sm:$0xff]   ;;  %vm655_vm2 = vcmask 130048   ;;  %s4537_s5 = smov 96  }
  0x9f   :  { %3780 = vmatpush3.bf16.msra.mxu0 %v4024_v4  ;;  %v176_v29 = vpack.c.bf16 %v175_v24, %v174_v23  ;;  %v4041_v31 = vld [vmem:[#allocation5 + $0x38] ss:$12 sps:$4 sm:$0xff]   ;;  %v4049_v33 = vld [vmem:[#allocation5 + $0x68] ss:$12 sps:$4 sm:$0xff]   ;;  %v4053_v34 = vld [vmem:[#allocation5 + $0x80] ss:$12 sps:$4 sm:$0xff]  }
  0xa0   :  { %3781 = vmatprep.subr.bf16.mxu0 %v4534_v0  ;;  %299 = vperm.xlu0 %3990, %v290_v8   ;;  %v4054_v35 = vld [vmem:[#allocation5 + $0x94] ss:$12 sps:$4 sm:$0xff]   ;;  %v4057_v37 = vld [vmem:[#allocation5 + $0x98] ss:$12 sps:$4 sm:$0xff]   ;;  %v381_v4 = vsub.s32 2, %v4843_v2  ;;  %s4538_s3 = smov 32  }
  0xa1   :  { %328 = vperm.xlu1 %3991, %v320_v9   ;;  %519 = vmatpush1.bf16.msra.mxu1 %v4040_v16  ;;  %v4058_v38 = vld [vmem:[#allocation5 + $0xac] ss:$12 sps:$4 sm:$0xff]   ;;  %v4060_v39 = vld [vmem:[#allocation5 + $0xa8] ss:$12 sps:$4 sm:$0xff]   ;;  %v3432_v42 = vld [vmem:[%s5248_s16] ss:$0 sm:$0xff] }
  0xa2   :  { %520 = vmatprep.subr.bf16.mxu1 %v4042_v18  ;;  %v3433_v47 = vld [vmem:[%s5249_s1] ss:$0 sm:$0xff]  ;;  %vm1115_vm3 = vcmask 523264   ;;  %vm1118_vm4 = vcmask 785408   ;;  %s4539_s22 = smov [#allocation14]  }
  0xa3   :  { %3782 = vmatpush3.bf16.msra.mxu0 %v4025_v5  ;;  %v3423_v48 = vld [vmem:[%s5250_s0] ss:$0 sm:$0xff]  ;;  %s3408_s1 = sshll.u32 %s4539_s22, 4  ;;  %s3409_s1 = int_to_ptr.vmem [resolvable:$true] %s3408_s1 }
  0xa4   :  { %3783 = vmatprep.subr.bf16.mxu0 %v4534_v0  ;;  %v369_v5 = vld [vmem:[%s5209_s9] sm:$0x7]  ;;  %s4489_s2 = scalar_lea.vmem %s3409_s1, 256  ;;  %p4494_p1 = scmp.lt.s32.totalorder %s3409_s1, %s3409_s1 }
  0xa5   :  { %521 = vmatpush1.bf16.msra.mxu1 %v4044_v20  ;;  %v374_v7 = vrot.slane %v369_v5, %v4846_v3  ;;  %v382_v8 = vrot.slane %v369_v5, %v381_v4  ;;  %v378_v11 = vrot.slane %v369_v5, %v4853_v6  ;;  %p4490_p0 = scmp.ne.s32.totalorder %s3409_s1, %s4489_s2  ;;  %p4495_p2 = scmp.lt.s32.totalorder %s4489_s2, %s4489_s2 }
  0xa6   :  { %522 = vmatprep.subr.bf16.mxu1 %v4046_v21 }
  0xa7   :  { %3784 = vmatpush3.bf16.msra.mxu0 %v4026_v14  ;;  %p4496_p3 = por %p4495_p2, %p4494_p1 }
  0xa8   :  { %3785 = vmatprep.subr.bf16.mxu0 %v4534_v0 }
  0xa9   :  { %523 = vmatpush1.bf16.msra.mxu1 %v4048_v25  ;;  %p4497_p4 = pnand %p4496_p3, %p4490_p0 }
  0xaa   :  { %524 = vmatprep.subr.bf16.mxu1 %v4050_v26 }
  0xab   :  { %3786 = vmatpush3.bf16.msra.mxu0 %v4027_v17 }
  0xac   :  { %3787 = vmatprep.subr.bf16.mxu0 %v4534_v0 }
  0xad   :  { %525 = vmatpush1.bf16.msra.mxu1 %v4052_v27 }
  0xae   :  { %526 = vmatprep.subr.bf16.mxu1 %v4054_v35 }
  0xaf   :  { %3788 = vmatpush3.bf16.msra.mxu0 %v4028_v19 }
  0xb0   :  { %3789 = vmatprep.subr.bf16.mxu0 %v4534_v0 }
  0xb1   :  { %527 = vmatpush1.bf16.msra.mxu1 %v4056_v36 }
  0xb2   :  { %528 = vmatprep.subr.bf16.mxu1 %v4058_v38 }
  0xb3   :  { %3790 = vmatpush3.bf16.msra.mxu0 %v4029_v22 }
  0xb4   :  { %3795 = vmatprep.subr.bf16.mxu0 %v4534_v0 }
  0xb5   :  { %529 = vmatpush1.bf16.msra.mxu1 %v4060_v39 }
  0xb6   :  { %3792 = vmatmul.mubr.bf16.vlgmr.msra.gmra.mrb[0].mxu0 %v176_v29  ;;  %3815 = vmatprep.subr.bf16.mxu1 %v4534_v0 }
  0xb7   :  { %3796 = vmatpush3.bf16.msra.mxu0 %v4033_v28  ;;  %3811 = vmatprep.mubr.msk.bf16.mxu0 %vm4535_vm0, %v4534_v0  ;;  %v4877_v28 = vld [vmem:[%s5251_s28] ss:$0 sm:$0xff] }
  0xb8   :  { %3797 = vmatprep.subr.bf16.mxu0 %v4534_v0 }
  0xbb   :  { %3798 = vmatpush3.bf16.msra.mxu0 %v4037_v30 }
  0xbc   :  { %3799 = vmatprep.subr.bf16.mxu0 %v4534_v0 }
  0xbf   :  { %3800 = vmatpush3.bf16.msra.mxu0 %v4041_v31 }
  0xc0   :  { %3801 = vmatprep.subr.bf16.mxu0 %v4534_v0 }
  0xc3   :  { %3802 = vmatpush3.bf16.msra.mxu0 %v4045_v32 }
  0xc4   :  { %3803 = vmatprep.subr.bf16.mxu0 %v4534_v0 }
  0xc7   :  { %3804 = vmatpush3.bf16.msra.mxu0 %v4049_v33 }
  0xc8   :  { %3805 = vmatprep.subr.bf16.mxu0 %v4534_v0 }
  0xcb   :  { %3806 = vmatpush3.bf16.msra.mxu0 %v4053_v34 }
  0xcc   :  { %3807 = vmatprep.subr.bf16.mxu0 %v4534_v0 }
  0xcf   :  { %3808 = vmatpush3.bf16.msra.mxu0 %v4057_v37 }
  0xd0   :  { %3809 = vmatprep.subr.bf16.mxu0 %v4534_v0 }
  0xd3   :  { %3810 = vmatpush3.bf16.msra.mxu0 %v4061_v40 }
  0xd4   :  { %3863 = vmatprep.subr.bf16.mxu0 %v4534_v0 }
 0x11b   :  { %v295_v41 = vpop.permute.xlu0 %294 }
 0x11c   :  { %v324_v44 = vpop.permute.xlu1 %323  ;;  %v308_v45 = vmul.f32 %v3432_v42, %v295_v41 }
 0x11e   :  { %v317_v49 = vadd.f32 %v3433_v47, %v308_v45 }
 0x11f   :  { %v300_v43 = vpop.permute.xlu0 %299 }
 0x120   :  { %v309_v46 = vmul.f32 %v3432_v42, %v300_v43  ;;  %v329_v51 = vpop.permute.xlu1 %328  ;;  %v331_v56 = vmul.f32 %v324_v44, %v317_v49 }
 0x122   :  { %v318_v50 = vadd.f32 %v3433_v47, %v309_v46 }
 0x124   :  { %v332_v57 = vmul.f32 %v329_v51, %v318_v50 }
 0x189   :  { %v282_v52 = vpop.f32.mrb[0].mxu0 }
 0x18a   :  { %v283_v53 = vadd.f32 %v3423_v48, %v282_v52  ;;  %v3793_v54 = vpop.f32.mrb[1].mxu0 }
 0x18b   :  { %v285_v55 = vpop.f32.mrb[2].mxu0 }
 0x18c   :  { %v286_v58 = vadd.f32 %v3423_v48, %v285_v55  ;;  %v3794_v59 = vpop.f32.mrb[3].mxu0  ;;  %v4833_v60 = vadd.f32 %v331_v56, %v283_v53 }
 0x18e   :  { %v4835_v61 = vadd.f32 %v332_v57, %v286_v58 }
 0x190   :  { %v336_v62 = vpack.c.bf16 %v4835_v61, %v4833_v60 }
 0x192   :  { %547 = vmatmul.mubr.bf16.vlgmr.msra.gmra.mrb[0].mxu1 %v336_v62  ;;  %3812 = vmatmul.mubr.bf16.vlgmr.msra.gmra.mrb[4].mxu0 %v336_v62 }
 0x193   :  { %3817 = vmatprep.mubr.msk.bf16.mxu1 %vm4535_vm0, %v4534_v0  ;;  %3879 = vmatprep.mubr.msk.bf16.mxu0 %vm4535_vm0, %v4534_v0 }
 0x265   :  { %v548_v9 = vpop.f32.mrb[0].mxu1  ;;  %v591_v10 = vpop.f32.mrb[4].mxu0 }
 0x266   :  { %v550_v12 = vpop.f32.mrb[1].mxu1  ;;  %v3813_v13 = vpop.f32.mrb[5].mxu0  ;;  %v549_v16 = vadd.f32 %v548_v9, %v374_v7  ;;  %v592_v17 = vadd.f32 %v591_v10, %v382_v8 }
 0x267   :  { %v552_v14 = vpop.f32.mrb[2].mxu1  ;;  %v594_v15 = vpop.f32.mrb[6].mxu0  ;;  %v551_v22 = vadd.f32 %v550_v12, %v378_v11 }
 0x268   :  { %v553_v18 = vadd.f32 %v552_v14, %v374_v7  ;;  %v595_v19 = vadd.f32 %v594_v15, %v382_v8  ;;  %v554_v20 = vpop.f32.mrb[3].mxu1  ;;  %v3814_v21 = vpop.f32.mrb[7].mxu0 }
 0x269   :  { %v555_v23 = vadd.f32 %v554_v20, %v378_v11 }
 0x26a   :  { %v4859_v24 = vpack.c.bf16 %v553_v18, %v549_v16  ;;  %v4861_v25 = vpack.c.bf16 %v595_v19, %v592_v17 }
 0x26b   :  { %v4863_v26 = vpack.c.bf16 %v555_v23, %v551_v22 }
 0x26d   :  { %v612_v27 = vsel %vm607_vm1, %v4863_v26, 0 }
 0x26e   :  { %3816 = vmatpush3.bf16.xpose.msra.mxu1 %v612_v27 }
 0x26f   :  { %3821 = vmatprep.subr.bf16.mxu1 %v4534_v0 }
 0x275   :  { %3818 = vmatmul.mubr.msk.bf16.vlgmr.msra.gmra.mrb[4].mxu1 %vm607_vm1, %v4859_v24 }
 0x276   :  { %3822 = vmatpush3.bf16.msra.mxu1 %v4861_v25  ;;  %3823 = vmatprep.mubr.msk.bf16.mxu1 %vm4535_vm0, %v4534_v0 }
 0x277   :  { %3827 = vmatprep.subr.bf16.mxu1 %v4534_v0 }
 0x348   :  { %v648_v29 = vpop.f32.mrb[4].mxu1 }
 0x349   :  { %v649_v30 = vadd.f32 %v4877_v28, %v648_v29  ;;  %v3819_v31 = vpop.f32.mrb[5].mxu1 }
 0x34a   :  { %v651_v32 = vpop.f32.mrb[6].mxu1 }
 0x34b   :  { %v652_v33 = vadd.f32 %v4877_v28, %v651_v32  ;;  %v3820_v34 = vpop.f32.mrb[7].mxu1  ;;  %v656_v35 = vsel %vm655_vm2, %v649_v30, -inf }
 0x34c   :  { %657 = vmax.xlane.f32.xlu0 %v656_v35 }
 0x34d   :  { %v659_v36 = vsel %vm655_vm2, %v652_v33, -inf }
 0x34e   :  { %660 = vmax.xlane.f32.xlu1 %v659_v36 }
 0x35f   :  { %727 = vrot.lane.b32.xlu1 %v4863_v26, %s4537_s5 }
 0x3d9   :  { %v658_v37 = vpop.xlane.xlu0 %657 }
 0x3da   :  { %v662_v38 = vsub.f32 %v649_v30, %v658_v37 }
 0x3db   :  { %v661_v39 = vpop.xlane.xlu1 %660 }
 0x3dc   :  { %v664_v40 = vmul.f32 1.442695, %v662_v38  ;;  %v663_v41 = vsub.f32 %v652_v33, %v661_v39 }
 0x3de   :  { %4230 = vpow2.f32 %v664_v40  ;;  %v666_v42 = vmul.f32 1.442695, %v663_v41 }
 0x3df   :  { %v728_v53 = vpop.permute.xlu1 %727 }
 0x3e0   :  { %4232 = vpow2.f32 %v666_v42  ;;  %v733_v55 = vsel %vm607_vm1, %v728_v53, 0 }
 0x3e8   :  { %v4231_v43 = vpop.eup %4230 }
 0x3e9   :  { %v668_v44 = vsel %vm655_vm2, %v4231_v43, 0.0 }
 0x3ea   :  { %v4233_v45 = vpop.eup %4232  ;;  %669 = vadd.xlane.f32.xlu0 %v668_v44 }
 0x3eb   :  { %v671_v46 = vsel %vm655_vm2, %v4233_v45, 0.0 }
 0x3ee   :  { %672 = vadd.xlane.f32.xlu0 %v671_v46 }
 0x404   :  { %724 = vrot.lane.b32.xlu0 %v4859_v24, %s4537_s5 }
 0x477   :  { %v670_v47 = vpop.xlane.xlu0 %669 }
 0x478   :  { %4234 = vrcp.f32 %v670_v47 }
 0x47b   :  { %v673_v48 = vpop.xlane.xlu0 %672 }
 0x47c   :  { %4236 = vrcp.f32 %v673_v48 }
 0x47f   :  { %v725_v56 = vpop.permute.xlu0 %724 }
 0x482   :  { %v4235_v49 = vpop.eup %4234 }
 0x483   :  { %v675_v51 = vmul.f32 %v4235_v49, %v4231_v43 }
 0x486   :  { %v4237_v50 = vpop.eup %4236 }
 0x487   :  { %v677_v52 = vmul.f32 %v4237_v50, %v4233_v45 }
 0x489   :  { %v678_v54 = vpack.c.bf16 %v677_v52, %v675_v51 }
 0x48b   :  { %3824 = vmatmul.mubr.msk.bf16.vlgmr.msra.gmra.mrb[8].mxu1 %vm655_vm2, %v678_v54 }
 0x48c   :  { %3828 = vmatpush3.bf16.xpose.msra.mxu1 %v733_v55  ;;  %3829 = vmatprep.mubr.msk.bf16.mxu1 %vm4535_vm0, %v4534_v0 }
 0x48d   :  { %3833 = vmatprep.subr.bf16.mxu1 %v4534_v0 }
 0x493   :  { %3830 = vmatmul.mubr.msk.bf16.vlgmr.msra.gmra.mrb[12].mxu1 %vm607_vm1, %v725_v56 }
 0x494   :  { %3835 = vmatprep.mubr.msk.bf16.mxu1 %vm4535_vm0, %v4534_v0 }
 0x55e   :  { %v4897_v57 = vpop.f32.mrb[8].mxu1 }
 0x55f   :  { %v3825_v58 = vpop.f32.mrb[9].mxu1 }
 0x560   :  { %v4899_v59 = vpop.f32.mrb[10].mxu1 }
 0x561   :  { %v3826_v62 = vpop.f32.mrb[11].mxu1 }
 0x566   :  { %v769_v63 = vpop.f32.mrb[12].mxu1 }
 0x567   :  { %v770_v5 = vadd.f32 %v4877_v28, %v769_v63  ;;  %v3831_v7 = vpop.f32.mrb[13].mxu1 }
 0x568   :  { %v772_v8 = vpop.f32.mrb[14].mxu1 }
 0x569   :  { %v773_v9 = vadd.f32 %v4877_v28, %v772_v8  ;;  %v3832_v10 = vpop.f32.mrb[15].mxu1  ;;  %v776_v11 = vsel %vm655_vm2, %v770_v5, -inf }
 0x56a   :  { %777 = vmax.xlane.f32.xlu1 %v776_v11 }
 0x56b   :  { %v779_v12 = vsel %vm655_vm2, %v773_v9, -inf }
 0x56c   :  { %780 = vmax.xlane.f32.xlu0 %v779_v12 }
 0x5f7   :  { %v778_v13 = vpop.xlane.xlu1 %777 }
 0x5f8   :  { %v782_v14 = vsub.f32 %v770_v5, %v778_v13 }
 0x5f9   :  { %v781_v15 = vpop.xlane.xlu0 %780 }
 0x5fa   :  { %v784_v16 = vmul.f32 1.442695, %v782_v14  ;;  %v783_v17 = vsub.f32 %v773_v9, %v781_v15 }
 0x5fc   :  { %4238 = vpow2.f32 %v784_v16  ;;  %v786_v18 = vmul.f32 1.442695, %v783_v17 }
 0x5fe   :  { %4240 = vpow2.f32 %v786_v18 }
 0x606   :  { %v4239_v19 = vpop.eup %4238 }
 0x607   :  { %v788_v20 = vsel %vm655_vm2, %v4239_v19, 0.0 }
 0x608   :  { %v4241_v21 = vpop.eup %4240  ;;  %789 = vadd.xlane.f32.xlu1 %v788_v20 }
 0x609   :  { %v791_v22 = vsel %vm655_vm2, %v4241_v21, 0.0 }
 0x60a   :  { %792 = vadd.xlane.f32.xlu0 %v791_v22 }
 0x619   :  { %800 = vrot.lane.b32.xlu1 %v4861_v25, %s4537_s5 }
 0x61d   :  { %847 = vrot.lane.b32.xlu1 %v4859_v24, %s4529_s20 }
 0x620   :  { %849 = vrot.lane.b32.xlu0 %v4863_v26, %s4529_s20 }
 0x695   :  { %v790_v23 = vpop.xlane.xlu1 %789 }
 0x696   :  { %4242 = vrcp.f32 %v790_v23 }
 0x697   :  { %v793_v27 = vpop.xlane.xlu0 %792 }
 0x698   :  { %4244 = vrcp.f32 %v793_v27 }
 0x699   :  { %v801_v29 = vpop.permute.xlu1 %800 }
 0x69a   :  { %3834 = vmatpush3.bf16.msra.mxu1 %v801_v29 }
 0x69b   :  { %3839 = vmatprep.subr.bf16.mxu1 %v4534_v0  ;;  %v850_v34 = vpop.permute.xlu0 %849 }
 0x69c   :  { %v855_v36 = vsel %vm607_vm1, %v850_v34, 0 }
 0x69d   :  { %v848_v37 = vpop.permute.xlu1 %847 }
 0x6a0   :  { %v4243_v30 = vpop.eup %4242 }
 0x6a1   :  { %v795_v32 = vmul.f32 %v4243_v30, %v4239_v19 }
 0x6a2   :  { %v4245_v31 = vpop.eup %4244 }
 0x6a3   :  { %v797_v33 = vmul.f32 %v4245_v31, %v4241_v21 }
 0x6a5   :  { %v798_v35 = vpack.c.bf16 %v797_v33, %v795_v32 }
 0x6a7   :  { %3836 = vmatmul.mubr.msk.bf16.vlgmr.msra.gmra.mrb[16].mxu1 %vm655_vm2, %v798_v35 }
 0x6a8   :  { %3840 = vmatpush3.bf16.xpose.msra.mxu1 %v855_v36  ;;  %3841 = vmatprep.mubr.msk.bf16.mxu1 %vm4535_vm0, %v4534_v0 }
 0x6a9   :  { %3845 = vmatprep.subr.bf16.mxu1 %v4534_v0 }
 0x6af   :  { %3842 = vmatmul.mubr.msk.bf16.vlgmr.msra.gmra.mrb[20].mxu1 %vm607_vm1, %v848_v37 }
 0x6b0   :  { %3847 = vmatprep.mubr.msk.bf16.mxu1 %vm4535_vm0, %v4534_v0 }
 0x77a   :  { %v4922_v38 = vpop.f32.mrb[16].mxu1 }
 0x77b   :  { %v3837_v39 = vpop.f32.mrb[17].mxu1 }
 0x77c   :  { %v4924_v40 = vpop.f32.mrb[18].mxu1 }
 0x77d   :  { %v3992_v41 = vpack.i.bf16 %v4924_v40, %v4922_v38  ;;  %v3838_v42 = vpop.f32.mrb[19].mxu1  ;;  %v4064_v38 = vld [vmem:[#allocation7 + $0x10] sm:$0xff]   ;;  %v4065_v40 = vld [vmem:[#allocation7 + $0x18] sm:$0xff]  }
 0x782   :  { %v891_v43 = vpop.f32.mrb[20].mxu1 }
 0x783   :  { %v892_v44 = vadd.f32 %v4877_v28, %v891_v43  ;;  %v3843_v45 = vpop.f32.mrb[21].mxu1 }
 0x784   :  { %v894_v46 = vpop.f32.mrb[22].mxu1 }
 0x785   :  { %v895_v47 = vadd.f32 %v4877_v28, %v894_v46  ;;  %v3844_v48 = vpop.f32.mrb[23].mxu1  ;;  %v898_v49 = vsel %vm655_vm2, %v892_v44, -inf }
 0x786   :  { %899 = vmax.xlane.f32.xlu1 %v898_v49 }
 0x787   :  { %v901_v50 = vsel %vm655_vm2, %v895_v47, -inf }
 0x788   :  { %902 = vmax.xlane.f32.xlu0 %v901_v50 }
 0x813   :  { %v900_v51 = vpop.xlane.xlu1 %899 }
 0x814   :  { %v904_v52 = vsub.f32 %v892_v44, %v900_v51 }
 0x815   :  { %v903_v53 = vpop.xlane.xlu0 %902 }
 0x816   :  { %v906_v54 = vmul.f32 1.442695, %v904_v52  ;;  %v905_v55 = vsub.f32 %v895_v47, %v903_v53  ;;  %v4062_v52 = vld [vmem:[#allocation7] sm:$0xff]   ;;  %v4063_v53 = vld [vmem:[#allocation7 + $0x8] sm:$0xff]  }
 0x817   :  { %3864 = vmatpush3.bf16.msra.mxu0 %v4062_v52  ;;  %v4090_v52 = vld [vmem:[#allocation8 + $0x64] ss:$8 sps:$4 sm:$0xff]  }
 0x818   :  { %4246 = vpow2.f32 %v906_v54  ;;  %v908_v56 = vmul.f32 1.442695, %v905_v55  ;;  %3865 = vmatprep.subr.bf16.mxu0 %v4534_v0  ;;  %v4067_v54 = vld [vmem:[#allocation7 + $0x28] sm:$0xff]   ;;  %v4068_v55 = vld [vmem:[#allocation7 + $0x30] sm:$0xff]  }
 0x81a   :  { %4248 = vpow2.f32 %v908_v56  ;;  %v4069_v56 = vld [vmem:[#allocation7 + $0x38] sm:$0xff]  }
 0x81b   :  { %3866 = vmatpush3.bf16.msra.mxu0 %v4063_v53  ;;  %v4088_v53 = vld [vmem:[#allocation8 + $0x60] ss:$8 sps:$4 sm:$0xff]  }
 0x81c   :  { %3867 = vmatprep.subr.bf16.mxu0 %v4534_v0 }
 0x81f   :  { %3868 = vmatpush3.bf16.msra.mxu0 %v4064_v38  ;;  %v4093_v38 = vld [vmem:[#allocation8 + $0x74] ss:$8 sps:$4 sm:$0xff]  }
 0x820   :  { %3869 = vmatprep.subr.bf16.mxu0 %v4534_v0 }
 0x822   :  { %v4247_v58 = vpop.eup %4246 }
 0x823   :  { %v910_v62 = vsel %vm655_vm2, %v4247_v58, 0.0  ;;  %3870 = vmatpush3.bf16.msra.mxu0 %v4065_v40  ;;  %v4091_v40 = vld [vmem:[#allocation8 + $0x70] ss:$8 sps:$4 sm:$0xff]  }
 0x824   :  { %v4249_v63 = vpop.eup %4248  ;;  %911 = vadd.xlane.f32.xlu0 %v910_v62  ;;  %3871 = vmatprep.subr.bf16.mxu0 %v4534_v0 }
 0x825   :  { %v913_v5 = vsel %vm655_vm2, %v4249_v63, 0.0 }
 0x826   :  { %914 = vadd.xlane.f32.xlu1 %v913_v5 }
 0x837   :  { %970 = vrot.lane.b32.xlu1 %v4863_v26, %s4538_s3 }
 0x83a   :  { %921 = vrot.lane.b32.xlu0 %v4861_v25, %s4529_s20 }
 0x83b   :  { %968 = vrot.lane.b32.xlu1 %v4859_v24, %s4538_s3 }
 0x8b1   :  { %v912_v7 = vpop.xlane.xlu0 %911 }
 0x8b2   :  { %4250 = vrcp.f32 %v912_v7 }
 0x8b3   :  { %v915_v8 = vpop.xlane.xlu1 %914 }
 0x8b4   :  { %4252 = vrcp.f32 %v915_v8 }
 0x8b5   :  { %v922_v9 = vpop.permute.xlu0 %921 }
 0x8b6   :  { %3846 = vmatpush3.bf16.msra.mxu1 %v922_v9 }
 0x8b7   :  { %3851 = vmatprep.subr.bf16.mxu1 %v4534_v0  ;;  %v971_v14 = vpop.permute.xlu1 %970 }
 0x8b8   :  { %v976_v15 = vsel %vm607_vm1, %v971_v14, 0 }
 0x8bb   :  { %v969_v24 = vpop.permute.xlu1 %968 }
 0x8bc   :  { %v4251_v10 = vpop.eup %4250 }
 0x8bd   :  { %v917_v12 = vmul.f32 %v4251_v10, %v4247_v58 }
 0x8be   :  { %v4253_v11 = vpop.eup %4252 }
 0x8bf   :  { %v919_v13 = vmul.f32 %v4253_v11, %v4249_v63 }
 0x8c1   :  { %v920_v26 = vpack.c.bf16 %v919_v13, %v917_v12 }
 0x8c3   :  { %3848 = vmatmul.mubr.msk.bf16.vlgmr.msra.gmra.mrb[24].mxu1 %vm655_vm2, %v920_v26 }
 0x8c4   :  { %3852 = vmatpush3.bf16.xpose.msra.mxu1 %v976_v15  ;;  %3853 = vmatprep.mubr.msk.bf16.mxu1 %vm4535_vm0, %v4534_v0 }
 0x8c5   :  { %3857 = vmatprep.subr.bf16.mxu1 %v4534_v0 }
 0x8cb   :  { %3854 = vmatmul.mubr.msk.bf16.vlgmr.msra.gmra.mrb[28].mxu1 %vm607_vm1, %v969_v24 }
 0x8cc   :  { %3859 = vmatprep.mubr.msk.bf16.mxu1 %vm4535_vm0, %v4534_v0 }
 0x996   :  { %v961_v16 = vpop.f32.mrb[24].mxu1 }
 0x997   :  { %v3849_v17 = vpop.f32.mrb[25].mxu1 }
 0x998   :  { %v964_v18 = vpop.f32.mrb[26].mxu1 }
 0x999   :  { %v3997_v19 = vpack.i.bf16 %v964_v18, %v961_v16  ;;  %v3850_v20 = vpop.f32.mrb[27].mxu1 }
 0x99e   :  { %v1012_v21 = vpop.f32.mrb[28].mxu1 }
 0x99f   :  { %v1013_v22 = vadd.f32 %v4877_v28, %v1012_v21  ;;  %v3855_v23 = vpop.f32.mrb[29].mxu1 }
 0x9a0   :  { %v1015_v27 = vpop.f32.mrb[30].mxu1 }
 0x9a1   :  { %v1016_v29 = vadd.f32 %v4877_v28, %v1015_v27  ;;  %v3856_v30 = vpop.f32.mrb[31].mxu1  ;;  %v1019_v31 = vsel %vm655_vm2, %v1013_v22, -inf }
 0x9a2   :  { %1020 = vmax.xlane.f32.xlu0 %v1019_v31 }
 0x9a3   :  { %v1022_v32 = vsel %vm655_vm2, %v1016_v29, -inf }
 0x9a4   :  { %1023 = vmax.xlane.f32.xlu1 %v1022_v32 }
 0x9b5   :  { %1042 = vrot.lane.b32.xlu1 %v4861_v25, %s4538_s3 }
 0x9b9   :  { %3998 = vrot.lane.b32.xlu1 %v3997_v19, %s4529_s20 }
 0xa2f   :  { %v1021_v33 = vpop.xlane.xlu0 %1020 }
 0xa30   :  { %v1025_v34 = vsub.f32 %v1013_v22, %v1021_v33  ;;  %v4070_v33 = vld [vmem:[#allocation8] ss:$8 sps:$4 sm:$0xff]  }
 0xa31   :  { %v1024_v35 = vpop.xlane.xlu1 %1023 }
 0xa32   :  { %v1027_v36 = vmul.f32 1.442695, %v1025_v34  ;;  %v1026_v37 = vsub.f32 %v1016_v29, %v1024_v35  ;;  %v4072_v34 = vld [vmem:[#allocation8 + $0x4] ss:$8 sps:$4 sm:$0xff]   ;;  %v4075_v35 = vld [vmem:[#allocation8 + $0x14] ss:$8 sps:$4 sm:$0xff]  }
 0xa34   :  { %4254 = vpow2.f32 %v1027_v36  ;;  %v1029_v39 = vmul.f32 1.442695, %v1026_v37  ;;  %v4073_v36 = vld [vmem:[#allocation8 + $0x10] ss:$8 sps:$4 sm:$0xff]  }
 0xa35   :  { %v1043_v28 = vpop.permute.xlu1 %1042 }
 0xa36   :  { %4256 = vpow2.f32 %v1029_v39  ;;  %3858 = vmatpush3.bf16.msra.mxu1 %v1043_v28 }
 0xa37   :  { %1386 = vmatprep.subr.bf16.mxu1 %v4072_v34 }
 0xa39   :  { %v3999_v11 = vpop.permute.xlu1 %3998 }
 0xa3a   :  { %v4001_v14 = vunpack.i.h.bf16 %v3999_v11  ;;  %v4000_v26 = vunpack.i.l.bf16 %v3999_v11  ;;  %v3477_v11 = vld [vmem:[%s5213_s13] ss:$0 sm:$0xff] }
 0xa3e   :  { %v4255_v42 = vpop.eup %4254 }
 0xa3f   :  { %v1031_v43 = vsel %vm655_vm2, %v4255_v42, 0.0 }
 0xa40   :  { %v4257_v44 = vpop.eup %4256  ;;  %1032 = vadd.xlane.f32.xlu0 %v1031_v43 }
 0xa41   :  { %v1034_v45 = vsel %vm655_vm2, %v4257_v44, 0.0 }
 0xa44   :  { %1035 = vadd.xlane.f32.xlu0 %v1034_v45 }
 0xa5a   :  { %3993 = vrot.lane.b32.xlu0 %v3992_v41, %s4538_s3  ;;  %v4066_v41 = vld [vmem:[#allocation7 + $0x20] sm:$0xff]  }
 0xa5b   :  { %3872 = vmatpush3.bf16.msra.mxu0 %v4066_v41 }
 0xa5c   :  { %3873 = vmatprep.subr.bf16.mxu0 %v4534_v0 }
 0xa5f   :  { %3874 = vmatpush3.bf16.msra.mxu0 %v4067_v54 }
 0xa60   :  { %3875 = vmatprep.subr.bf16.mxu0 %v4534_v0 }
 0xa63   :  { %3876 = vmatpush3.bf16.msra.mxu0 %v4068_v55 }
 0xa64   :  { %3877 = vmatprep.subr.bf16.mxu0 %v4534_v0 }
 0xa67   :  { %3878 = vmatpush3.bf16.msra.mxu0 %v4069_v56 }
 0xacd   :  { %v1033_v25 = vpop.xlane.xlu0 %1032 }
 0xace   :  { %4258 = vrcp.f32 %v1033_v25  ;;  %v4076_v25 = vld [vmem:[#allocation8 + $0x20] ss:$8 sps:$4 sm:$0xff]  }
 0xad1   :  { %v1036_v46 = vpop.xlane.xlu0 %1035 }
 0xad2   :  { %4260 = vrcp.f32 %v1036_v46  ;;  %v4081_v46 = vld [vmem:[#allocation8 + $0x34] ss:$8 sps:$4 sm:$0xff]  }
 0xad5   :  { %v3994_v8 = vpop.permute.xlu0 %3993 }
 0xad6   :  { %v3996_v9 = vunpack.i.h.bf16 %v3994_v8  ;;  %v3995_v10 = vunpack.i.l.bf16 %v3994_v8 }
 0xad8   :  { %v4259_v47 = vpop.eup %4258  ;;  %v1114_v12 = vsel %vm607_vm1, %v4899_v59, %v3996_v9  ;;  %v1113_v13 = vsel %vm607_vm1, %v4897_v57, %v3995_v10  ;;  %v3467_v57 = vld [vmem:[%s5211_s11] ss:$0 sm:$0xff] }
 0xad9   :  { %v1038_v49 = vmul.f32 %v4259_v47, %v4255_v42  ;;  %v1116_v17 = vsel %vm1115_vm3, %v1113_v13, %v4000_v26  ;;  %v1117_v18 = vsel %vm1115_vm3, %v1114_v12, %v4001_v14  ;;  %v4079_v47 = vld [vmem:[#allocation8 + $0x30] ss:$8 sps:$4 sm:$0xff]  }
 0xadc   :  { %v4261_v48 = vpop.eup %4260 }
 0xadd   :  { %v1040_v50 = vmul.f32 %v4261_v48, %v4257_v44  ;;  %v4084_v48 = vld [vmem:[#allocation8 + $0x44] ss:$8 sps:$4 sm:$0xff]  }
 0xadf   :  { %v1041_v51 = vpack.c.bf16 %v1040_v50, %v1038_v49  ;;  %v4082_v49 = vld [vmem:[#allocation8 + $0x40] ss:$8 sps:$4 sm:$0xff]   ;;  %v4087_v50 = vld [vmem:[#allocation8 + $0x54] ss:$8 sps:$4 sm:$0xff]  }
 0xae1   :  { %3860 = vmatmul.mubr.msk.bf16.vlgmr.msra.gmra.mrb[32].mxu1 %vm655_vm2, %v1041_v51  ;;  %v4085_v51 = vld [vmem:[#allocation8 + $0x50] ss:$8 sps:$4 sm:$0xff]  }
 0xae2   :  { %1418 = vmatprep.mubr.bf16.mxu1 %v4536_v1  ;;  %1387 = vmatpush1.bf16.msra.mxu1 %v4070_v33 }
 0xae3   :  { %1388 = vmatprep.subr.bf16.mxu1 %v4075_v35 }
 0xae6   :  { %1389 = vmatpush1.bf16.msra.mxu1 %v4073_v36 }
 0xbb4   :  { %v1082_v58 = vpop.f32.mrb[32].mxu1 }
 0xbb5   :  { %v3861_v62 = vpop.f32.mrb[33].mxu1 }
 0xbb6   :  { %v1085_v63 = vpop.f32.mrb[34].mxu1 }
 0xbb7   :  { %v4002_v5 = vpack.i.bf16 %v1085_v63, %v1082_v58  ;;  %v3862_v7 = vpop.f32.mrb[35].mxu1 }
 0xbb8   :  { %v3476_v7 = vld [vmem:[%s5212_s12] ss:$0 sm:$0xff] }
 0xbb9   :  { %4003 = vrot.lane.b32.xlu1 %v4002_v5, %s4537_s5 }
 0xc2b   :  { %v4004_v15 = vpop.permute.xlu1 %4003 }
 0xc2c   :  { %v4006_v24 = vunpack.i.h.bf16 %v4004_v15  ;;  %v4005_v16 = vunpack.i.l.bf16 %v4004_v15  ;;  %v4094_v15 = vld [vmem:[#allocation10 + $0x40] sm:$0xff]  }
 0xc2d   :  { %3675 = vmatprep.subr.bf16.mxu0 %v4094_v15 }
 0xc2e   :  { %v1120_v19 = vsel %vm1118_vm4, %v1117_v18, %v4006_v24  ;;  %v1119_v20 = vsel %vm1118_vm4, %v1116_v17, %v4005_v16  ;;  %v4095_v24 = vld [vmem:[#allocation10] sm:$0xff]   ;;  %v4096_v16 = vld [vmem:[#allocation10 + $0x48] sm:$0xff]   ;;  %v4098_v18 = vld [vmem:[#allocation10 + $0x50] sm:$0xff]  }
 0xc2f   :  { %v1121_v21 = vpack.c.bf16 %v1120_v19, %v1119_v20  ;;  %v4097_v17 = vld [vmem:[#allocation10 + $0x8] sm:$0xff]   ;;  %v4099_v19 = vld [vmem:[#allocation10 + $0x10] sm:$0xff]   ;;  %v4100_v20 = vld [vmem:[#allocation10 + $0x58] sm:$0xff]  }
 0xc31   :  { %3880 = vmatmul.mubr.bf16.vlgmr.msra.gmra.mrb[8].mxu0 %v1121_v21  ;;  %v4101_v21 = vld [vmem:[#allocation10 + $0x18] sm:$0xff]  }
 0xc32   :  { %3676 = vmatpush3.bf16.msra.mxu0 %v4095_v24 }
 0xc33   :  { %3677 = vmatprep.subr.bf16.mxu0 %v4096_v16 }
 0xc36   :  { %3678 = vmatpush3.bf16.msra.mxu0 %v4097_v17 }
 0xc37   :  { %3679 = vmatprep.subr.bf16.mxu0 %v4098_v18 }
 0xc3a   :  { %3680 = vmatpush3.bf16.msra.mxu0 %v4099_v19 }
 0xc3b   :  { %3681 = vmatprep.subr.bf16.mxu0 %v4100_v20 }
 0xc3e   :  { %3682 = vmatpush3.bf16.msra.mxu0 %v4101_v21 }
 0xd04   :  { %v1227_v59 = vpop.f32.mrb[8].mxu0 }
 0xd05   :  { %v1228_v22 = vadd.f32 %v3467_v57, %v1227_v59  ;;  %v3881_v23 = vpop.f32.mrb[9].mxu0  ;;  %v4103_v59 = vld [vmem:[#allocation10 + $0x20] sm:$0xff]  }
 0xd06   :  { %v1230_v27 = vpop.f32.mrb[10].mxu0  ;;  %v4105_v23 = vld [vmem:[#allocation10 + $0x28] sm:$0xff]  }
 0xd07   :  { %v1231_v29 = vadd.f32 %v3467_v57, %v1230_v27  ;;  %v3882_v30 = vpop.f32.mrb[11].mxu0  ;;  %v1234_v31 = vadd.f32 %v1228_v22, %v4833_v60  ;;  %v4102_v57 = vld [vmem:[#allocation10 + $0x60] sm:$0xff]   ;;  %v4104_v22 = vld [vmem:[#allocation10 + $0x68] sm:$0xff]   ;;  %v4106_v27 = vld [vmem:[#allocation10 + $0x70] sm:$0xff]  }
 0xd08   :  { %3683 = vmatprep.subr.bf16.mxu0 %v4102_v57  ;;  %v4108_v30 = vld [vmem:[#allocation10 + $0x78] sm:$0xff]  }
 0xd09   :  { %1238 = vadd.xlane.f32.xlu0 %v1234_v31  ;;  %v1235_v32 = vadd.f32 %v1231_v29, %v4835_v61  ;;  %v4078_v61 = vld [vmem:[#allocation8 + $0x24] ss:$8 sps:$4 sm:$0xff]   ;;  %3684 = vmatpush3.bf16.msra.mxu0 %v4103_v59  ;;  %v4107_v29 = vld [vmem:[#allocation10 + $0x30] sm:$0xff]  }
 0xd0a   :  { %1390 = vmatprep.subr.bf16.mxu1 %v4078_v61  ;;  %3685 = vmatprep.subr.bf16.mxu0 %v4104_v22  ;;  %v3494_v22 = vld [vmem:[%s5217_s17] ss:$0 sm:$0xff] }
 0xd0b   :  { %1240 = vadd.xlane.f32.xlu1 %v1235_v32  ;;  %1391 = vmatpush1.bf16.msra.mxu1 %v4076_v25 }
 0xd0c   :  { %1392 = vmatprep.subr.bf16.mxu1 %v4081_v46 }
 0xd0d   :  { %3686 = vmatpush3.bf16.msra.mxu0 %v4105_v23 }
 0xd0e   :  { %3687 = vmatprep.subr.bf16.mxu0 %v4106_v27 }
 0xd0f   :  { %1393 = vmatpush1.bf16.msra.mxu1 %v4079_v47 }
 0xd10   :  { %1394 = vmatprep.subr.bf16.mxu1 %v4084_v48 }
 0xd11   :  { %3688 = vmatpush3.bf16.msra.mxu0 %v4107_v29 }
 0xd12   :  { %3689 = vmatprep.subr.bf16.mxu0 %v4108_v30 }
 0xd13   :  { %1395 = vmatpush1.bf16.msra.mxu1 %v4082_v49 }
 0xd14   :  { %1396 = vmatprep.subr.bf16.mxu1 %v4087_v50 }
 0xd17   :  { %1397 = vmatpush1.bf16.msra.mxu1 %v4085_v51 }
 0xd18   :  { %1398 = vmatprep.subr.bf16.mxu1 %v4090_v52 }
 0xd1b   :  { %1399 = vmatpush1.bf16.msra.mxu1 %v4088_v53 }
 0xd1c   :  { %1400 = vmatprep.subr.bf16.mxu1 %v4093_v38 }
 0xd1f   :  { %1401 = vmatpush1.bf16.msra.mxu1 %v4091_v40 }
 0xd96   :  { %v1239_v37 = vpop.xlane.xlu0 %1238 }
 0xd97   :  { %v1243_v39 = vmul.f32 0.0078125, %v1239_v37 }
 0xd98   :  { %v1241_v28 = vpop.xlane.xlu1 %1240 }
 0xd99   :  { %v1245_v42 = vsub.f32 %v1234_v31, %v1243_v39  ;;  %v1244_v43 = vmul.f32 0.0078125, %v1241_v28  ;;  %v4109_v31 = vld [vmem:[#allocation10 + $0x38] sm:$0xff]  }
 0xd9a   :  { %3690 = vmatpush3.bf16.msra.mxu0 %v4109_v31 }
 0xd9b   :  { %v1246_v44 = vsub.f32 %v1235_v32, %v1244_v43  ;;  %v1247_v45 = vmul.f32 %v1245_v42, %v1245_v42  ;;  %3883 = vmatprep.subr.bf16.mxu0 %v4534_v0  ;;  %v1294_v32 = vld [vmem:[%s5215_s15] sm:$0x3] }
 0xd9c   :  { %v1299_v33 = vrot.slane %v1294_v32, %v4846_v3  ;;  %v1303_v34 = vrot.slane %v1294_v32, %v4853_v6 }
 0xd9d   :  { %1249 = vadd.xlane.f32.xlu0 %v1247_v45  ;;  %v1248_v60 = vmul.f32 %v1246_v44, %v1246_v44 }
 0xda1   :  { %1251 = vadd.xlane.f32.xlu0 %v1248_v60 }
 0xe2a   :  { %v1250_v41 = vpop.xlane.xlu0 %1249 }
 0xe2b   :  { %v1253_v54 = vmul.f32 0.0078125, %v1250_v41 }
 0xe2d   :  { %v1255_v55 = vadd.f32 1e-05, %v1253_v54 }
 0xe2e   :  { %v1252_v56 = vpop.xlane.xlu0 %1251 }
 0xe2f   :  { %4262 = vrsqrt.f32 %v1255_v55  ;;  %v1254_v58 = vmul.f32 0.0078125, %v1252_v56 }
 0xe31   :  { %v1256_v62 = vadd.f32 1e-05, %v1254_v58 }
 0xe33   :  { %4264 = vrsqrt.f32 %v1256_v62 }
 0xe39   :  { %v4263_v63 = vpop.eup %4262 }
 0xe3a   :  { %v1259_v5 = vmul.f32 %v4263_v63, %v1245_v42 }
 0xe3c   :  { %v1267_v10 = vmul.f32 %v3476_v7, %v1259_v5 }
 0xe3d   :  { %v4265_v8 = vpop.eup %4264 }
 0xe3e   :  { %v1260_v9 = vmul.f32 %v4265_v8, %v1246_v44  ;;  %v4991_v13 = vadd.f32 %v3477_v11, %v1267_v10 }
 0xe40   :  { %v1268_v12 = vmul.f32 %v3476_v7, %v1260_v9 }
 0xe42   :  { %v4993_v14 = vadd.f32 %v3477_v11, %v1268_v12 }
 0xe44   :  { %v1277_v26 = vpack.c.bf16 %v4993_v14, %v4991_v13 }
 0xe46   :  { %1419 = vmatmul.mubr.bf16.vlgmr.msra.gmra.mrb[36].mxu1 %v1277_v26 }
 0xe47   :  { %1897 = vmatprep.mubr.bf16.mxu1 %v4536_v1 }
 0xf19   :  { %v1420_v35 = vpop.f32.mrb[36].mxu1 }
 0xf1a   :  { %v1421_v36 = vadd.f32 %v1420_v35, %v1299_v33  ;;  %v1422_v37 = vpop.f32.mrb[37].mxu1 }
 0xf1b   :  { %v1423_v39 = vadd.f32 %v1422_v37, %v1303_v34  ;;  %v1424_v28 = vpop.f32.mrb[38].mxu1  ;;  %v4112_v37 = vld [vmem:[#allocation5 + $0xc4] ss:$12 sps:$4 sm:$0xff]  }
 0xf1c   :  { %v1429_v42 = vmul.f32 %v1421_v36, %v1421_v36  ;;  %v1425_v43 = vadd.f32 %v1424_v28, %v1299_v33  ;;  %v1426_v44 = vpop.f32.mrb[39].mxu1  ;;  %v4116_v28 = vld [vmem:[#allocation5 + $0xdc] ss:$12 sps:$4 sm:$0xff]   ;;  %1865 = vmatprep.subr.bf16.mxu1 %v4112_v37 }
 0xf1d   :  { %v1430_v45 = vmul.f32 %v1423_v39, %v1423_v39  ;;  %v1427_v60 = vadd.f32 %v1426_v44, %v1303_v34 }
 0xf1e   :  { %v1433_v61 = vmul.f32 %v1429_v42, %v1421_v36  ;;  %v1431_v25 = vmul.f32 %v1425_v43, %v1425_v43  ;;  %v4117_v42 = vld [vmem:[#allocation5 + $0xe0] ss:$12 sps:$4 sm:$0xff]  }
 0xf1f   :  { %v1434_v46 = vmul.f32 %v1430_v45, %v1423_v39  ;;  %v1432_v47 = vmul.f32 %v1427_v60, %v1427_v60 }
 0xf20   :  { %v1437_v48 = vmul.f32 0.044715, %v1433_v61  ;;  %v1435_v49 = vmul.f32 %v1431_v25, %v1425_v43 }
 0xf21   :  { %v1438_v50 = vmul.f32 0.044715, %v1434_v46  ;;  %v1436_v51 = vmul.f32 %v1432_v47, %v1427_v60  ;;  %v4120_v47 = vld [vmem:[#allocation5 + $0xf4] ss:$12 sps:$4 sm:$0xff]  }
 0xf22   :  { %v1441_v52 = vadd.f32 %v1437_v48, %v1421_v36  ;;  %v1439_v53 = vmul.f32 0.044715, %v1435_v49  ;;  %v4118_v48 = vld [vmem:[#allocation5 + $0xf0] ss:$12 sps:$4 sm:$0xff]   ;;  %v4121_v49 = vld [vmem:[#allocation5 + $0xf8] ss:$12 sps:$4 sm:$0xff]  }
 0xf23   :  { %v1442_v38 = vadd.f32 %v1438_v50, %v1423_v39  ;;  %v1440_v40 = vmul.f32 0.044715, %v1436_v51  ;;  %v4124_v50 = vld [vmem:[#allocation5 + $0x10c] ss:$12 sps:$4 sm:$0xff]   ;;  %v4122_v51 = vld [vmem:[#allocation5 + $0x108] ss:$12 sps:$4 sm:$0xff]  }
 0xf24   :  { %v1445_v41 = vmul.f32 0.7978846, %v1441_v52  ;;  %v1443_v54 = vadd.f32 %v1439_v53, %v1425_v43  ;;  %v4125_v52 = vld [vmem:[#allocation5 + $0x110] ss:$12 sps:$4 sm:$0xff]  }
 0xf25   :  { %v1446_v55 = vmul.f32 0.7978846, %v1442_v38  ;;  %v1444_v56 = vadd.f32 %v1440_v40, %v1427_v60  ;;  %v4128_v53 = vld [vmem:[#allocation5 + $0x124] ss:$12 sps:$4 sm:$0xff]   ;;  %v4126_v38 = vld [vmem:[#allocation5 + $0x120] ss:$12 sps:$4 sm:$0xff]  }
 0xf26   :  { %4266 = vtanh.f32 %v1445_v41  ;;  %v1447_v58 = vmul.f32 0.7978846, %v1443_v54  ;;  %v4129_v40 = vld [vmem:[#allocation5 + $0x128] ss:$12 sps:$4 sm:$0xff]   ;;  %v4130_v54 = vld [vmem:[#allocation5 + $0x138] ss:$12 sps:$4 sm:$0xff]  }
 0xf27   :  { %4268 = vtanh.f32 %v1446_v55  ;;  %v1448_v62 = vmul.f32 0.7978846, %v1444_v56  ;;  %v4132_v41 = vld [vmem:[#allocation5 + $0x13c] ss:$12 sps:$4 sm:$0xff]   ;;  %v4133_v55 = vld [vmem:[#allocation5 + $0x140] ss:$12 sps:$4 sm:$0xff]  }
 0xf28   :  { %4270 = vtanh.f32 %v1447_v58  ;;  %v4136_v56 = vld [vmem:[#allocation5 + $0x154] ss:$12 sps:$4 sm:$0xff]   ;;  %v4134_v58 = vld [vmem:[#allocation5 + $0x150] ss:$12 sps:$4 sm:$0xff]  }
 0xf29   :  { %4272 = vtanh.f32 %v1448_v62  ;;  %v4137_v62 = vld [vmem:[#allocation5 + $0x158] ss:$12 sps:$4 sm:$0xff]  }
 0xf30   :  { %v4267_v63 = vpop.eup %4266 }
 0xf31   :  { %v4269_v5 = vpop.eup %4268  ;;  %v1453_v7 = vadd.f32 1.0, %v4267_v63  ;;  %v4140_v63 = vld [vmem:[#allocation5 + $0x16c] ss:$12 sps:$4 sm:$0xff]  }
 0xf32   :  { %v4271_v8 = vpop.eup %4270  ;;  %v1454_v9 = vadd.f32 1.0, %v4269_v5  ;;  %v4138_v5 = vld [vmem:[#allocation5 + $0x168] ss:$12 sps:$4 sm:$0xff]  }
 0xf33   :  { %v4273_v10 = vpop.eup %4272  ;;  %v1457_v11 = vmul.f32 0.5, %v1453_v7  ;;  %v1455_v12 = vadd.f32 1.0, %v4271_v8  ;;  %v4141_v7 = vld [vmem:[#allocation5 + $0x170] ss:$12 sps:$4 sm:$0xff]  }
 0xf34   :  { %v1456_v26 = vadd.f32 1.0, %v4273_v10  ;;  %v1458_v15 = vmul.f32 0.5, %v1454_v9 }
 0xf35   :  { %v1459_v24 = vmul.f32 0.5, %v1455_v12  ;;  %v1461_v17 = vmul.f32 %v1457_v11, %v1421_v36  ;;  %v4110_v36 = vld [vmem:[#allocation5 + $0xc0] ss:$12 sps:$4 sm:$0xff]  }
 0xf36   :  { %v1460_v16 = vmul.f32 0.5, %v1456_v26  ;;  %v1462_v19 = vmul.f32 %v1458_v15, %v1423_v39  ;;  %v4113_v39 = vld [vmem:[#allocation5 + $0xc8] ss:$12 sps:$4 sm:$0xff]   ;;  %1866 = vmatpush1.bf16.msra.mxu1 %v4110_v36 }
 0xf37   :  { %v1463_v18 = vmul.f32 %v1459_v24, %v1425_v43  ;;  %v4114_v43 = vld [vmem:[#allocation5 + $0xd8] ss:$12 sps:$4 sm:$0xff]   ;;  %1867 = vmatprep.subr.bf16.mxu1 %v4116_v28  ;;  %v3511_v24 = vld [vmem:[%s5218_s18] ss:$0 sm:$0xff] }
 0xf38   :  { %v1464_v20 = vmul.f32 %v1460_v16, %v1427_v60 }
 0xf39   :  { %v1465_v21 = vpack.c.bf16 %v1463_v18, %v1461_v17 }
 0xf3a   :  { %v1466_v57 = vpack.c.bf16 %v1464_v20, %v1462_v19  ;;  %1868 = vmatpush1.bf16.msra.mxu1 %v4114_v43  ;;  %v3512_v20 = vld [vmem:[%s5219_s19] ss:$0 sm:$0xff] }
 0xf3b   :  { %1869 = vmatprep.subr.bf16.mxu1 %v4120_v47 }
 0xf3c   :  { %1634 = vmatprep.mubr.bf16.mxu0 %v1466_v57 }
 0xf3d   :  { %1635 = vmatmul.mubr.bf16.vlgmr.msra.gmra.mrb[12].mxu0 %v1465_v21 }
 0xf3e   :  { %3899 = vmatprep.mubr.msk.bf16.mxu0 %vm4535_vm0, %v4534_v0  ;;  %3884 = vmatpush3.bf16.msra.mxu0 %v4113_v39 }
 0xf3f   :  { %3885 = vmatprep.subr.bf16.mxu0 %v4534_v0  ;;  %1870 = vmatpush1.bf16.msra.mxu1 %v4118_v48 }
 0xf40   :  { %1871 = vmatprep.subr.bf16.mxu1 %v4124_v50 }
 0xf42   :  { %3886 = vmatpush3.bf16.msra.mxu0 %v4117_v42 }
 0xf43   :  { %3887 = vmatprep.subr.bf16.mxu0 %v4534_v0  ;;  %1872 = vmatpush1.bf16.msra.mxu1 %v4122_v51 }
 0xf44   :  { %1873 = vmatprep.subr.bf16.mxu1 %v4128_v53 }
 0xf46   :  { %3888 = vmatpush3.bf16.msra.mxu0 %v4121_v49 }
 0xf47   :  { %3889 = vmatprep.subr.bf16.mxu0 %v4534_v0  ;;  %1874 = vmatpush1.bf16.msra.mxu1 %v4126_v38 }
 0xf48   :  { %1875 = vmatprep.subr.bf16.mxu1 %v4132_v41 }
 0xf4a   :  { %3890 = vmatpush3.bf16.msra.mxu0 %v4125_v52 }
 0xf4b   :  { %3891 = vmatprep.subr.bf16.mxu0 %v4534_v0  ;;  %1876 = vmatpush1.bf16.msra.mxu1 %v4130_v54 }
 0xf4c   :  { %1877 = vmatprep.subr.bf16.mxu1 %v4136_v56 }
 0xf4e   :  { %3892 = vmatpush3.bf16.msra.mxu0 %v4129_v40 }
 0xf4f   :  { %3893 = vmatprep.subr.bf16.mxu0 %v4534_v0  ;;  %1878 = vmatpush1.bf16.msra.mxu1 %v4134_v58 }
 0xf50   :  { %1879 = vmatprep.subr.bf16.mxu1 %v4140_v63 }
 0xf52   :  { %3894 = vmatpush3.bf16.msra.mxu0 %v4133_v55 }
 0xf53   :  { %3895 = vmatprep.subr.bf16.mxu0 %v4534_v0  ;;  %1880 = vmatpush1.bf16.msra.mxu1 %v4138_v5 }
 0xf54   :  { %3903 = vmatprep.subr.bf16.mxu1 %v4534_v0 }
 0xf56   :  { %3896 = vmatpush3.bf16.msra.mxu0 %v4137_v62 }
 0xf57   :  { %3897 = vmatprep.subr.bf16.mxu0 %v4534_v0 }
 0xf5a   :  { %3898 = vmatpush3.bf16.msra.mxu0 %v4141_v7 }
 0xf5b   :  { %3927 = vmatprep.subr.bf16.mxu0 %v4534_v0 }
0x1010   :  { %v3691_v59 = vpop.f32.mrb[12].mxu0 }
0x1011   :  { %v3692_v23 = vpop.f32.mrb[13].mxu0 }
0x1012   :  { %v3693_v27 = vadd.f32 %v3692_v23, %v3691_v59  ;;  %v3694_v29 = vpop.f32.mrb[14].mxu0  ;;  %v3513_v23 = vld [vmem:[%s5209_s9 + $0x3] sm:$0x7] }
0x1013   :  { %v3695_v30 = vpop.f32.mrb[15].mxu0 }
0x1014   :  { %v1637_v31 = vadd.f32 %v3693_v27, %v3494_v22  ;;  %v3696_v32 = vadd.f32 %v3695_v30, %v3694_v29  ;;  %v1725_v27 = vrot.slane %v3513_v23, %v4846_v3  ;;  %v1733_v29 = vrot.slane %v3513_v23, %v381_v4 }
0x1016   :  { %v1640_v33 = vadd.f32 %v3696_v32, %v3494_v22  ;;  %v1643_v34 = vadd.f32 %v1637_v31, %v4991_v13  ;;  %v1729_v32 = vrot.slane %v3513_v23, %v4853_v6 }
0x1018   :  { %1647 = vadd.xlane.f32.xlu1 %v1643_v34  ;;  %v1644_v35 = vadd.f32 %v1640_v33, %v4993_v14 }
0x101a   :  { %1649 = vadd.xlane.f32.xlu0 %v1644_v35 }
0x10a5   :  { %v1648_v13 = vpop.xlane.xlu1 %1647 }
0x10a6   :  { %v1651_v44 = vmul.f32 0.0078125, %v1648_v13 }
0x10a7   :  { %v1650_v14 = vpop.xlane.xlu0 %1649 }
0x10a8   :  { %v1653_v45 = vsub.f32 %v1643_v34, %v1651_v44  ;;  %v1652_v60 = vmul.f32 0.0078125, %v1650_v14 }
0x10aa   :  { %v1654_v61 = vsub.f32 %v1644_v35, %v1652_v60  ;;  %v1655_v25 = vmul.f32 %v1653_v45, %v1653_v45 }
0x10ac   :  { %1657 = vadd.xlane.f32.xlu1 %v1655_v25  ;;  %v1656_v46 = vmul.f32 %v1654_v61, %v1654_v61  ;;  %v5055_v25 = vld [vmem:[%s5251_s28] ss:$0 sm:$0xff] }
0x10ae   :  { %1659 = vadd.xlane.f32.xlu0 %v1656_v46 }
0x1139   :  { %v1658_v8 = vpop.xlane.xlu1 %1657 }
0x113a   :  { %v1661_v9 = vmul.f32 0.0078125, %v1658_v8 }
0x113b   :  { %v1660_v10 = vpop.xlane.xlu0 %1659 }
0x113c   :  { %v1663_v11 = vadd.f32 1e-05, %v1661_v9  ;;  %v1662_v12 = vmul.f32 0.0078125, %v1660_v10 }
0x113e   :  { %4274 = vrsqrt.f32 %v1663_v11  ;;  %v1664_v26 = vadd.f32 1e-05, %v1662_v12 }
0x1140   :  { %4276 = vrsqrt.f32 %v1664_v26 }
0x1148   :  { %v4275_v15 = vpop.eup %4274 }
0x1149   :  { %v1667_v16 = vmul.f32 %v4275_v15, %v1653_v45 }
0x114a   :  { %v4277_v17 = vpop.eup %4276 }
0x114b   :  { %v1668_v18 = vmul.f32 %v4277_v17, %v1654_v61  ;;  %v1675_v19 = vmul.f32 %v3511_v24, %v1667_v16 }
0x114d   :  { %v1676_v21 = vmul.f32 %v3511_v24, %v1668_v18  ;;  %v5026_v57 = vadd.f32 %v3512_v20, %v1675_v19 }
0x114f   :  { %v5028_v59 = vadd.f32 %v3512_v20, %v1676_v21 }
0x1151   :  { %v1685_v22 = vpack.c.bf16 %v5028_v59, %v5026_v57 }
0x1153   :  { %1898 = vmatmul.mubr.bf16.vlgmr.msra.gmra.mrb[40].mxu1 %v1685_v22  ;;  %3900 = vmatmul.mubr.bf16.vlgmr.msra.gmra.mrb[16].mxu0 %v1685_v22 }
0x1154   :  { %3905 = vmatprep.mubr.msk.bf16.mxu1 %vm4535_vm0, %v4534_v0  ;;  %3929 = vmatprep.mubr.msk.bf16.mxu0 %vm4535_vm0, %v4534_v0 }
0x1226   :  { %v1899_v30 = vpop.f32.mrb[40].mxu1  ;;  %v1942_v31 = vpop.f32.mrb[16].mxu0 }
0x1227   :  { %v1901_v33 = vpop.f32.mrb[41].mxu1  ;;  %v3901_v34 = vpop.f32.mrb[17].mxu0  ;;  %v1900_v37 = vadd.f32 %v1899_v30, %v1725_v27  ;;  %v1943_v39 = vadd.f32 %v1942_v31, %v1733_v29 }
0x1228   :  { %v1903_v35 = vpop.f32.mrb[42].mxu1  ;;  %v1945_v36 = vpop.f32.mrb[18].mxu0  ;;  %v1902_v44 = vadd.f32 %v1901_v33, %v1729_v32 }
0x1229   :  { %v1904_v28 = vadd.f32 %v1903_v35, %v1725_v27  ;;  %v1946_v42 = vadd.f32 %v1945_v36, %v1733_v29  ;;  %v1905_v43 = vpop.f32.mrb[43].mxu1  ;;  %v3902_v13 = vpop.f32.mrb[19].mxu0 }
0x122a   :  { %v1906_v14 = vadd.f32 %v1905_v43, %v1729_v32 }
0x122b   :  { %v1949_v45 = vpack.c.bf16 %v1904_v28, %v1900_v37  ;;  %v5043_v60 = vpack.c.bf16 %v1946_v42, %v1943_v39 }
0x122c   :  { %v1950_v2 = vpack.c.bf16 %v1906_v14, %v1902_v44 }
0x122e   :  { %v1956_v4 = vsel %vm607_vm1, %v1950_v2, 0 }
0x122f   :  { %3904 = vmatpush3.bf16.xpose.msra.mxu1 %v1956_v4 }
0x1230   :  { %3909 = vmatprep.subr.bf16.mxu1 %v4534_v0 }
0x1236   :  { %3906 = vmatmul.mubr.msk.bf16.vlgmr.msra.gmra.mrb[44].mxu1 %vm607_vm1, %v1949_v45 }
0x1237   :  { %3910 = vmatpush3.bf16.msra.mxu1 %v5043_v60  ;;  %3911 = vmatprep.mubr.msk.bf16.mxu1 %vm4535_vm0, %v4534_v0 }
0x1238   :  { %3915 = vmatprep.subr.bf16.mxu1 %v4534_v0 }
0x1309   :  { %v1992_v61 = vpop.f32.mrb[44].mxu1 }
0x130a   :  { %v1993_v46 = vadd.f32 %v5055_v25, %v1992_v61  ;;  %v3907_v47 = vpop.f32.mrb[45].mxu1 }
0x130b   :  { %v1995_v48 = vpop.f32.mrb[46].mxu1 }
0x130c   :  { %v1996_v49 = vadd.f32 %v5055_v25, %v1995_v48  ;;  %v3908_v50 = vpop.f32.mrb[47].mxu1  ;;  %v1999_v51 = vsel %vm655_vm2, %v1993_v46, -inf }
0x130d   :  { %2000 = vmax.xlane.f32.xlu1 %v1999_v51 }
0x130e   :  { %v2002_v52 = vsel %vm655_vm2, %v1996_v49, -inf }
0x130f   :  { %2003 = vmax.xlane.f32.xlu0 %v2002_v52 }
0x139a   :  { %v2001_v53 = vpop.xlane.xlu1 %2000 }
0x139b   :  { %v2005_v38 = vsub.f32 %v1993_v46, %v2001_v53 }
0x139c   :  { %v2004_v40 = vpop.xlane.xlu0 %2003 }
0x139d   :  { %v2007_v41 = vmul.f32 1.442695, %v2005_v38  ;;  %v2006_v54 = vsub.f32 %v1996_v49, %v2004_v40 }
0x139f   :  { %4278 = vpow2.f32 %v2007_v41  ;;  %v2009_v55 = vmul.f32 1.442695, %v2006_v54 }
0x13a1   :  { %4280 = vpow2.f32 %v2009_v55 }
0x13a9   :  { %v4279_v56 = vpop.eup %4278 }
0x13aa   :  { %v2011_v58 = vsel %vm655_vm2, %v4279_v56, 0.0 }
0x13ab   :  { %v4281_v62 = vpop.eup %4280  ;;  %2012 = vadd.xlane.f32.xlu1 %v2011_v58 }
0x13ac   :  { %v2014_v63 = vsel %vm655_vm2, %v4281_v62, 0.0 }
0x13ad   :  { %2015 = vadd.xlane.f32.xlu0 %v2014_v63 }
0x13bc   :  { %2070 = vrot.lane.b32.xlu1 %v1950_v2, %s4537_s5 }
0x13c0   :  { %2192 = vrot.lane.b32.xlu1 %v1950_v2, %s4529_s20 }
0x13c3   :  { %2067 = vrot.lane.b32.xlu0 %v1949_v45, %s4537_s5 }
0x13c4   :  { %2190 = vrot.lane.b32.xlu1 %v1949_v45, %s4529_s20 }
0x13c7   :  { %2313 = vrot.lane.b32.xlu0 %v1950_v2, %s4538_s3 }
0x13c8   :  { %2311 = vrot.lane.b32.xlu1 %v1949_v45, %s4538_s3 }
0x1438   :  { %v2013_v5 = vpop.xlane.xlu1 %2012 }
0x1439   :  { %4282 = vrcp.f32 %v2013_v5 }
0x143a   :  { %v2016_v7 = vpop.xlane.xlu0 %2015 }
0x143b   :  { %4284 = vrcp.f32 %v2016_v7 }
0x143c   :  { %v2071_v8 = vpop.permute.xlu1 %2070 }
0x143d   :  { %v2076_v20 = vsel %vm607_vm1, %v2071_v8, 0 }
0x143e   :  { %v2068_v9 = vpop.permute.xlu0 %2067 }
0x1440   :  { %v2193_v10 = vpop.permute.xlu1 %2192 }
0x1441   :  { %v2198_v11 = vsel %vm607_vm1, %v2193_v10, 0 }
0x1442   :  { %3928 = vmatpush3.bf16.xpose.msra.mxu0 %v2198_v11  ;;  %v2314_v16 = vpop.permute.xlu0 %2313 }
0x1443   :  { %v4283_v12 = vpop.eup %4282  ;;  %3939 = vmatprep.subr.bf16.mxu0 %v4534_v0  ;;  %v2319_v19 = vsel %vm607_vm1, %v2314_v16, 0 }
0x1444   :  { %v2018_v15 = vmul.f32 %v4283_v12, %v4279_v56  ;;  %v2191_v17 = vpop.permute.xlu1 %2190 }
0x1445   :  { %v4285_v26 = vpop.eup %4284 }
0x1446   :  { %v2020_v24 = vmul.f32 %v4285_v26, %v4281_v62 }
0x1448   :  { %v2021_v18 = vpack.c.bf16 %v2020_v24, %v2018_v15  ;;  %v2312_v21 = vpop.permute.xlu1 %2311 }
0x1449   :  { %3930 = vmatmul.mubr.msk.bf16.vlgmr.msra.gmra.mrb[20].mxu0 %vm607_vm1, %v2191_v17 }
0x144a   :  { %3912 = vmatmul.mubr.msk.bf16.vlgmr.msra.gmra.mrb[48].mxu1 %vm655_vm2, %v2021_v18  ;;  %3940 = vmatpush3.bf16.xpose.msra.mxu0 %v2319_v19 }
0x144b   :  { %3916 = vmatpush3.bf16.xpose.msra.mxu1 %v2076_v20  ;;  %3941 = vmatprep.mubr.msk.bf16.mxu0 %vm4535_vm0, %v4534_v0 }
0x144c   :  { %3917 = vmatprep.mubr.msk.bf16.mxu1 %vm4535_vm0, %v4534_v0  ;;  %3921 = vmatprep.subr.bf16.mxu1 %v4534_v0 }
0x144d   :  { %3951 = vmatprep.subr.bf16.mxu0 %v4534_v0 }
0x1451   :  { %3942 = vmatmul.mubr.msk.bf16.vlgmr.msra.gmra.mrb[24].mxu0 %vm607_vm1, %v2312_v21 }
0x1452   :  { %3918 = vmatmul.mubr.msk.bf16.vlgmr.msra.gmra.mrb[52].mxu1 %vm607_vm1, %v2068_v9  ;;  %3967 = vmatprep.mubr.msk.bf16.mxu0 %vm4535_vm0, %v4534_v0 }
0x1453   :  { %3923 = vmatprep.mubr.msk.bf16.mxu1 %vm4535_vm0, %v4534_v0 }
0x151c   :  { %v2234_v22 = vpop.f32.mrb[20].mxu0 }
0x151d   :  { %v5087_v23 = vpop.f32.mrb[48].mxu1  ;;  %v3931_v27 = vpop.f32.mrb[21].mxu0  ;;  %v2235_v13 = vadd.f32 %v5055_v25, %v2234_v22 }
0x151e   :  { %v3913_v29 = vpop.f32.mrb[49].mxu1  ;;  %v2237_v30 = vpop.f32.mrb[22].mxu0 }
0x151f   :  { %v5089_v31 = vpop.f32.mrb[50].mxu1  ;;  %v3932_v32 = vpop.f32.mrb[23].mxu0  ;;  %v2238_v61 = vadd.f32 %v5055_v25, %v2237_v30  ;;  %v2241_v46 = vsel %vm655_vm2, %v2235_v13, -inf }
0x1520   :  { %v3914_v33 = vpop.f32.mrb[51].mxu1 }
0x1521   :  { %v2244_v49 = vsel %vm655_vm2, %v2238_v61, -inf }
0x1524   :  { %v2355_v34 = vpop.f32.mrb[24].mxu0 }
0x1525   :  { %v2112_v35 = vpop.f32.mrb[52].mxu1  ;;  %v3943_v36 = vpop.f32.mrb[25].mxu0  ;;  %v2356_v2 = vadd.f32 %v5055_v25, %v2355_v34 }
0x1526   :  { %v2113_v37 = vadd.f32 %v5055_v25, %v2112_v35  ;;  %v3919_v39 = vpop.f32.mrb[53].mxu1  ;;  %v2358_v28 = vpop.f32.mrb[26].mxu0 }
0x1527   :  { %v2115_v42 = vpop.f32.mrb[54].mxu1  ;;  %v3944_v43 = vpop.f32.mrb[27].mxu0  ;;  %v2362_v47 = vsel %vm655_vm2, %v2356_v2, -inf  ;;  %v2359_v48 = vadd.f32 %v5055_v25, %v2358_v28 }
0x1528   :  { %v2116_v44 = vadd.f32 %v5055_v25, %v2115_v42  ;;  %v3920_v14 = vpop.f32.mrb[55].mxu1  ;;  %v2119_v45 = vsel %vm655_vm2, %v2113_v37, -inf }
0x1529   :  { %2120 = vmax.xlane.f32.xlu0 %v2119_v45  ;;  %v2365_v50 = vsel %vm655_vm2, %v2359_v48, -inf }
0x152a   :  { %v2122_v4 = vsel %vm655_vm2, %v2116_v44, -inf }
0x152b   :  { %2123 = vmax.xlane.f32.xlu1 %v2122_v4 }
0x152d   :  { %2242 = vmax.xlane.f32.xlu0 %v2241_v46 }
0x152f   :  { %2363 = vmax.xlane.f32.xlu1 %v2362_v47 }
0x1531   :  { %2245 = vmax.xlane.f32.xlu0 %v2244_v49  ;;  %v4142_v49 = vld [vmem:[#allocation7 + $0x40] sm:$0xff]  }
0x1532   :  { %3952 = vmatpush3.bf16.msra.mxu0 %v4142_v49  ;;  %v4156_v49 = vld [vmem:[#allocation8 + $0xa0] ss:$8 sps:$4 sm:$0xff]  }
0x1533   :  { %3953 = vmatprep.subr.bf16.mxu0 %v4534_v0 }
0x1535   :  { %2366 = vmax.xlane.f32.xlu0 %v2365_v50  ;;  %v4143_v50 = vld [vmem:[#allocation7 + $0x48] sm:$0xff]  }
0x1536   :  { %3954 = vmatpush3.bf16.msra.mxu0 %v4143_v50  ;;  %v4161_v50 = vld [vmem:[#allocation8 + $0xb4] ss:$8 sps:$4 sm:$0xff]  }
0x1537   :  { %3955 = vmatprep.subr.bf16.mxu0 %v4534_v0 }
0x15b6   :  { %v2121_v51 = vpop.xlane.xlu0 %2120 }
0x15b7   :  { %v2125_v40 = vsub.f32 %v2113_v37, %v2121_v51  ;;  %v4144_v51 = vld [vmem:[#allocation7 + $0x50] sm:$0xff]  }
0x15b8   :  { %v2124_v52 = vpop.xlane.xlu1 %2123  ;;  %3956 = vmatpush3.bf16.msra.mxu0 %v4144_v51  ;;  %v4159_v51 = vld [vmem:[#allocation8 + $0xb0] ss:$8 sps:$4 sm:$0xff]  }
0x15b9   :  { %v2126_v54 = vsub.f32 %v2116_v44, %v2124_v52  ;;  %v2127_v25 = vmul.f32 1.442695, %v2125_v40  ;;  %3957 = vmatprep.subr.bf16.mxu0 %v4534_v0  ;;  %v4145_v52 = vld [vmem:[#allocation7 + $0x58] sm:$0xff]  }
0x15ba   :  { %v2243_v53 = vpop.xlane.xlu0 %2242 }
0x15bb   :  { %v2247_v38 = vsub.f32 %v2235_v13, %v2243_v53  ;;  %v2129_v5 = vmul.f32 1.442695, %v2126_v54  ;;  %v4146_v53 = vld [vmem:[#allocation7 + $0x60] sm:$0xff]  }
0x15bc   :  { %v2364_v41 = vpop.xlane.xlu1 %2363  ;;  %3958 = vmatpush3.bf16.msra.mxu0 %v4145_v52  ;;  %v4164_v52 = vld [vmem:[#allocation8 + $0xc4] ss:$8 sps:$4 sm:$0xff]  }
0x15bd   :  { %v2249_v55 = vmul.f32 1.442695, %v2247_v38  ;;  %v2368_v56 = vsub.f32 %v2356_v2, %v2364_v41  ;;  %3959 = vmatprep.subr.bf16.mxu0 %v4534_v0  ;;  %v4147_v41 = vld [vmem:[#allocation7 + $0x68] sm:$0xff]  }
0x15be   :  { %v2246_v58 = vpop.xlane.xlu0 %2245 }
0x15bf   :  { %4286 = vpow2.f32 %v2249_v55  ;;  %v2370_v62 = vmul.f32 1.442695, %v2368_v56  ;;  %v2248_v63 = vsub.f32 %v2238_v61, %v2246_v58  ;;  %v4148_v58 = vld [vmem:[#allocation7 + $0x70] sm:$0xff]  }
0x15c0   :  { %3960 = vmatpush3.bf16.msra.mxu0 %v4146_v53  ;;  %v4162_v53 = vld [vmem:[#allocation8 + $0xc0] ss:$8 sps:$4 sm:$0xff]  }
0x15c1   :  { %4288 = vpow2.f32 %v2370_v62  ;;  %v2251_v7 = vmul.f32 1.442695, %v2248_v63  ;;  %3961 = vmatprep.subr.bf16.mxu0 %v4534_v0 }
0x15c2   :  { %v2367_v8 = vpop.xlane.xlu0 %2366 }
0x15c3   :  { %4290 = vpow2.f32 %v2251_v7  ;;  %v2369_v9 = vsub.f32 %v2359_v48, %v2367_v8 }
0x15c4   :  { %4292 = vpow2.f32 %v2127_v25  ;;  %3962 = vmatpush3.bf16.msra.mxu0 %v4147_v41  ;;  %v4149_v25 = vld [vmem:[#allocation7 + $0x78] sm:$0xff]   ;;  %v4170_v41 = vld [vmem:[#allocation8 + $0xe4] ss:$8 sps:$4 sm:$0xff]  }
0x15c5   :  { %4294 = vpow2.f32 %v2129_v5  ;;  %v2372_v10 = vmul.f32 1.442695, %v2369_v9  ;;  %3963 = vmatprep.subr.bf16.mxu0 %v4534_v0 }
0x15c7   :  { %4296 = vpow2.f32 %v2372_v10 }
0x15c8   :  { %3964 = vmatpush3.bf16.msra.mxu0 %v4148_v58 }
0x15c9   :  { %v4287_v11 = vpop.eup %4286  ;;  %3965 = vmatprep.subr.bf16.mxu0 %v4534_v0 }
0x15ca   :  { %v2253_v12 = vsel %vm655_vm2, %v4287_v11, 0.0 }
0x15cb   :  { %v4289_v26 = vpop.eup %4288  ;;  %2254 = vadd.xlane.f32.xlu1 %v2253_v12 }
0x15cc   :  { %v2374_v17 = vsel %vm655_vm2, %v4289_v26, 0.0  ;;  %3966 = vmatpush3.bf16.msra.mxu0 %v4149_v25 }
0x15cd   :  { %v4291_v15 = vpop.eup %4290 }
0x15ce   :  { %v4293_v24 = vpop.eup %4292  ;;  %v2256_v16 = vsel %vm655_vm2, %v4291_v15, 0.0 }
0x15cf   :  { %v4295_v18 = vpop.eup %4294  ;;  %2257 = vadd.xlane.f32.xlu0 %v2256_v16  ;;  %2375 = vadd.xlane.f32.xlu1 %v2374_v17  ;;  %v2131_v20 = vsel %vm655_vm2, %v4293_v24, 0.0 }
0x15d0   :  { %v2134_v19 = vsel %vm655_vm2, %v4295_v18, 0.0 }
0x15d1   :  { %v4297_v21 = vpop.eup %4296 }
0x15d2   :  { %v2377_v22 = vsel %vm655_vm2, %v4297_v21, 0.0 }
0x15d3   :  { %2135 = vadd.xlane.f32.xlu0 %v2134_v19  ;;  %2132 = vadd.xlane.f32.xlu1 %v2131_v20 }
0x15d7   :  { %2378 = vadd.xlane.f32.xlu0 %v2377_v22 }
0x15e4   :  { %2143 = vrot.lane.b32.xlu1 %v5043_v60, %s4537_s5 }
0x15e8   :  { %2385 = vrot.lane.b32.xlu1 %v5043_v60, %s4538_s3 }
0x15ed   :  { %2264 = vrot.lane.b32.xlu0 %v5043_v60, %s4529_s20 }
0x1658   :  { %v2255_v27 = vpop.xlane.xlu1 %2254 }
0x165c   :  { %v2258_v29 = vpop.xlane.xlu0 %2257  ;;  %v2376_v30 = vpop.xlane.xlu1 %2375 }
0x1660   :  { %v2136_v32 = vpop.xlane.xlu0 %2135  ;;  %v2133_v33 = vpop.xlane.xlu1 %2132 }
0x1661   :  { %4298 = vrcp.f32 %v2136_v32 }
0x1662   :  { %4300 = vrcp.f32 %v2133_v33 }
0x1663   :  { %4302 = vrcp.f32 %v2258_v29 }
0x1664   :  { %v2144_v34 = vpop.permute.xlu1 %2143  ;;  %4304 = vrcp.f32 %v2255_v27  ;;  %v2379_v36 = vpop.xlane.xlu0 %2378 }
0x1665   :  { %3922 = vmatpush3.bf16.msra.mxu1 %v2144_v34  ;;  %4306 = vrcp.f32 %v2379_v36 }
0x1666   :  { %3933 = vmatprep.subr.bf16.mxu1 %v4534_v0  ;;  %4308 = vrcp.f32 %v2376_v30 }
0x1668   :  { %v2265_v43 = vpop.permute.xlu0 %2264  ;;  %v2386_v4 = vpop.permute.xlu1 %2385 }
0x166b   :  { %v4299_v35 = vpop.eup %4298 }
0x166c   :  { %v4301_v37 = vpop.eup %4300  ;;  %v2140_v39 = vmul.f32 %v4299_v35, %v4295_v18  ;;  %v3547_v35 = vld [vmem:[%s5211_s11 + $0x1] ss:$0 sm:$0xff] }
0x166d   :  { %v2138_v28 = vmul.f32 %v4301_v37, %v4293_v24  ;;  %v4303_v42 = vpop.eup %4302 }
0x166e   :  { %v4305_v13 = vpop.eup %4304  ;;  %v2262_v44 = vmul.f32 %v4303_v42, %v4291_v15 }
0x166f   :  { %v2141_v60 = vpack.c.bf16 %v2140_v39, %v2138_v28  ;;  %v2260_v14 = vmul.f32 %v4305_v13, %v4287_v11  ;;  %v4307_v2 = vpop.eup %4306  ;;  %v4152_v13 = vld [vmem:[#allocation8 + $0x84] ss:$8 sps:$4 sm:$0xff]  }
0x1670   :  { %v4309_v61 = vpop.eup %4308  ;;  %v2383_v46 = vmul.f32 %v4307_v2, %v4297_v21 }
0x1671   :  { %3924 = vmatmul.mubr.msk.bf16.vlgmr.msra.gmra.mrb[56].mxu1 %vm655_vm2, %v2141_v60  ;;  %v2263_v45 = vpack.c.bf16 %v2262_v44, %v2260_v14  ;;  %v2381_v47 = vmul.f32 %v4309_v61, %v4289_v26  ;;  %v4155_v44 = vld [vmem:[#allocation8 + $0x94] ss:$8 sps:$4 sm:$0xff]   ;;  %v4153_v14 = vld [vmem:[#allocation8 + $0x90] ss:$8 sps:$4 sm:$0xff]  }
0x1672   :  { %3934 = vmatpush3.bf16.msra.mxu1 %v2265_v43  ;;  %3935 = vmatprep.mubr.msk.bf16.mxu1 %vm4535_vm0, %v4534_v0  ;;  %v4150_v43 = vld [vmem:[#allocation8 + $0x80] ss:$8 sps:$4 sm:$0xff]  }
0x1673   :  { %3945 = vmatprep.subr.bf16.mxu1 %v4534_v0  ;;  %v2384_v48 = vpack.c.bf16 %v2383_v46, %v2381_v47 }
0x1679   :  { %3936 = vmatmul.mubr.msk.bf16.vlgmr.msra.gmra.mrb[60].mxu1 %vm655_vm2, %v2263_v45 }
0x167a   :  { %3946 = vmatpush3.bf16.msra.mxu1 %v2386_v4  ;;  %3947 = vmatprep.mubr.msk.bf16.mxu1 %vm4535_vm0, %v4534_v0 }
0x167b   :  { %2732 = vmatprep.subr.bf16.mxu1 %v4152_v13 }
0x1681   :  { %3948 = vmatmul.mubr.msk.bf16.vlgmr.msra.gmra.mrb[64].mxu1 %vm655_vm2, %v2384_v48 }
0x1682   :  { %2764 = vmatprep.mubr.bf16.mxu1 %v4536_v1  ;;  %2733 = vmatpush1.bf16.msra.mxu1 %v4150_v43 }
0x1683   :  { %2734 = vmatprep.subr.bf16.mxu1 %v4155_v44 }
0x1686   :  { %2735 = vmatpush1.bf16.msra.mxu1 %v4153_v14 }
0x1744   :  { %v2183_v38 = vpop.f32.mrb[56].mxu1 }
0x1745   :  { %v3925_v40 = vpop.f32.mrb[57].mxu1 }
0x1746   :  { %v2186_v54 = vpop.f32.mrb[58].mxu1  ;;  %v4165_v40 = vld [vmem:[#allocation8 + $0xd0] ss:$8 sps:$4 sm:$0xff]  }
0x1747   :  { %v4007_v55 = vpack.i.bf16 %v2186_v54, %v2183_v38  ;;  %v3926_v56 = vpop.f32.mrb[59].mxu1  ;;  %v4167_v38 = vld [vmem:[#allocation8 + $0xd4] ss:$8 sps:$4 sm:$0xff]   ;;  %v4168_v54 = vld [vmem:[#allocation8 + $0xe0] ss:$8 sps:$4 sm:$0xff]  }
0x1748   :  { %v4171_v56 = vld [vmem:[#allocation8 + $0xf0] ss:$8 sps:$4 sm:$0xff]  }
0x1749   :  { %4008 = vrot.lane.b32.xlu1 %v4007_v55, %s4538_s3  ;;  %v4173_v55 = vld [vmem:[#allocation8 + $0xf4] ss:$8 sps:$4 sm:$0xff]  }
0x174c   :  { %v2304_v62 = vpop.f32.mrb[60].mxu1 }
0x174d   :  { %v3937_v63 = vpop.f32.mrb[61].mxu1 }
0x174e   :  { %v2307_v5 = vpop.f32.mrb[62].mxu1 }
0x174f   :  { %v4012_v7 = vpack.i.bf16 %v2307_v5, %v2304_v62  ;;  %v3938_v8 = vpop.f32.mrb[63].mxu1 }
0x1751   :  { %4013 = vrot.lane.b32.xlu0 %v4012_v7, %s4529_s20 }
0x1754   :  { %v2425_v9 = vpop.f32.mrb[64].mxu1 }
0x1755   :  { %v3949_v10 = vpop.f32.mrb[65].mxu1 }
0x1756   :  { %v2428_v11 = vpop.f32.mrb[66].mxu1  ;;  %v3558_v10 = vld [vmem:[%s5212_s12 + $0x1] ss:$0 sm:$0xff] }
0x1757   :  { %v4017_v12 = vpack.i.bf16 %v2428_v11, %v2425_v9  ;;  %v3950_v26 = vpop.f32.mrb[67].mxu1 }
0x1759   :  { %4018 = vrot.lane.b32.xlu1 %v4017_v12, %s4537_s5 }
0x17bb   :  { %v4009_v15 = vpop.permute.xlu1 %4008 }
0x17bc   :  { %v4011_v16 = vunpack.i.h.bf16 %v4009_v15  ;;  %v4010_v17 = vunpack.i.l.bf16 %v4009_v15  ;;  %v3559_v15 = vld [vmem:[%s5213_s13 + $0x1] ss:$0 sm:$0xff] }
0x17be   :  { %v2457_v20 = vsel %vm607_vm1, %v5089_v31, %v4011_v16  ;;  %v2456_v21 = vsel %vm607_vm1, %v5087_v23, %v4010_v17 }
0x17c3   :  { %v4014_v24 = vpop.permute.xlu0 %4013 }
0x17c4   :  { %v4016_v0 = vunpack.i.h.bf16 %v4014_v24  ;;  %v4015_v18 = vunpack.i.l.bf16 %v4014_v24 }
0x17c6   :  { %v2459_v29 = vsel %vm1115_vm3, %v2457_v20, %v4016_v0  ;;  %v2458_v30 = vsel %vm1115_vm3, %v2456_v21, %v4015_v18  ;;  %v4174_v18 = vld [vmem:[#allocation10 + $0xc0] sm:$0xff]   ;;  %v4176_v20 = vld [vmem:[#allocation10 + $0xc8] sm:$0xff]  }
0x17c7   :  { %3731 = vmatprep.subr.bf16.mxu0 %v4174_v18  ;;  %v4177_v21 = vld [vmem:[#allocation10 + $0x88] sm:$0xff]  }
0x17cb   :  { %v4019_v19 = vpop.permute.xlu1 %4018 }
0x17cc   :  { %v4021_v22 = vunpack.i.h.bf16 %v4019_v19  ;;  %v4020_v27 = vunpack.i.l.bf16 %v4019_v19  ;;  %v4175_v19 = vld [vmem:[#allocation10 + $0x80] sm:$0xff]  }
0x17ce   :  { %v2461_v32 = vsel %vm1118_vm4, %v2459_v29, %v4021_v22  ;;  %v2460_v33 = vsel %vm1118_vm4, %v2458_v30, %v4020_v27  ;;  %v4178_v22 = vld [vmem:[#allocation10 + $0xd0] sm:$0xff]   ;;  %v4180_v29 = vld [vmem:[#allocation10 + $0xd8] sm:$0xff]  }
0x17cf   :  { %v2462_v34 = vpack.c.bf16 %v2461_v32, %v2460_v33  ;;  %v4179_v27 = vld [vmem:[#allocation10 + $0x90] sm:$0xff]   ;;  %v4181_v30 = vld [vmem:[#allocation10 + $0x98] sm:$0xff]   ;;  %v4182_v32 = vld [vmem:[#allocation10 + $0xe0] sm:$0xff]  }
0x17d0   :  { %v4183_v33 = vld [vmem:[#allocation10 + $0xa0] sm:$0xff]  }
0x17d1   :  { %3968 = vmatmul.mubr.bf16.vlgmr.msra.gmra.mrb[28].mxu0 %v2462_v34  ;;  %v4185_v34 = vld [vmem:[#allocation10 + $0xa8] sm:$0xff]  }
0x17d2   :  { %3732 = vmatpush3.bf16.msra.mxu0 %v4175_v19 }
0x17d3   :  { %3733 = vmatprep.subr.bf16.mxu0 %v4176_v20 }
0x17d6   :  { %3734 = vmatpush3.bf16.msra.mxu0 %v4177_v21 }
0x17d7   :  { %3735 = vmatprep.subr.bf16.mxu0 %v4178_v22 }
0x17da   :  { %3736 = vmatpush3.bf16.msra.mxu0 %v4179_v27 }
0x17db   :  { %3737 = vmatprep.subr.bf16.mxu0 %v4180_v29  ;;  %v3578_v29 = vld [vmem:[%s5217_s17 + $0x1] ss:$0 sm:$0xff] }
0x17de   :  { %3738 = vmatpush3.bf16.msra.mxu0 %v4181_v30 }
0x17df   :  { %3739 = vmatprep.subr.bf16.mxu0 %v4182_v32 }
0x17e2   :  { %3740 = vmatpush3.bf16.msra.mxu0 %v4183_v33 }
0x18a4   :  { %v2570_v31 = vpop.f32.mrb[28].mxu0 }
0x18a5   :  { %v2571_v36 = vadd.f32 %v3547_v35, %v2570_v31  ;;  %v3969_v37 = vpop.f32.mrb[29].mxu0  ;;  %v4187_v31 = vld [vmem:[#allocation10 + $0xb0] sm:$0xff]  }
0x18a6   :  { %v2573_v23 = vpop.f32.mrb[30].mxu0  ;;  %v4189_v37 = vld [vmem:[#allocation10 + $0xb8] sm:$0xff]  }
0x18a7   :  { %v2574_v39 = vadd.f32 %v3547_v35, %v2573_v23  ;;  %v3970_v28 = vpop.f32.mrb[31].mxu0  ;;  %v2577_v60 = vadd.f32 %v2571_v36, %v5026_v57  ;;  %v4186_v35 = vld [vmem:[#allocation10 + $0xf0] sm:$0xff]   ;;  %v4188_v36 = vld [vmem:[#allocation10 + $0xf8] sm:$0xff]   ;;  %v3560_v23 = vld [vmem:[%s5215_s15 + $0x2] sm:$0x3] }
0x18a8   :  { %v2649_v28 = vrot.slane %v3560_v23, %v4853_v6 }
0x18a9   :  { %2583 = vadd.xlane.f32.xlu0 %v2577_v60  ;;  %v2578_v42 = vadd.f32 %v2574_v39, %v5028_v59  ;;  %v4158_v59 = vld [vmem:[#allocation8 + $0xa4] ss:$8 sps:$4 sm:$0xff]   ;;  %v2645_v39 = vrot.slane %v3560_v23, %v4846_v3  ;;  %v4190_v23 = vld [vmem:[#allocation11] ss:$8 sps:$4 sm:$0xff]  }
0x18aa   :  { %2736 = vmatprep.subr.bf16.mxu1 %v4158_v59 }
0x18ab   :  { %2585 = vadd.xlane.f32.xlu1 %v2578_v42  ;;  %2737 = vmatpush1.bf16.msra.mxu1 %v4156_v49 }
0x18ac   :  { %2738 = vmatprep.subr.bf16.mxu1 %v4161_v50 }
0x18af   :  { %2739 = vmatpush1.bf16.msra.mxu1 %v4159_v51 }
0x18b0   :  { %2740 = vmatprep.subr.bf16.mxu1 %v4164_v52 }
0x18b3   :  { %2741 = vmatpush1.bf16.msra.mxu1 %v4162_v53 }
0x18b4   :  { %2742 = vmatprep.subr.bf16.mxu1 %v4167_v38 }
0x18b7   :  { %2743 = vmatpush1.bf16.msra.mxu1 %v4165_v40 }
0x18b8   :  { %2744 = vmatprep.subr.bf16.mxu1 %v4170_v41 }
0x18bb   :  { %2745 = vmatpush1.bf16.msra.mxu1 %v4168_v54 }
0x18bc   :  { %2746 = vmatprep.subr.bf16.mxu1 %v4173_v55 }
0x18bf   :  { %2747 = vmatpush1.bf16.msra.mxu1 %v4171_v56 }
0x1936   :  { %v2584_v45 = vpop.xlane.xlu0 %2583 }
0x1937   :  { %v2587_v2 = vmul.f32 0.0078125, %v2584_v45 }
0x1938   :  { %v2586_v4 = vpop.xlane.xlu1 %2585 }
0x1939   :  { %v2589_v61 = vsub.f32 %v2577_v60, %v2587_v2  ;;  %v2588_v46 = vmul.f32 0.0078125, %v2586_v4 }
0x193b   :  { %v2590_v47 = vsub.f32 %v2578_v42, %v2588_v46  ;;  %v2591_v48 = vmul.f32 %v2589_v61, %v2589_v61 }
0x193d   :  { %2593 = vadd.xlane.f32.xlu0 %v2591_v48  ;;  %v2592_v57 = vmul.f32 %v2590_v47, %v2590_v47 }
0x1941   :  { %2595 = vadd.xlane.f32.xlu0 %v2592_v57 }
0x19ca   :  { %v2594_v58 = vpop.xlane.xlu0 %2593 }
0x19cb   :  { %v2597_v62 = vmul.f32 0.0078125, %v2594_v58 }
0x19cd   :  { %v2599_v63 = vadd.f32 1e-05, %v2597_v62 }
0x19ce   :  { %v2596_v25 = vpop.xlane.xlu0 %2595 }
0x19cf   :  { %4310 = vrsqrt.f32 %v2599_v63  ;;  %v2598_v5 = vmul.f32 0.0078125, %v2596_v25 }
0x19d1   :  { %v2600_v7 = vadd.f32 1e-05, %v2598_v5 }
0x19d3   :  { %4312 = vrsqrt.f32 %v2600_v7 }
0x19d9   :  { %v4311_v8 = vpop.eup %4310 }
0x19da   :  { %v2603_v9 = vmul.f32 %v4311_v8, %v2589_v61 }
0x19dc   :  { %v2611_v26 = vmul.f32 %v3558_v10, %v2603_v9 }
0x19dd   :  { %v4313_v11 = vpop.eup %4312 }
0x19de   :  { %v2604_v12 = vmul.f32 %v4313_v11, %v2590_v47  ;;  %v5154_v16 = vadd.f32 %v3559_v15, %v2611_v26 }
0x19e0   :  { %v2612_v24 = vmul.f32 %v3558_v10, %v2604_v12 }
0x19e2   :  { %v5156_v17 = vadd.f32 %v3559_v15, %v2612_v24 }
0x19e4   :  { %v2621_v0 = vpack.c.bf16 %v5156_v17, %v5154_v16 }
0x19e6   :  { %2765 = vmatmul.mubr.bf16.vlgmr.msra.gmra.mrb[68].mxu1 %v2621_v0 }
0x19e7   :  { %3176 = vmatprep.mubr.bf16.mxu1 %v4536_v1  ;;  %v4184_v1 = vld [vmem:[#allocation10 + $0xe8] sm:$0xff]  }
0x19e8   :  { %3741 = vmatprep.subr.bf16.mxu0 %v4184_v1 }
0x19e9   :  { %3742 = vmatpush3.bf16.msra.mxu0 %v4185_v34 }
0x19ea   :  { %3743 = vmatprep.subr.bf16.mxu0 %v4186_v35 }
0x19ed   :  { %3744 = vmatpush3.bf16.msra.mxu0 %v4187_v31 }
0x19ee   :  { %3745 = vmatprep.subr.bf16.mxu0 %v4188_v36 }
0x19f1   :  { %3746 = vmatpush3.bf16.msra.mxu0 %v4189_v37 }
0x1ab9   :  { %v2766_v60 = vpop.f32.mrb[68].mxu1 }
0x1aba   :  { %v2767_v42 = vadd.f32 %v2766_v60, %v2645_v39  ;;  %v2768_v43 = vpop.f32.mrb[69].mxu1  ;;  %v4193_v60 = vld [vmem:[#allocation11 + $0x10] ss:$8 sps:$4 sm:$0xff]  }
0x1abb   :  { %v2769_v13 = vadd.f32 %v2768_v43, %v2649_v28  ;;  %v2770_v44 = vpop.f32.mrb[70].mxu1 }
0x1abc   :  { %v2775_v14 = vmul.f32 %v2767_v42, %v2767_v42  ;;  %v2771_v45 = vadd.f32 %v2770_v44, %v2645_v39  ;;  %v2772_v2 = vpop.f32.mrb[71].mxu1  ;;  %v4192_v39 = vld [vmem:[#allocation11 + $0x4] ss:$8 sps:$4 sm:$0xff]  }
0x1abd   :  { %v2776_v4 = vmul.f32 %v2769_v13, %v2769_v13  ;;  %v2773_v61 = vadd.f32 %v2772_v2, %v2649_v28  ;;  %v4195_v28 = vld [vmem:[#allocation11 + $0x14] ss:$8 sps:$4 sm:$0xff]   ;;  %3144 = vmatprep.subr.bf16.mxu1 %v4192_v39 }
0x1abe   :  { %v2779_v46 = vmul.f32 %v2775_v14, %v2767_v42  ;;  %v2777_v47 = vmul.f32 %v2771_v45, %v2771_v45  ;;  %3145 = vmatpush1.bf16.msra.mxu1 %v4190_v23 }
0x1abf   :  { %v2780_v48 = vmul.f32 %v2776_v4, %v2769_v13  ;;  %v2778_v57 = vmul.f32 %v2773_v61, %v2773_v61  ;;  %3146 = vmatprep.subr.bf16.mxu1 %v4195_v28  ;;  %v4196_v4 = vld [vmem:[#allocation11 + $0x20] ss:$8 sps:$4 sm:$0xff]  }
0x1ac0   :  { %v2783_v59 = vmul.f32 0.044715, %v2779_v46  ;;  %v2781_v49 = vmul.f32 %v2777_v47, %v2771_v45  ;;  %v4199_v46 = vld [vmem:[#allocation11 + $0x30] ss:$8 sps:$4 sm:$0xff]   ;;  %v4204_v47 = vld [vmem:[#allocation11 + $0x44] ss:$8 sps:$4 sm:$0xff]  }
0x1ac1   :  { %v2784_v50 = vmul.f32 0.044715, %v2780_v48  ;;  %v2782_v51 = vmul.f32 %v2778_v57, %v2773_v61  ;;  %v4202_v48 = vld [vmem:[#allocation11 + $0x40] ss:$8 sps:$4 sm:$0xff]   ;;  %v4207_v57 = vld [vmem:[#allocation11 + $0x54] ss:$8 sps:$4 sm:$0xff]  }
0x1ac2   :  { %v2787_v52 = vadd.f32 %v2783_v59, %v2767_v42  ;;  %v2785_v53 = vmul.f32 0.044715, %v2781_v49  ;;  %3147 = vmatpush1.bf16.msra.mxu1 %v4193_v60  ;;  %v4205_v59 = vld [vmem:[#allocation11 + $0x50] ss:$8 sps:$4 sm:$0xff]   ;;  %v4210_v49 = vld [vmem:[#allocation11 + $0x64] ss:$8 sps:$4 sm:$0xff]  }
0x1ac3   :  { %v2788_v38 = vadd.f32 %v2784_v50, %v2769_v13  ;;  %v2786_v40 = vmul.f32 0.044715, %v2782_v51  ;;  %v4208_v50 = vld [vmem:[#allocation11 + $0x60] ss:$8 sps:$4 sm:$0xff]   ;;  %v4213_v51 = vld [vmem:[#allocation11 + $0x74] ss:$8 sps:$4 sm:$0xff]  }
0x1ac4   :  { %v2791_v41 = vmul.f32 0.7978846, %v2787_v52  ;;  %v2789_v54 = vadd.f32 %v2785_v53, %v2771_v45  ;;  %v4211_v52 = vld [vmem:[#allocation11 + $0x70] ss:$8 sps:$4 sm:$0xff]  }
0x1ac5   :  { %v2792_v55 = vmul.f32 0.7978846, %v2788_v38  ;;  %v2790_v56 = vadd.f32 %v2786_v40, %v2773_v61 }
0x1ac6   :  { %4314 = vtanh.f32 %v2791_v41  ;;  %v2793_v58 = vmul.f32 0.7978846, %v2789_v54 }
0x1ac7   :  { %4316 = vtanh.f32 %v2792_v55  ;;  %v2794_v62 = vmul.f32 0.7978846, %v2790_v56 }
0x1ac8   :  { %4318 = vtanh.f32 %v2793_v58  ;;  %v3597_v58 = vld [vmem:[%s5218_s18 + $0x1] ss:$0 sm:$0xff] }
0x1ac9   :  { %4320 = vtanh.f32 %v2794_v62 }
0x1ad0   :  { %v4315_v63 = vpop.eup %4314 }
0x1ad1   :  { %v4317_v25 = vpop.eup %4316  ;;  %v2799_v5 = vadd.f32 1.0, %v4315_v63 }
0x1ad2   :  { %v4319_v7 = vpop.eup %4318  ;;  %v2800_v8 = vadd.f32 1.0, %v4317_v25 }
0x1ad3   :  { %v4321_v9 = vpop.eup %4320  ;;  %v2803_v10 = vmul.f32 0.5, %v2799_v5  ;;  %v2801_v11 = vadd.f32 1.0, %v4319_v7  ;;  %v3598_v7 = vld [vmem:[%s5219_s19 + $0x1] ss:$0 sm:$0xff] }
0x1ad4   :  { %v2802_v12 = vadd.f32 1.0, %v4321_v9  ;;  %v2804_v26 = vmul.f32 0.5, %v2800_v8 }
0x1ad5   :  { %v2805_v15 = vmul.f32 0.5, %v2801_v11  ;;  %v2807_v0 = vmul.f32 %v2803_v10, %v2767_v42 }
0x1ad6   :  { %v2806_v24 = vmul.f32 0.5, %v2802_v12  ;;  %v2808_v19 = vmul.f32 %v2804_v26, %v2769_v13  ;;  %v4214_v12 = vld [vmem:[#allocation13 + $0x40] sm:$0xff]  }
0x1ad7   :  { %v2809_v18 = vmul.f32 %v2805_v15, %v2771_v45  ;;  %v4215_v26 = vld [vmem:[#allocation13] sm:$0xff]   ;;  %3753 = vmatprep.subr.bf16.mxu0 %v4214_v12  ;;  %v4216_v15 = vld [vmem:[#allocation13 + $0x48] sm:$0xff]  }
0x1ad8   :  { %v2810_v20 = vmul.f32 %v2806_v24, %v2773_v61  ;;  %v4201_v61 = vld [vmem:[#allocation11 + $0x34] ss:$8 sps:$4 sm:$0xff]   ;;  %v4217_v24 = vld [vmem:[#allocation13 + $0x8] sm:$0xff]  }
0x1ad9   :  { %v2811_v21 = vpack.c.bf16 %v2809_v18, %v2807_v0  ;;  %v4218_v0 = vld [vmem:[#allocation13 + $0x50] sm:$0xff]  }
0x1ada   :  { %v2812_v22 = vpack.c.bf16 %v2810_v20, %v2808_v19  ;;  %v4219_v18 = vld [vmem:[#allocation13 + $0x10] sm:$0xff]   ;;  %v4220_v19 = vld [vmem:[#allocation13 + $0x58] sm:$0xff]  }
0x1adb   :  { %v4221_v20 = vld [vmem:[#allocation13 + $0x18] sm:$0xff]  }
0x1adc   :  { %2982 = vmatprep.mubr.bf16.mxu0 %v2812_v22  ;;  %v4223_v22 = vld [vmem:[#allocation13 + $0x20] sm:$0xff]  }
0x1add   :  { %2983 = vmatmul.mubr.bf16.vlgmr.msra.gmra.mrb[32].mxu0 %v2811_v21  ;;  %v4222_v21 = vld [vmem:[#allocation13 + $0x60] sm:$0xff]  }
0x1ade   :  { %3754 = vmatpush3.bf16.msra.mxu0 %v4215_v26 }
0x1adf   :  { %3755 = vmatprep.subr.bf16.mxu0 %v4216_v15  ;;  %v3615_v15 = vld [vmem:[%s5223_s23] ss:$0 sm:$0xff] }
0x1ae2   :  { %3756 = vmatpush3.bf16.msra.mxu0 %v4217_v24 }
0x1ae3   :  { %3757 = vmatprep.subr.bf16.mxu0 %v4218_v0 }
0x1ae6   :  { %3758 = vmatpush3.bf16.msra.mxu0 %v4219_v18 }
0x1ae7   :  { %3759 = vmatprep.subr.bf16.mxu0 %v4220_v19 }
0x1aea   :  { %3760 = vmatpush3.bf16.msra.mxu0 %v4221_v20 }
0x1aeb   :  { %3761 = vmatprep.subr.bf16.mxu0 %v4222_v21 }
0x1aee   :  { %3762 = vmatpush3.bf16.msra.mxu0 %v4223_v22 }
0x1bb0   :  { %v3747_v27 = vpop.f32.mrb[32].mxu0 }
0x1bb1   :  { %v3748_v30 = vpop.f32.mrb[33].mxu0 }
0x1bb2   :  { %v3749_v32 = vadd.f32 %v3748_v30, %v3747_v27  ;;  %v3750_v33 = vpop.f32.mrb[34].mxu0  ;;  %v4224_v27 = vld [vmem:[#allocation13 + $0x68] sm:$0xff]   ;;  %v4226_v30 = vld [vmem:[#allocation13 + $0x70] sm:$0xff]  }
0x1bb3   :  { %v3751_v1 = vpop.f32.mrb[35].mxu0  ;;  %3763 = vmatprep.subr.bf16.mxu0 %v4224_v27 }
0x1bb4   :  { %v2985_v34 = vadd.f32 %v3749_v32, %v3578_v29  ;;  %v3752_v35 = vadd.f32 %v3751_v1, %v3750_v33  ;;  %v4227_v32 = vld [vmem:[#allocation13 + $0x30] sm:$0xff]   ;;  %v4228_v33 = vld [vmem:[#allocation13 + $0x78] sm:$0xff]  }
0x1bb5   :  { %v4229_v1 = vld [vmem:[#allocation13 + $0x38] sm:$0xff]  }
0x1bb6   :  { %v2988_v31 = vadd.f32 %v3752_v35, %v3578_v29  ;;  %v2991_v36 = vadd.f32 %v2985_v34, %v5154_v16  ;;  %v4225_v29 = vld [vmem:[#allocation13 + $0x28] sm:$0xff]   ;;  %v3052_v34 = vld [vmem:[%s5221_s21] sm:$0x3] }
0x1bb7   :  { %3764 = vmatpush3.bf16.msra.mxu0 %v4225_v29  ;;  %v3057_v35 = vrot.slane %v3052_v34, %v4846_v3 }
0x1bb8   :  { %2997 = vadd.xlane.f32.xlu1 %v2991_v36  ;;  %v2992_v37 = vadd.f32 %v2988_v31, %v5156_v17  ;;  %v4198_v17 = vld [vmem:[#allocation11 + $0x24] ss:$8 sps:$4 sm:$0xff]   ;;  %3765 = vmatprep.subr.bf16.mxu0 %v4226_v30  ;;  %v3061_v31 = vrot.slane %v3052_v34, %v4853_v6 }
0x1bb9   :  { %3148 = vmatprep.subr.bf16.mxu1 %v4198_v17 }
0x1bba   :  { %2999 = vadd.xlane.f32.xlu0 %v2992_v37  ;;  %3149 = vmatpush1.bf16.msra.mxu1 %v4196_v4 }
0x1bbb   :  { %3150 = vmatprep.subr.bf16.mxu1 %v4201_v61  ;;  %3766 = vmatpush3.bf16.msra.mxu0 %v4227_v32 }
0x1bbc   :  { %3767 = vmatprep.subr.bf16.mxu0 %v4228_v33 }
0x1bbe   :  { %3151 = vmatpush1.bf16.msra.mxu1 %v4199_v46 }
0x1bbf   :  { %3152 = vmatprep.subr.bf16.mxu1 %v4204_v47  ;;  %3768 = vmatpush3.bf16.msra.mxu0 %v4229_v1 }
0x1bc2   :  { %3153 = vmatpush1.bf16.msra.mxu1 %v4202_v48 }
0x1bc3   :  { %3154 = vmatprep.subr.bf16.mxu1 %v4207_v57 }
0x1bc6   :  { %3155 = vmatpush1.bf16.msra.mxu1 %v4205_v59 }
0x1bc7   :  { %3156 = vmatprep.subr.bf16.mxu1 %v4210_v49 }
0x1bca   :  { %3157 = vmatpush1.bf16.msra.mxu1 %v4208_v50 }
0x1bcb   :  { %3158 = vmatprep.subr.bf16.mxu1 %v4213_v51 }
0x1bce   :  { %3159 = vmatpush1.bf16.msra.mxu1 %v4211_v52 }
0x1c45   :  { %v2998_v42 = vpop.xlane.xlu1 %2997 }
0x1c46   :  { %v3001_v43 = vmul.f32 0.0078125, %v2998_v42 }
0x1c47   :  { %v3000_v13 = vpop.xlane.xlu0 %2999 }
0x1c48   :  { %v3003_v44 = vsub.f32 %v2991_v36, %v3001_v43  ;;  %v3002_v14 = vmul.f32 0.0078125, %v3000_v13 }
0x1c4a   :  { %v3004_v45 = vsub.f32 %v2992_v37, %v3002_v14  ;;  %v3005_v2 = vmul.f32 %v3003_v44, %v3003_v44 }
0x1c4c   :  { %3007 = vadd.xlane.f32.xlu1 %v3005_v2  ;;  %v3006_v16 = vmul.f32 %v3004_v45, %v3004_v45 }
0x1c4e   :  { %3009 = vadd.xlane.f32.xlu0 %v3006_v16 }
0x1cd9   :  { %v3008_v53 = vpop.xlane.xlu1 %3007 }
0x1cda   :  { %v3011_v38 = vmul.f32 0.0078125, %v3008_v53 }
0x1cdb   :  { %v3010_v40 = vpop.xlane.xlu0 %3009 }
0x1cdc   :  { %v3013_v41 = vadd.f32 1e-05, %v3011_v38  ;;  %v3012_v54 = vmul.f32 0.0078125, %v3010_v40 }
0x1cde   :  { %4322 = vrsqrt.f32 %v3013_v41  ;;  %v3014_v55 = vadd.f32 1e-05, %v3012_v54 }
0x1ce0   :  { %4324 = vrsqrt.f32 %v3014_v55 }
0x1ce8   :  { %v4323_v56 = vpop.eup %4322 }
0x1ce9   :  { %v3017_v62 = vmul.f32 %v4323_v56, %v3003_v44 }
0x1cea   :  { %v4325_v63 = vpop.eup %4324 }
0x1ceb   :  { %v3018_v25 = vmul.f32 %v4325_v63, %v3004_v45  ;;  %v3025_v5 = vmul.f32 %v3597_v58, %v3017_v62 }
0x1ced   :  { %v3026_v8 = vmul.f32 %v3597_v58, %v3018_v25  ;;  %v3033_v9 = vadd.f32 %v3598_v7, %v3025_v5 }
0x1cef   :  { %v3034_v10 = vadd.f32 %v3598_v7, %v3026_v8 }
0x1cf1   :  { %v3035_v11 = vpack.c.bf16 %v3034_v10, %v3033_v9 }
0x1cf3   :  { %3177 = vmatmul.mubr.bf16.vlgmr.msra.gmra.mrb[72].mxu1 %v3035_v11 }
0x1dc6   :  { %v3178_v36 = vpop.f32.mrb[72].mxu1 }
0x1dc7   :  { %v3179_v37 = vadd.f32 %v3178_v36, %v3057_v35  ;;  %v3180_v23 = vpop.f32.mrb[73].mxu1 }
0x1dc8   :  { %v3181_v39 = vadd.f32 %v3180_v23, %v3061_v31  ;;  %v3182_v28 = vpop.f32.mrb[74].mxu1 }
0x1dc9   :  { %v3187_v60 = vmul.f32 %v3179_v37, %v3179_v37  ;;  %v3183_v42 = vadd.f32 %v3182_v28, %v3057_v35  ;;  %v3184_v43 = vpop.f32.mrb[75].mxu1 }
0x1dca   :  { %v3188_v13 = vmul.f32 %v3181_v39, %v3181_v39  ;;  %v3185_v44 = vadd.f32 %v3184_v43, %v3061_v31 }
0x1dcb   :  { %v3191_v14 = vmul.f32 %v3187_v60, %v3179_v37  ;;  %v3189_v45 = vmul.f32 %v3183_v42, %v3183_v42 }
0x1dcc   :  { %v3192_v2 = vmul.f32 %v3188_v13, %v3181_v39  ;;  %v3190_v16 = vmul.f32 %v3185_v44, %v3185_v44 }
0x1dcd   :  { %v3195_v17 = vmul.f32 0.044715, %v3191_v14  ;;  %v3193_v4 = vmul.f32 %v3189_v45, %v3183_v42 }
0x1dce   :  { %v3196_v61 = vmul.f32 0.044715, %v3192_v2  ;;  %v3194_v3 = vmul.f32 %v3190_v16, %v3185_v44 }
0x1dcf   :  { %v3199_v46 = vadd.f32 %v3195_v17, %v3179_v37  ;;  %v3197_v6 = vmul.f32 0.044715, %v3193_v4 }
0x1dd0   :  { %v3200_v47 = vadd.f32 %v3196_v61, %v3181_v39  ;;  %v3198_v48 = vmul.f32 0.044715, %v3194_v3 }
0x1dd1   :  { %v3203_v57 = vmul.f32 0.7978846, %v3199_v46  ;;  %v3201_v59 = vadd.f32 %v3197_v6, %v3183_v42 }
0x1dd2   :  { %v3204_v49 = vmul.f32 0.7978846, %v3200_v47  ;;  %v3202_v50 = vadd.f32 %v3198_v48, %v3185_v44 }
0x1dd3   :  { %4326 = vtanh.f32 %v3203_v57  ;;  %v3205_v51 = vmul.f32 0.7978846, %v3201_v59 }
0x1dd4   :  { %4328 = vtanh.f32 %v3204_v49  ;;  %v3206_v52 = vmul.f32 0.7978846, %v3202_v50 }
0x1dd5   :  { %4330 = vtanh.f32 %v3205_v51 }
0x1dd6   :  { %4332 = vtanh.f32 %v3206_v52 }
0x1ddd   :  { %v4327_v53 = vpop.eup %4326 }
0x1dde   :  { %v4329_v38 = vpop.eup %4328  ;;  %v3211_v40 = vadd.f32 1.0, %v4327_v53 }
0x1ddf   :  { %v4331_v41 = vpop.eup %4330  ;;  %v3212_v54 = vadd.f32 1.0, %v4329_v38 }
0x1de0   :  { %v4333_v55 = vpop.eup %4332  ;;  %v3215_v56 = vmul.f32 0.5, %v3211_v40  ;;  %v3213_v58 = vadd.f32 1.0, %v4331_v41 }
0x1de1   :  { %v3214_v62 = vadd.f32 1.0, %v4333_v55  ;;  %v3216_v63 = vmul.f32 0.5, %v3212_v54 }
0x1de2   :  { %v3217_v25 = vmul.f32 0.5, %v3213_v58  ;;  %v3219_v7 = vmul.f32 %v3215_v56, %v3179_v37 }
0x1de3   :  { %v3218_v5 = vmul.f32 0.5, %v3214_v62  ;;  %v3220_v9 = vmul.f32 %v3216_v63, %v3181_v39 }
0x1de4   :  { %v3221_v8 = vmul.f32 %v3217_v25, %v3183_v42 }
0x1de5   :  { %v3222_v10 = vmul.f32 %v3218_v5, %v3185_v44 }
0x1de6   :  { %v3223_v11 = vpack.c.bf16 %v3221_v8, %v3219_v7 }
0x1de7   :  { %v3224_v12 = vpack.c.bf16 %v3222_v10, %v3220_v9 }
0x1de9   :  { %3392 = vmatprep.mubr.bf16.mxu0 %v3224_v12 }
0x1dea   :  { %3393 = vmatmul.mubr.bf16.vlgmr.msra.gmra.mrb[36].mxu0 %v3223_v11 }
0x1ebd   :  { %v3769_v26 = vpop.f32.mrb[36].mxu0 }
0x1ebe   :  { %v3770_v24 = vpop.f32.mrb[37].mxu0 }
0x1ebf   :  { %v3771_v0 = vadd.f32 %v3770_v24, %v3769_v26  ;;  %v3772_v18 = vpop.f32.mrb[38].mxu0 }
0x1ec0   :  { %v3773_v19 = vpop.f32.mrb[39].mxu0 }
0x1ec1   :  { %v3395_v20 = vadd.f32 %v3771_v0, %v3615_v15  ;;  %v3774_v21 = vadd.f32 %v3773_v19, %v3772_v18 }
0x1ec3   :  { %3401 = vst [vmem:[#allocation14] sm:$0xff] %v3395_v20  ;;  %v3398_v22 = vadd.f32 %v3774_v21, %v3615_v15 }
0x1ec5   :  { %3402 = vst [vmem:[#allocation14 + $0x8] sm:$0xff] %v3398_v22 }
0x1ec6   :  { %4500 = shalt.err (!%p4497_p4)
}
0x1ec7   :  { %s5252_s0 = sld [smem:[#allocation29_spill]] }
0x1ecd   :  { %s4501_s10 = scalar_lea.hbm %s5252_s0, 256 }
0x1ece   :  { %p4502_p5 = scmp.ne.s32.totalorder %s5252_s0, %s4501_s10  ;;  %p4505_p6 = scmp.lt.u32.totalorder %s4501_s10, %s5252_s0 }
0x1ed0   :  { %p4507_p7 = pnand %p4505_p6, %p4502_p5 }
0x1ed2   :  { %4510 = shalt.err (!%p4507_p7)
}
0x1ed3   :  { %s5253_s14 = smov 128  }
0x1ed4   :  { %3414 = dma.vmem_to_hbm [thread:$0]  %s3409_s1, 256, %s5252_s0, [#allocation4], %s5253_s14, %s5253_s14, %s4526_s6  }
0x1ed5   :  { %4519 = dma.done.wait [#allocation4], 256  }
0x1ed6   :  { %4520 = vsyncadd [#allocation4], 4294967040 }
0x1ed7   :  { %3418 = vsyncpa [#allocation3], 1 }
0x1ed8   :  { %3419 = vsyncpa [#allocation6], 1 }
0x1ed9   :  { %3420 = vsyncpa [#allocation9], 1 }
0x1eda   :  { %3421 = vsyncpa [#allocation12], 1 }
0x1edb   :  { %3422 = vsyncpa [#allocation4], 1 }

</bundles_post_ra>
